<compile_context>
chip_gen: v7x
topology: tpu7x:2x2x1
jax: 0.10.0
libtpu: 0.0.40
codegen_flags: <defaults>
</compile_context>

<pallas_src>
import functools

import jax
import jax.numpy as jnp
from jax.experimental import pallas as pl
from jax.experimental.pallas import tpu as pltpu

KSIZE = 3
BN_EPS = 1e-5


# --------------------------------------------------------------------------
# helpers
# --------------------------------------------------------------------------
def _round_up(x, m):
    return ((x + m - 1) // m) * m


def _vmem_capacity_bytes():
    try:
        return int(pltpu.get_tpu_info().vmem_capacity_bytes)
    except Exception:
        return 64 * 2 ** 20          # conservative (v7x per-TensorCore) fallback


def _stripe_vmem_bytes(R, Wp, C):
    """Rough per-stripe VMEM footprint (blocks double-buffered + scratch + live values)."""
    in_blk = (R + 6) * Wp * C * 2            # bf16 input slab block
    out_blk = R * Wp * C * 4                 # f32 output block
    hbuf = (R + 4) * Wp * C * 2              # bf16 h scratch
    acc = (R + 2) * Wp * C * 4               # f32 live accumulator (upper bound)
    work = 2 * (R + 6) * Wp * C * 2          # flattened slab value + one shifted tap
    return 2 * (in_blk + out_blk) + hbuf + acc + work


def _choose_stripe_rows(H, Wp, C, budget_bytes):
    """Largest divisor of H whose stripe fits the budget; prefer >= 2 stripes."""
    divs = [d for d in range(2, H + 1) if H % d == 0] or [H]
    feasible = [d for d in divs if _stripe_vmem_bytes(d, Wp, C) <= budget_bytes]
    feasible = feasible or [min(divs)]
    R = max(feasible)
    # Prefer at least two stripes (more grid parallelism for v7x megacore) as
    # long as the per-stripe matmul M = (R+2)*Wp stays reasonably large.
    if H // R < 2:
        two = [d for d in feasible if H // d >= 2 and (d + 2) * Wp >= 192]
        if two:
            R = max(two)
    return R


def _fold_bn(w_hwio, gamma, beta, mean, var, eps=BN_EPS):
    """Fold BN scale into the conv weight (f32), then cast weight to bf16."""
    scale = gamma / jnp.sqrt(var + eps)                       # (Cout,)
    w = (w_hwio * scale[None, None, None, :]).astype(jnp.bfloat16)   # (3,3,Cin,Cout)
    bias = (beta - mean * scale).reshape(1, -1).astype(jnp.float32)  # (1, Cout)
    return w, bias


# --------------------------------------------------------------------------
# kernel
# --------------------------------------------------------------------------
def _fused_residual_kernel(xs_ref, w1_ref, b1_ref, w2_ref, b2_ref, out_ref, hbuf,
                           *, R, Wp, C, W):
    """block2(block1(x)) + x for one (batch, H-stripe) tile, entirely in VMEM.

    Slab conventions (all flattened as m = row * Wp + col):
      xs slab row i  <-> padded-x row r0 - 3 + i   (1-deep reflect values are exact)
      xs slab col c  <-> x col c - 1               (1-deep reflect; cols >= W+2 junk)
      hbuf row j     <-> padded-h row r0 - 2 + j   (data rows 1..R+2; rows 0, R+3
                                                    are never read -> stale OK)
    """
    Lx = (R + 6) * Wp

    def conv_same(a_flat, w_ref, bias_ref, lout):
        """'same' 3x3 conv over the padded slab, output rows starting at slab row 2.

        out[p] = bias + sum_{kh,kw} a_flat[2*Wp + p + (kh-1)*Wp + (kw-1)] @ w[kh,kw]
        9 (lout, C) @ (C, C) MXU matmuls, f32 accumulation, bias as acc init.
        """
        acc = jnp.broadcast_to(bias_ref[...].astype(jnp.float32), (lout, C))
        for kh in range(KSIZE):
            for kw in range(KSIZE):
                start = 2 * Wp + (kh - 1) * Wp + (kw - 1)
                tap = a_flat[start:start + lout]               # bf16 shifted view
                acc = acc + jnp.dot(tap, w_ref[kh, kw],
                                    preferred_element_type=jnp.float32)
        return acc

    xs = xs_ref[0, 0]                                          # (R+6, Wp, C) bf16
    a1 = xs.reshape(Lx, C)                                     # layout-preserving (Wp % 8 == 0)

    # ---- conv1 + BN1 + ReLU : h rows for global rows r0-1 .. r0+R ----------
    h = conv_same(a1, w1_ref, b1_ref, (R + 2) * Wp)
    h = jnp.maximum(h, 0.0).astype(hbuf.dtype)                 # ReLU, cast bf16
    hbuf[1:R + 3] = h.reshape(R + 2, Wp, C)

    # ---- reflect-boundary fixes so hbuf holds conv2's padded input ---------
    s = pl.program_id(1)

    @pl.when(s == 0)
    def _():                                                   # padded row -1 <- h[1]
        hbuf[1] = hbuf[3]

    @pl.when(s == pl.num_programs(1) - 1)
    def _():                                                   # padded row H  <- h[H-2]
        hbuf[R + 2] = hbuf[R]

    hbuf[:, 0:1, :] = hbuf[:, 2:3, :]                          # padded col -1 <- h[:, 1]
    hbuf[:, W + 1:W + 2, :] = hbuf[:, W - 1:W, :]              # padded col W  <- h[:, W-2]

    # ---- conv2 + BN2 (no activation) ---------------------------------------
    a2 = hbuf[...].reshape((R + 4) * Wp, C)
    y = conv_same(a2, w2_ref, b2_ref, R * Wp)                  # (R*Wp, C) f32

    # ---- residual add + store (stochastic_depth is identity in eval) -------
    xres = xs[3:3 + R].astype(jnp.float32)                     # x rows r0 .. r0+R-1
    out_ref[0, 0] = (y.reshape(R, Wp, C) + xres).astype(out_ref.dtype)


# --------------------------------------------------------------------------
# wrapper
# --------------------------------------------------------------------------
def residual_block_forward(x_nchw, params):
    """Full ResidualBlock forward.  Input/output are NCHW (PyTorch convention)."""
    x = jnp.transpose(x_nchw, (0, 2, 3, 1))                    # NCHW -> NHWC
    B, H, W, C = x.shape
    assert H >= 4 and W >= 2, "reflect padding requires H >= 4 and W >= 2"

    w1p, b1 = _fold_bn(params["w1"], params["g1"], params["b1"],
                       params["m1"], params["v1"])
    w2p, b2 = _fold_bn(params["w2"], params["g2"], params["b2"],
                       params["m2"], params["v2"])

    Wp = _round_up(W + 2, 8)                                   # sublane-aligned slab width
    vmem_cap = _vmem_capacity_bytes()
    R = _choose_stripe_rows(H, Wp, C, int(0.70 * vmem_cap))
    nS = H // R

    # Host-side: bf16 cast + 3-row / 1-col reflect pad (only the 1-deep values
    # are semantically required; deeper rows feed only discarded outputs), pad
    # width to Wp, then build overlapping stripe slabs (stripe + 6-row halo).
    xb = x.astype(jnp.bfloat16)
    xp = jnp.pad(xb, ((0, 0), (3, 3), (1, 1), (0, 0)), mode="reflect")
    xp = jnp.pad(xp, ((0, 0), (0, 0), (0, Wp - (W + 2)), (0, 0)))
    xs = jnp.stack([xp[:, s * R: s * R + R + 6] for s in range(nS)], axis=1)
    # xs: (B, nS, R+6, Wp, C) bf16

    kern = functools.partial(_fused_residual_kernel, R=R, Wp=Wp, C=C, W=W)

    weight_bytes = 2 * (KSIZE * KSIZE * C * C * 2) + 2 * (C * 4)
    est = _stripe_vmem_bytes(R, Wp, C) + weight_bytes
    vmem_limit = int(min(0.9 * vmem_cap, max(32 * 2 ** 20, 2 * est)))

    out5 = pl.pallas_call(
        kern,
        out_shape=jax.ShapeDtypeStruct((B, nS, R, Wp, C), jnp.float32),
        grid_spec=pltpu.PrefetchScalarGridSpec(
            num_scalar_prefetch=0,
            grid=(B, nS),
            in_specs=[
                pl.BlockSpec((1, 1, R + 6, Wp, C), lambda b, s: (b, s, 0, 0, 0)),  # x stripe
                pl.BlockSpec((KSIZE, KSIZE, C, C), lambda b, s: (0, 0, 0, 0)),     # w1 (folded)
                pl.BlockSpec((1, C), lambda b, s: (0, 0)),                          # bias1
                pl.BlockSpec((KSIZE, KSIZE, C, C), lambda b, s: (0, 0, 0, 0)),     # w2 (folded)
                pl.BlockSpec((1, C), lambda b, s: (0, 0)),                          # bias2
            ],
            out_specs=pl.BlockSpec((1, 1, R, Wp, C), lambda b, s: (b, s, 0, 0, 0)),
            scratch_shapes=[pltpu.VMEM((R + 4, Wp, C), jnp.bfloat16)],              # h slab
        ),
        compiler_params=pltpu.CompilerParams(
            dimension_semantics=("parallel", "parallel"),
            vmem_limit_bytes=vmem_limit,
        ),
    )(xs, w1p, b1, w2p, b2)

    out = out5.reshape(B, H, Wp, C)[:, :, 1:W + 1, :]          # drop width padding
    return jnp.transpose(out, (0, 3, 1, 2))                    # NHWC -> NCHW


# --------------------------------------------------------------------------
# pure-JAX reference (mirrors the kernel's bf16-in / f32-accumulate precision)
# --------------------------------------------------------------------------
def _ref_conv_bn(x_bf16, w_bf16, bias_f32, relu):
    xpad = jnp.pad(x_bf16, ((0, 0), (1, 1), (1, 1), (0, 0)), mode="reflect")
    y = jax.lax.conv_general_dilated(
        xpad, w_bf16, window_strides=(1, 1), padding="VALID",
        dimension_numbers=("NHWC", "HWIO", "NHWC"),
        preferred_element_type=jnp.float32)
    y = y + bias_f32.reshape(1, 1, 1, -1)
    if relu:
        y = jnp.maximum(y, 0.0)
    return y


def residual_block_reference(x_nchw, p):
    x = jnp.transpose(x_nchw, (0, 2, 3, 1)).astype(jnp.bfloat16)
    w1p, b1 = _fold_bn(p["w1"], p["g1"], p["b1"], p["m1"], p["v1"])
    w2p, b2 = _fold_bn(p["w2"], p["g2"], p["b2"], p["m2"], p["v2"])
    h = _ref_conv_bn(x, w1p, b1, relu=True).astype(jnp.bfloat16)
    y = _ref_conv_bn(h, w2p, b2, relu=False)
    out = y + x.astype(jnp.float32)
    return jnp.transpose(out, (0, 3, 1, 2))


# --------------------------------------------------------------------------
# main
# --------------------------------------------------------------------------
if __name__ == "__main__":
    B, C, H, W = 2, 4, 16, 16
    key = jax.random.PRNGKey(0)
    kx, kw1, kw2, kg1, kb1, kg2, kb2, km1, kv1, km2, kv2 = jax.random.split(key, 11)

    x = jax.random.normal(kx, (B, C, H, W), jnp.float32)

    params = {
        # conv weights in HWIO layout (3, 3, Cin, Cout), bias=False
        "w1": 0.2 * jax.random.normal(kw1, (KSIZE, KSIZE, C, C), jnp.float32),
        "w2": 0.2 * jax.random.normal(kw2, (KSIZE, KSIZE, C, C), jnp.float32),
        # BatchNorm2d params / running stats (deterministic, non-trivial)
        "g1": 1.0 + 0.1 * jax.random.normal(kg1, (C,), jnp.float32),
        "b1": 0.1 * jax.random.normal(kb1, (C,), jnp.float32),
        "m1": 0.1 * jax.random.normal(km1, (C,), jnp.float32),
        "v1": 1.0 + 0.1 * jax.nn.softplus(jax.random.normal(kv1, (C,), jnp.float32)),
        "g2": 1.0 + 0.1 * jax.random.normal(kg2, (C,), jnp.float32),
        "b2": 0.1 * jax.random.normal(kb2, (C,), jnp.float32),
        "m2": 0.1 * jax.random.normal(km2, (C,), jnp.float32),
        "v2": 1.0 + 0.1 * jax.nn.softplus(jax.random.normal(kv2, (C,), jnp.float32)),
    }

    out = jax.block_until_ready(residual_block_forward(x, params))
    ref = jax.block_until_ready(residual_block_reference(x, params))

    assert out.shape == (B, C, H, W)
    max_err = float(jnp.max(jnp.abs(out - ref)))
    assert jnp.allclose(out, ref, atol=1e-2, rtol=1e-2), (
        f"mismatch vs reference (max abs err {max_err})")
    print("KERNEL_OK")
</pallas_src>

<mosaic_0001>
module attributes {stable_mosaic.version = 11 : i64} {
  func.func @_fused_residual_kernel(%arg0: i32, %arg1: i32, %arg2: memref<1x1x14x24x4xbf16, #tpu.memory_space<vmem>>, %arg3: memref<3x3x4x4xbf16, #tpu.memory_space<vmem>>, %arg4: memref<1x4xf32, #tpu.memory_space<vmem>>, %arg5: memref<3x3x4x4xbf16, #tpu.memory_space<vmem>>, %arg6: memref<1x4xf32, #tpu.memory_space<vmem>>, %arg7: memref<1x1x8x24x4xf32, #tpu.memory_space<vmem>>, %arg8: memref<12x24x4xbf16, #tpu.memory_space<vmem>>) attributes {dimension_semantics = [#tpu.dimension_semantics<parallel>, #tpu.dimension_semantics<parallel>], iteration_bounds = array<i64: 2, 2>, scalar_prefetch = 0 : i64, scratch_operands = 1 : i64, tpu.core_type = #tpu.core_type<tc>, window_params = [{transform_indices = @transform_0, window_bounds = array<i64: 1, 1, 14, 24, 4>}, {pipeline_mode = #tpu.pipeline_mode<synchronous>, transform_indices = @transform_1, window_bounds = array<i64: 3, 3, 4, 4>}, {pipeline_mode = #tpu.pipeline_mode<synchronous>, transform_indices = @transform_2, window_bounds = array<i64: 1, 4>}, {pipeline_mode = #tpu.pipeline_mode<synchronous>, transform_indices = @transform_3, window_bounds = array<i64: 3, 3, 4, 4>}, {pipeline_mode = #tpu.pipeline_mode<synchronous>, transform_indices = @transform_4, window_bounds = array<i64: 1, 4>}, {transform_indices = @transform_5, window_bounds = array<i64: 1, 1, 8, 24, 4>}]} {
    %c0 = arith.constant 0 : index
    %c0_0 = arith.constant 0 : index
    %c0_1 = arith.constant 0 : index
    %c0_2 = arith.constant 0 : index
    %c0_3 = arith.constant 0 : index
    %0 = vector.load %arg2[%c0, %c0_0, %c0_1, %c0_2, %c0_3] : memref<1x1x14x24x4xbf16, #tpu.memory_space<vmem>>, vector<1x1x14x24x4xbf16>
    %1 = vector.shape_cast %0 : vector<1x1x14x24x4xbf16> to vector<14x24x4xbf16>
    %2 = vector.shape_cast %1 : vector<14x24x4xbf16> to vector<336x4xbf16>
    %c0_4 = arith.constant 0 : index
    %c0_5 = arith.constant 0 : index
    %3 = vector.load %arg4[%c0_4, %c0_5] : memref<1x4xf32, #tpu.memory_space<vmem>>, vector<1x4xf32>
    %4 = vector.shape_cast %3 : vector<1x4xf32> to vector<1x4xf32>
    %5 = vector.broadcast %4 : vector<1x4xf32> to vector<240x4xf32>
    %6 = vector.extract_strided_slice %2 {offsets = [23, 0], sizes = [240, 4], strides = [1, 1]} : vector<336x4xbf16> to vector<240x4xbf16>
    %c0_6 = arith.constant 0 : index
    %c0_7 = arith.constant 0 : index
    %c0_8 = arith.constant 0 : index
    %c0_9 = arith.constant 0 : index
    %7 = vector.load %arg3[%c0_6, %c0_7, %c0_8, %c0_9] : memref<3x3x4x4xbf16, #tpu.memory_space<vmem>>, vector<1x1x4x4xbf16>
    %8 = vector.shape_cast %7 : vector<1x1x4x4xbf16> to vector<4x4xbf16>
    %cst = arith.constant dense<0.000000e+00> : vector<240x4xf32>
    %9 = tpu.matmul %6, %8, %cst {dimension_numbers = #tpu.dot_dimension_numbers<[1], [0], [0], [1], [0, 0, 1, 1], [], []>} : vector<240x4xbf16>, vector<4x4xbf16>, vector<240x4xf32> -> vector<240x4xf32>
    %10 = arith.addf %5, %9 : vector<240x4xf32>
    %11 = vector.extract_strided_slice %2 {offsets = [24, 0], sizes = [240, 4], strides = [1, 1]} : vector<336x4xbf16> to vector<240x4xbf16>
    %c0_10 = arith.constant 0 : index
    %c1 = arith.constant 1 : index
    %c0_11 = arith.constant 0 : index
    %c0_12 = arith.constant 0 : index
    %12 = vector.load %arg3[%c0_10, %c1, %c0_11, %c0_12] : memref<3x3x4x4xbf16, #tpu.memory_space<vmem>>, vector<1x1x4x4xbf16>
    %13 = vector.shape_cast %12 : vector<1x1x4x4xbf16> to vector<4x4xbf16>
    %cst_13 = arith.constant dense<0.000000e+00> : vector<240x4xf32>
    %14 = tpu.matmul %11, %13, %cst_13 {dimension_numbers = #tpu.dot_dimension_numbers<[1], [0], [0], [1], [0, 0, 1, 1], [], []>} : vector<240x4xbf16>, vector<4x4xbf16>, vector<240x4xf32> -> vector<240x4xf32>
    %15 = arith.addf %10, %14 : vector<240x4xf32>
    %16 = vector.extract_strided_slice %2 {offsets = [25, 0], sizes = [240, 4], strides = [1, 1]} : vector<336x4xbf16> to vector<240x4xbf16>
    %c0_14 = arith.constant 0 : index
    %c2 = arith.constant 2 : index
    %c0_15 = arith.constant 0 : index
    %c0_16 = arith.constant 0 : index
    %17 = vector.load %arg3[%c0_14, %c2, %c0_15, %c0_16] : memref<3x3x4x4xbf16, #tpu.memory_space<vmem>>, vector<1x1x4x4xbf16>
    %18 = vector.shape_cast %17 : vector<1x1x4x4xbf16> to vector<4x4xbf16>
    %cst_17 = arith.constant dense<0.000000e+00> : vector<240x4xf32>
    %19 = tpu.matmul %16, %18, %cst_17 {dimension_numbers = #tpu.dot_dimension_numbers<[1], [0], [0], [1], [0, 0, 1, 1], [], []>} : vector<240x4xbf16>, vector<4x4xbf16>, vector<240x4xf32> -> vector<240x4xf32>
    %20 = arith.addf %15, %19 : vector<240x4xf32>
    %21 = vector.extract_strided_slice %2 {offsets = [47, 0], sizes = [240, 4], strides = [1, 1]} : vector<336x4xbf16> to vector<240x4xbf16>
    %c1_18 = arith.constant 1 : index
    %c0_19 = arith.constant 0 : index
    %c0_20 = arith.constant 0 : index
    %c0_21 = arith.constant 0 : index
    %22 = vector.load %arg3[%c1_18, %c0_19, %c0_20, %c0_21] : memref<3x3x4x4xbf16, #tpu.memory_space<vmem>>, vector<1x1x4x4xbf16>
    %23 = vector.shape_cast %22 : vector<1x1x4x4xbf16> to vector<4x4xbf16>
    %cst_22 = arith.constant dense<0.000000e+00> : vector<240x4xf32>
    %24 = tpu.matmul %21, %23, %cst_22 {dimension_numbers = #tpu.dot_dimension_numbers<[1], [0], [0], [1], [0, 0, 1, 1], [], []>} : vector<240x4xbf16>, vector<4x4xbf16>, vector<240x4xf32> -> vector<240x4xf32>
    %25 = arith.addf %20, %24 : vector<240x4xf32>
    %26 = vector.extract_strided_slice %2 {offsets = [48, 0], sizes = [240, 4], strides = [1, 1]} : vector<336x4xbf16> to vector<240x4xbf16>
    %c1_23 = arith.constant 1 : index
    %c1_24 = arith.constant 1 : index
    %c0_25 = arith.constant 0 : index
    %c0_26 = arith.constant 0 : index
    %27 = vector.load %arg3[%c1_23, %c1_24, %c0_25, %c0_26] : memref<3x3x4x4xbf16, #tpu.memory_space<vmem>>, vector<1x1x4x4xbf16>
    %28 = vector.shape_cast %27 : vector<1x1x4x4xbf16> to vector<4x4xbf16>
    %cst_27 = arith.constant dense<0.000000e+00> : vector<240x4xf32>
    %29 = tpu.matmul %26, %28, %cst_27 {dimension_numbers = #tpu.dot_dimension_numbers<[1], [0], [0], [1], [0, 0, 1, 1], [], []>} : vector<240x4xbf16>, vector<4x4xbf16>, vector<240x4xf32> -> vector<240x4xf32>
    %30 = arith.addf %25, %29 : vector<240x4xf32>
    %31 = vector.extract_strided_slice %2 {offsets = [49, 0], sizes = [240, 4], strides = [1, 1]} : vector<336x4xbf16> to vector<240x4xbf16>
    %c1_28 = arith.constant 1 : index
    %c2_29 = arith.constant 2 : index
    %c0_30 = arith.constant 0 : index
    %c0_31 = arith.constant 0 : index
    %32 = vector.load %arg3[%c1_28, %c2_29, %c0_30, %c0_31] : memref<3x3x4x4xbf16, #tpu.memory_space<vmem>>, vector<1x1x4x4xbf16>
    %33 = vector.shape_cast %32 : vector<1x1x4x4xbf16> to vector<4x4xbf16>
    %cst_32 = arith.constant dense<0.000000e+00> : vector<240x4xf32>
    %34 = tpu.matmul %31, %33, %cst_32 {dimension_numbers = #tpu.dot_dimension_numbers<[1], [0], [0], [1], [0, 0, 1, 1], [], []>} : vector<240x4xbf16>, vector<4x4xbf16>, vector<240x4xf32> -> vector<240x4xf32>
    %35 = arith.addf %30, %34 : vector<240x4xf32>
    %36 = vector.extract_strided_slice %2 {offsets = [71, 0], sizes = [240, 4], strides = [1, 1]} : vector<336x4xbf16> to vector<240x4xbf16>
    %c2_33 = arith.constant 2 : index
    %c0_34 = arith.constant 0 : index
    %c0_35 = arith.constant 0 : index
    %c0_36 = arith.constant 0 : index
    %37 = vector.load %arg3[%c2_33, %c0_34, %c0_35, %c0_36] : memref<3x3x4x4xbf16, #tpu.memory_space<vmem>>, vector<1x1x4x4xbf16>
    %38 = vector.shape_cast %37 : vector<1x1x4x4xbf16> to vector<4x4xbf16>
    %cst_37 = arith.constant dense<0.000000e+00> : vector<240x4xf32>
    %39 = tpu.matmul %36, %38, %cst_37 {dimension_numbers = #tpu.dot_dimension_numbers<[1], [0], [0], [1], [0, 0, 1, 1], [], []>} : vector<240x4xbf16>, vector<4x4xbf16>, vector<240x4xf32> -> vector<240x4xf32>
    %40 = arith.addf %35, %39 : vector<240x4xf32>
    %41 = vector.extract_strided_slice %2 {offsets = [72, 0], sizes = [240, 4], strides = [1, 1]} : vector<336x4xbf16> to vector<240x4xbf16>
    %c2_38 = arith.constant 2 : index
    %c1_39 = arith.constant 1 : index
    %c0_40 = arith.constant 0 : index
    %c0_41 = arith.constant 0 : index
    %42 = vector.load %arg3[%c2_38, %c1_39, %c0_40, %c0_41] : memref<3x3x4x4xbf16, #tpu.memory_space<vmem>>, vector<1x1x4x4xbf16>
    %43 = vector.shape_cast %42 : vector<1x1x4x4xbf16> to vector<4x4xbf16>
    %cst_42 = arith.constant dense<0.000000e+00> : vector<240x4xf32>
    %44 = tpu.matmul %41, %43, %cst_42 {dimension_numbers = #tpu.dot_dimension_numbers<[1], [0], [0], [1], [0, 0, 1, 1], [], []>} : vector<240x4xbf16>, vector<4x4xbf16>, vector<240x4xf32> -> vector<240x4xf32>
    %45 = arith.addf %40, %44 : vector<240x4xf32>
    %46 = vector.extract_strided_slice %2 {offsets = [73, 0], sizes = [240, 4], strides = [1, 1]} : vector<336x4xbf16> to vector<240x4xbf16>
    %c2_43 = arith.constant 2 : index
    %c2_44 = arith.constant 2 : index
    %c0_45 = arith.constant 0 : index
    %c0_46 = arith.constant 0 : index
    %47 = vector.load %arg3[%c2_43, %c2_44, %c0_45, %c0_46] : memref<3x3x4x4xbf16, #tpu.memory_space<vmem>>, vector<1x1x4x4xbf16>
    %48 = vector.shape_cast %47 : vector<1x1x4x4xbf16> to vector<4x4xbf16>
    %cst_47 = arith.constant dense<0.000000e+00> : vector<240x4xf32>
    %49 = tpu.matmul %46, %48, %cst_47 {dimension_numbers = #tpu.dot_dimension_numbers<[1], [0], [0], [1], [0, 0, 1, 1], [], []>} : vector<240x4xbf16>, vector<4x4xbf16>, vector<240x4xf32> -> vector<240x4xf32>
    %50 = arith.addf %45, %49 : vector<240x4xf32>
    %cst_48 = arith.constant 0.000000e+00 : f32
    %51 = vector.broadcast %cst_48 : f32 to vector<240x4xf32>
    %52 = arith.maximumf %50, %51 : vector<240x4xf32>
    %53 = arith.truncf %52 : vector<240x4xf32> to vector<240x4xbf16>
    %54 = vector.shape_cast %53 : vector<240x4xbf16> to vector<10x24x4xbf16>
    %c1_49 = arith.constant 1 : index
    %c0_50 = arith.constant 0 : index
    %c0_51 = arith.constant 0 : index
    %55 = vector.load %arg8[%c1_49, %c0_50, %c0_51] : memref<12x24x4xbf16, #tpu.memory_space<vmem>>, vector<10x24x4xbf16>
    tpu.vector_store %arg8[%c1_49, %c0_50, %c0_51], %54 {strides = array<i32>} : memref<12x24x4xbf16, #tpu.memory_space<vmem>>, vector<10x24x4xbf16>,
    %c0_i32 = arith.constant 0 : i32
    %56 = arith.cmpi eq, %arg1, %c0_i32 : i32
    %57 = arith.extui %56 : i1 to i32
    %c0_i32_52 = arith.constant 0 : i32
    %58 = arith.cmpi ne, %57, %c0_i32_52 : i32
    scf.if %58 {
      %c3 = arith.constant 3 : index
      %c0_119 = arith.constant 0 : index
      %c0_120 = arith.constant 0 : index
      %123 = vector.load %arg8[%c3, %c0_119, %c0_120] : memref<12x24x4xbf16, #tpu.memory_space<vmem>>, vector<1x24x4xbf16>
      %124 = vector.shape_cast %123 : vector<1x24x4xbf16> to vector<24x4xbf16>
      %c1_121 = arith.constant 1 : index
      %c0_122 = arith.constant 0 : index
      %c0_123 = arith.constant 0 : index
      %125 = vector.load %arg8[%c1_121, %c0_122, %c0_123] : memref<12x24x4xbf16, #tpu.memory_space<vmem>>, vector<1x24x4xbf16>
      %126 = vector.shape_cast %125 : vector<1x24x4xbf16> to vector<24x4xbf16>
      %127 = vector.shape_cast %124 : vector<24x4xbf16> to vector<1x24x4xbf16>
      tpu.vector_store %arg8[%c1_121, %c0_122, %c0_123], %127 {strides = array<i32>} : memref<12x24x4xbf16, #tpu.memory_space<vmem>>, vector<1x24x4xbf16>,
    } else {
    }
    %c1_i32 = arith.constant 1 : i32
    %59 = arith.cmpi eq, %arg1, %c1_i32 : i32
    %60 = arith.extui %59 : i1 to i32
    %c0_i32_53 = arith.constant 0 : i32
    %61 = arith.cmpi ne, %60, %c0_i32_53 : i32
    scf.if %61 {
      %c8 = arith.constant 8 : index
      %c0_119 = arith.constant 0 : index
      %c0_120 = arith.constant 0 : index
      %123 = vector.load %arg8[%c8, %c0_119, %c0_120] : memref<12x24x4xbf16, #tpu.memory_space<vmem>>, vector<1x24x4xbf16>
      %124 = vector.shape_cast %123 : vector<1x24x4xbf16> to vector<24x4xbf16>
      %c10 = arith.constant 10 : index
      %c0_121 = arith.constant 0 : index
      %c0_122 = arith.constant 0 : index
      %125 = vector.load %arg8[%c10, %c0_121, %c0_122] : memref<12x24x4xbf16, #tpu.memory_space<vmem>>, vector<1x24x4xbf16>
      %126 = vector.shape_cast %125 : vector<1x24x4xbf16> to vector<24x4xbf16>
      %127 = vector.shape_cast %124 : vector<24x4xbf16> to vector<1x24x4xbf16>
      tpu.vector_store %arg8[%c10, %c0_121, %c0_122], %127 {strides = array<i32>} : memref<12x24x4xbf16, #tpu.memory_space<vmem>>, vector<1x24x4xbf16>,
    } else {
    }
    %c0_54 = arith.constant 0 : index
    %c2_55 = arith.constant 2 : index
    %c0_56 = arith.constant 0 : index
    %62 = vector.load %arg8[%c0_54, %c2_55, %c0_56] : memref<12x24x4xbf16, #tpu.memory_space<vmem>>, vector<12x1x4xbf16>
    %c0_57 = arith.constant 0 : index
    %c0_58 = arith.constant 0 : index
    %c0_59 = arith.constant 0 : index
    %63 = vector.load %arg8[%c0_57, %c0_58, %c0_59] : memref<12x24x4xbf16, #tpu.memory_space<vmem>>, vector<12x1x4xbf16>
    tpu.vector_store %arg8[%c0_57, %c0_58, %c0_59], %62 {strides = array<i32>} : memref<12x24x4xbf16, #tpu.memory_space<vmem>>, vector<12x1x4xbf16>,
    %c0_60 = arith.constant 0 : index
    %c15 = arith.constant 15 : index
    %c0_61 = arith.constant 0 : index
    %64 = vector.load %arg8[%c0_60, %c15, %c0_61] : memref<12x24x4xbf16, #tpu.memory_space<vmem>>, vector<12x1x4xbf16>
    %c0_62 = arith.constant 0 : index
    %c17 = arith.constant 17 : index
    %c0_63 = arith.constant 0 : index
    %65 = vector.load %arg8[%c0_62, %c17, %c0_63] : memref<12x24x4xbf16, #tpu.memory_space<vmem>>, vector<12x1x4xbf16>
    tpu.vector_store %arg8[%c0_62, %c17, %c0_63], %64 {strides = array<i32>} : memref<12x24x4xbf16, #tpu.memory_space<vmem>>, vector<12x1x4xbf16>,
    %c0_64 = arith.constant 0 : index
    %c0_65 = arith.constant 0 : index
    %c0_66 = arith.constant 0 : index
    %66 = vector.load %arg8[%c0_64, %c0_65, %c0_66] : memref<12x24x4xbf16, #tpu.memory_space<vmem>>, vector<12x24x4xbf16>
    %67 = vector.shape_cast %66 : vector<12x24x4xbf16> to vector<288x4xbf16>
    %c0_67 = arith.constant 0 : index
    %c0_68 = arith.constant 0 : index
    %68 = vector.load %arg6[%c0_67, %c0_68] : memref<1x4xf32, #tpu.memory_space<vmem>>, vector<1x4xf32>
    %69 = vector.shape_cast %68 : vector<1x4xf32> to vector<1x4xf32>
    %70 = vector.broadcast %69 : vector<1x4xf32> to vector<192x4xf32>
    %71 = vector.extract_strided_slice %67 {offsets = [23, 0], sizes = [192, 4], strides = [1, 1]} : vector<288x4xbf16> to vector<192x4xbf16>
    %c0_69 = arith.constant 0 : index
    %c0_70 = arith.constant 0 : index
    %c0_71 = arith.constant 0 : index
    %c0_72 = arith.constant 0 : index
    %72 = vector.load %arg5[%c0_69, %c0_70, %c0_71, %c0_72] : memref<3x3x4x4xbf16, #tpu.memory_space<vmem>>, vector<1x1x4x4xbf16>
    %73 = vector.shape_cast %72 : vector<1x1x4x4xbf16> to vector<4x4xbf16>
    %cst_73 = arith.constant dense<0.000000e+00> : vector<192x4xf32>
    %74 = tpu.matmul %71, %73, %cst_73 {dimension_numbers = #tpu.dot_dimension_numbers<[1], [0], [0], [1], [0, 0, 1, 1], [], []>} : vector<192x4xbf16>, vector<4x4xbf16>, vector<192x4xf32> -> vector<192x4xf32>
    %75 = arith.addf %70, %74 : vector<192x4xf32>
    %76 = vector.extract_strided_slice %67 {offsets = [24, 0], sizes = [192, 4], strides = [1, 1]} : vector<288x4xbf16> to vector<192x4xbf16>
    %c0_74 = arith.constant 0 : index
    %c1_75 = arith.constant 1 : index
    %c0_76 = arith.constant 0 : index
    %c0_77 = arith.constant 0 : index
    %77 = vector.load %arg5[%c0_74, %c1_75, %c0_76, %c0_77] : memref<3x3x4x4xbf16, #tpu.memory_space<vmem>>, vector<1x1x4x4xbf16>
    %78 = vector.shape_cast %77 : vector<1x1x4x4xbf16> to vector<4x4xbf16>
    %cst_78 = arith.constant dense<0.000000e+00> : vector<192x4xf32>
    %79 = tpu.matmul %76, %78, %cst_78 {dimension_numbers = #tpu.dot_dimension_numbers<[1], [0], [0], [1], [0, 0, 1, 1], [], []>} : vector<192x4xbf16>, vector<4x4xbf16>, vector<192x4xf32> -> vector<192x4xf32>
    %80 = arith.addf %75, %79 : vector<192x4xf32>
    %81 = vector.extract_strided_slice %67 {offsets = [25, 0], sizes = [192, 4], strides = [1, 1]} : vector<288x4xbf16> to vector<192x4xbf16>
    %c0_79 = arith.constant 0 : index
    %c2_80 = arith.constant 2 : index
    %c0_81 = arith.constant 0 : index
    %c0_82 = arith.constant 0 : index
    %82 = vector.load %arg5[%c0_79, %c2_80, %c0_81, %c0_82] : memref<3x3x4x4xbf16, #tpu.memory_space<vmem>>, vector<1x1x4x4xbf16>
    %83 = vector.shape_cast %82 : vector<1x1x4x4xbf16> to vector<4x4xbf16>
    %cst_83 = arith.constant dense<0.000000e+00> : vector<192x4xf32>
    %84 = tpu.matmul %81, %83, %cst_83 {dimension_numbers = #tpu.dot_dimension_numbers<[1], [0], [0], [1], [0, 0, 1, 1], [], []>} : vector<192x4xbf16>, vector<4x4xbf16>, vector<192x4xf32> -> vector<192x4xf32>
    %85 = arith.addf %80, %84 : vector<192x4xf32>
    %86 = vector.extract_strided_slice %67 {offsets = [47, 0], sizes = [192, 4], strides = [1, 1]} : vector<288x4xbf16> to vector<192x4xbf16>
    %c1_84 = arith.constant 1 : index
    %c0_85 = arith.constant 0 : index
    %c0_86 = arith.constant 0 : index
    %c0_87 = arith.constant 0 : index
    %87 = vector.load %arg5[%c1_84, %c0_85, %c0_86, %c0_87] : memref<3x3x4x4xbf16, #tpu.memory_space<vmem>>, vector<1x1x4x4xbf16>
    %88 = vector.shape_cast %87 : vector<1x1x4x4xbf16> to vector<4x4xbf16>
    %cst_88 = arith.constant dense<0.000000e+00> : vector<192x4xf32>
    %89 = tpu.matmul %86, %88, %cst_88 {dimension_numbers = #tpu.dot_dimension_numbers<[1], [0], [0], [1], [0, 0, 1, 1], [], []>} : vector<192x4xbf16>, vector<4x4xbf16>, vector<192x4xf32> -> vector<192x4xf32>
    %90 = arith.addf %85, %89 : vector<192x4xf32>
    %91 = vector.extract_strided_slice %67 {offsets = [48, 0], sizes = [192, 4], strides = [1, 1]} : vector<288x4xbf16> to vector<192x4xbf16>
    %c1_89 = arith.constant 1 : index
    %c1_90 = arith.constant 1 : index
    %c0_91 = arith.constant 0 : index
    %c0_92 = arith.constant 0 : index
    %92 = vector.load %arg5[%c1_89, %c1_90, %c0_91, %c0_92] : memref<3x3x4x4xbf16, #tpu.memory_space<vmem>>, vector<1x1x4x4xbf16>
    %93 = vector.shape_cast %92 : vector<1x1x4x4xbf16> to vector<4x4xbf16>
    %cst_93 = arith.constant dense<0.000000e+00> : vector<192x4xf32>
    %94 = tpu.matmul %91, %93, %cst_93 {dimension_numbers = #tpu.dot_dimension_numbers<[1], [0], [0], [1], [0, 0, 1, 1], [], []>} : vector<192x4xbf16>, vector<4x4xbf16>, vector<192x4xf32> -> vector<192x4xf32>
    %95 = arith.addf %90, %94 : vector<192x4xf32>
    %96 = vector.extract_strided_slice %67 {offsets = [49, 0], sizes = [192, 4], strides = [1, 1]} : vector<288x4xbf16> to vector<192x4xbf16>
    %c1_94 = arith.constant 1 : index
    %c2_95 = arith.constant 2 : index
    %c0_96 = arith.constant 0 : index
    %c0_97 = arith.constant 0 : index
    %97 = vector.load %arg5[%c1_94, %c2_95, %c0_96, %c0_97] : memref<3x3x4x4xbf16, #tpu.memory_space<vmem>>, vector<1x1x4x4xbf16>
    %98 = vector.shape_cast %97 : vector<1x1x4x4xbf16> to vector<4x4xbf16>
    %cst_98 = arith.constant dense<0.000000e+00> : vector<192x4xf32>
    %99 = tpu.matmul %96, %98, %cst_98 {dimension_numbers = #tpu.dot_dimension_numbers<[1], [0], [0], [1], [0, 0, 1, 1], [], []>} : vector<192x4xbf16>, vector<4x4xbf16>, vector<192x4xf32> -> vector<192x4xf32>
    %100 = arith.addf %95, %99 : vector<192x4xf32>
    %101 = vector.extract_strided_slice %67 {offsets = [71, 0], sizes = [192, 4], strides = [1, 1]} : vector<288x4xbf16> to vector<192x4xbf16>
    %c2_99 = arith.constant 2 : index
    %c0_100 = arith.constant 0 : index
    %c0_101 = arith.constant 0 : index
    %c0_102 = arith.constant 0 : index
    %102 = vector.load %arg5[%c2_99, %c0_100, %c0_101, %c0_102] : memref<3x3x4x4xbf16, #tpu.memory_space<vmem>>, vector<1x1x4x4xbf16>
    %103 = vector.shape_cast %102 : vector<1x1x4x4xbf16> to vector<4x4xbf16>
    %cst_103 = arith.constant dense<0.000000e+00> : vector<192x4xf32>
    %104 = tpu.matmul %101, %103, %cst_103 {dimension_numbers = #tpu.dot_dimension_numbers<[1], [0], [0], [1], [0, 0, 1, 1], [], []>} : vector<192x4xbf16>, vector<4x4xbf16>, vector<192x4xf32> -> vector<192x4xf32>
    %105 = arith.addf %100, %104 : vector<192x4xf32>
    %106 = vector.extract_strided_slice %67 {offsets = [72, 0], sizes = [192, 4], strides = [1, 1]} : vector<288x4xbf16> to vector<192x4xbf16>
    %c2_104 = arith.constant 2 : index
    %c1_105 = arith.constant 1 : index
    %c0_106 = arith.constant 0 : index
    %c0_107 = arith.constant 0 : index
    %107 = vector.load %arg5[%c2_104, %c1_105, %c0_106, %c0_107] : memref<3x3x4x4xbf16, #tpu.memory_space<vmem>>, vector<1x1x4x4xbf16>
    %108 = vector.shape_cast %107 : vector<1x1x4x4xbf16> to vector<4x4xbf16>
    %cst_108 = arith.constant dense<0.000000e+00> : vector<192x4xf32>
    %109 = tpu.matmul %106, %108, %cst_108 {dimension_numbers = #tpu.dot_dimension_numbers<[1], [0], [0], [1], [0, 0, 1, 1], [], []>} : vector<192x4xbf16>, vector<4x4xbf16>, vector<192x4xf32> -> vector<192x4xf32>
    %110 = arith.addf %105, %109 : vector<192x4xf32>
    %111 = vector.extract_strided_slice %67 {offsets = [73, 0], sizes = [192, 4], strides = [1, 1]} : vector<288x4xbf16> to vector<192x4xbf16>
    %c2_109 = arith.constant 2 : index
    %c2_110 = arith.constant 2 : index
    %c0_111 = arith.constant 0 : index
    %c0_112 = arith.constant 0 : index
    %112 = vector.load %arg5[%c2_109, %c2_110, %c0_111, %c0_112] : memref<3x3x4x4xbf16, #tpu.memory_space<vmem>>, vector<1x1x4x4xbf16>
    %113 = vector.shape_cast %112 : vector<1x1x4x4xbf16> to vector<4x4xbf16>
    %cst_113 = arith.constant dense<0.000000e+00> : vector<192x4xf32>
    %114 = tpu.matmul %111, %113, %cst_113 {dimension_numbers = #tpu.dot_dimension_numbers<[1], [0], [0], [1], [0, 0, 1, 1], [], []>} : vector<192x4xbf16>, vector<4x4xbf16>, vector<192x4xf32> -> vector<192x4xf32>
    %115 = arith.addf %110, %114 : vector<192x4xf32>
    %116 = vector.extract_strided_slice %1 {offsets = [3, 0, 0], sizes = [8, 24, 4], strides = [1, 1, 1]} : vector<14x24x4xbf16> to vector<8x24x4xbf16>
    %117 = arith.extf %116 : vector<8x24x4xbf16> to vector<8x24x4xf32>
    %118 = vector.shape_cast %115 : vector<192x4xf32> to vector<8x24x4xf32>
    %119 = arith.addf %118, %117 : vector<8x24x4xf32>
    %c0_114 = arith.constant 0 : index
    %c0_115 = arith.constant 0 : index
    %c0_116 = arith.constant 0 : index
    %c0_117 = arith.constant 0 : index
    %c0_118 = arith.constant 0 : index
    %120 = vector.load %arg7[%c0_114, %c0_115, %c0_116, %c0_117, %c0_118] : memref<1x1x8x24x4xf32, #tpu.memory_space<vmem>>, vector<1x1x8x24x4xf32>
    %121 = vector.shape_cast %120 : vector<1x1x8x24x4xf32> to vector<8x24x4xf32>
    %122 = vector.shape_cast %119 : vector<8x24x4xf32> to vector<1x1x8x24x4xf32>
    tpu.vector_store %arg7[%c0_114, %c0_115, %c0_116, %c0_117, %c0_118], %122 {strides = array<i32>} : memref<1x1x8x24x4xf32, #tpu.memory_space<vmem>>, vector<1x1x8x24x4xf32>,
    return
  }
  func.func @transform_0(%arg0: i32, %arg1: i32) -> (i32, i32, i32, i32, i32) {
    %c0_i32 = arith.constant 0 : i32
    %c0_i32_0 = arith.constant 0 : i32
    %c0_i32_1 = arith.constant 0 : i32
    %c0_i32_2 = arith.constant 0 : i32
    return %arg0, %arg1, %c0_i32, %c0_i32_0, %c0_i32_1 : i32, i32, i32, i32, i32
  }
  func.func @transform_1(%arg0: i32, %arg1: i32) -> (i32, i32, i32, i32) {
    %c0_i32 = arith.constant 0 : i32
    %c0_i32_0 = arith.constant 0 : i32
    %c0_i32_1 = arith.constant 0 : i32
    %c0_i32_2 = arith.constant 0 : i32
    %c0_i32_3 = arith.constant 0 : i32
    return %c0_i32, %c0_i32_0, %c0_i32_1, %c0_i32_2 : i32, i32, i32, i32
  }
  func.func @transform_2(%arg0: i32, %arg1: i32) -> (i32, i32) {
    %c0_i32 = arith.constant 0 : i32
    %c0_i32_0 = arith.constant 0 : i32
    %c0_i32_1 = arith.constant 0 : i32
    return %c0_i32, %c0_i32_0 : i32, i32
  }
  func.func @transform_3(%arg0: i32, %arg1: i32) -> (i32, i32, i32, i32) {
    %c0_i32 = arith.constant 0 : i32
    %c0_i32_0 = arith.constant 0 : i32
    %c0_i32_1 = arith.constant 0 : i32
    %c0_i32_2 = arith.constant 0 : i32
    %c0_i32_3 = arith.constant 0 : i32
    return %c0_i32, %c0_i32_0, %c0_i32_1, %c0_i32_2 : i32, i32, i32, i32
  }
  func.func @transform_4(%arg0: i32, %arg1: i32) -> (i32, i32) {
    %c0_i32 = arith.constant 0 : i32
    %c0_i32_0 = arith.constant 0 : i32
    %c0_i32_1 = arith.constant 0 : i32
    return %c0_i32, %c0_i32_0 : i32, i32
  }
  func.func @transform_5(%arg0: i32, %arg1: i32) -> (i32, i32, i32, i32, i32) {
    %c0_i32 = arith.constant 0 : i32
    %c0_i32_0 = arith.constant 0 : i32
    %c0_i32_1 = arith.constant 0 : i32
    %c0_i32_2 = arith.constant 0 : i32
    return %arg0, %arg1, %c0_i32, %c0_i32_0, %c0_i32_1 : i32, i32, i32, i32, i32
  }
}

</mosaic_0001>

<bundles_post_ra>
// kernel: tpu_custom_call.1
= control target key start
LH: loop header
LB: loop body
LE: loop exit
PB: predicated region body
PF: predicated region fallthrough
CT: control target
= control target key end

     0   :  { %s7943_s18 = smov 0   ;;  %s7945_s19 = smov 0   ;;  %s10199_s0 = inlined_call_operand.vmem [shape: bf16[2,2,14,24,4], index: 0, kind: input, shape index: {}]   ;;  %s10200_s1 = inlined_call_operand.vmem [shape: bf16[3,3,4,4], index: 1, kind: input, shape index: {}]   ;;  %s10201_s2 = inlined_call_operand.vmem [shape: f32[1,4], index: 2, kind: input, shape index: {}]   ;;  %s10202_s3 = inlined_call_operand.vmem [shape: bf16[3,3,4,4], index: 3, kind: input, shape index: {}]   ;;  %s10203_s4 = inlined_call_operand.vmem [shape: f32[1,4], index: 4, kind: input, shape index: {}]   ;;  %s10204_s5 = inlined_call_operand.vmem [shape: f32[2,2,8,24,4], index: 5, kind: output, shape index: {}]  }
   0x1   :  { %s7947_s20 = smov 0   ;;  %s7949_s21 = smov 0  }
   0x2   :  { %s7951_s22 = smov 0  }
   0x3 LB: > { %s24_s23 = sadd.s32 1, %s7901_s20  ;;  %s27_s24 = sadd.s32 1, %s7905_s21  ;;  %s7909_s22 = sphi %s7951_s22, %s15_s22   ;;  %s7905_s21 = sphi %s7949_s21, %s10435_s21   ;;  %s7901_s20 = sphi %s7947_s20, %s10434_s20   ;;  %s7897_s19 = sphi %s7945_s19, %s10433_s19   ;;  %s7893_s18 = sphi %s7943_s18, %s10432_s18  }
   0x4   : > { %p25_p0 = scmp.ge.s32.totalorder %s24_s23, 2  ;;  %p5571_p1 = scmp.ge.s32.totalorder %s7909_s22, 1 }
   0x5   : > { %p207_p2 = scmp.lt.s32.totalorder %s7909_s22, 5 }
   0x6   : > { %s10437_s23 = smov (%p25_p0, %s24_s23), 0  ;;  %s10439_s24 = smov (!%p25_p0, %s27_s24), %s7905_s21 }
   0x7   : > { %p208_p3 = pnand %p5571_p1, %p207_p2  ;;  %p29_p4 = scmp.ge.s32.totalorder %s10439_s24, 2 }
   0x9   : > { %s10441_s24 = smov (%p29_p4, %s10439_s24), 0  ;;  %211 = sbr.rel (%p208_p3) target bundleno = 1691 (0x69b), region = 40 }
  0x10   : > { %vm576_vm0 = vcmask 1041408   ;;  %v5637_v0 = vld [vmem:[%s10200_s1 + $0x4] sm:$0x3]  ;;  %p243_p5 = scmp.lt.s32.totalorder %s7897_s19, 1  ;;  %v10226_v1 = vmov 0.0   ;;  %vm7912_vm1 = vmmov 0  }
  0x11   : > { %6386 = vmatprep.subr.bf16.mxu0 %v10226_v1  ;;  %v7980_v2 = vsel %vm576_vm0, %v5637_v0, 0  ;;  %6388 = vmatprep.mubr.msk.bf16.mxu0 %vm7912_vm1, %v10226_v1  ;;  %p245_p6 = scmp.lt.s32.totalorder %s7893_s18, 1  ;;  %v5654_v16 = vld [vmem:[%s10200_s1 + $0x6] sm:$0x3]  ;;  %vm1016_vm2 = vsmask.f32 7424 }
  0x12   : > { %6387 = vmatpush3.bf16.msra.mxu0 %v7980_v2  ;;  %s10443_s19 = smov (!%p243_p5, %s7897_s19), 1  ;;  %6262 = vmatprep.subr.bf16.mxu1 %v10226_v1  ;;  %vm530_vm3 = vcmask 31744   ;;  %v1484_v24 = vsel %vm576_vm0, %v5654_v16, 0  ;;  %vm386_vm4 = vsmask.f32 4352  ;;  %vm2990_vm5 = vcmask 27648  }
  0x13   : > { %6448 = vmatprep.subr.bf16.mxu0 %v10226_v1  ;;  %s246_s27 = scalar_select %p245_p6, %s7893_s18, 1  ;;  %6264 = vmatprep.mubr.msk.bf16.mxu1 %vm7912_vm1, %v10226_v1  ;;  %v5672_v60 = vld [vmem:[%s10200_s1 + $0x8] sm:$0x3] }
  0x14   : > { %s7762_s28 = smul.u32 84, %s10443_s19  ;;  %v1706_v0 = vsel %vm576_vm0, %v5672_v60, 0  ;;  %p5790_p7 = scmp.ne.s32.totalorder %s7893_s18, 0 }
  0x15   : > { %s7761_s29 = smul.u32 42, %s246_s27 }
  0x16   : > { %s7763_s30 = smul.u32 24, %s246_s27 }
  0x17   : > { %s249_s6 = sadd.s32 %s7762_s28, %s7761_s29  ;;  %s7764_s7 = smul.u32 48, %s10443_s19 }
  0x18   : > { %s5572_s8 = sshll.u32 %s249_s6, 2 }
  0x19   : > { %s7994_s11 = scalar_lea.vmem %s10199_s0, %s5572_s8  ;;  %s258_s12 = sadd.s32 %s7764_s7, %s7763_s30 }
  0x1a   : > { %s5573_s13 = sshll.u32 %s258_s12, 3  ;;  %v7997_v3 = vld [vmem:[%s7994_s11 + $0xc] sm:$0xf]  ;;  %v8000_v4 = vld [vmem:[%s7994_s11 + $0x10] sm:$0xf] }
  0x1b   : > { %s8005_s16 = scalar_lea.vmem %s10204_s5, %s5573_s13  ;;  %v8008_v5 = vld [vmem:[%s7994_s11 + $0x14] sm:$0xf]  ;;  %v266_v6 = vld [vmem:[%s7994_s11 + $0x18] sm:$0xf]  ;;  %v8013_v7 = vcombine.low %v7997_v3, %v8000_v4  ;;  %v267_v8 = vld [vmem:[%s7994_s11 + $0x1c] sm:$0xf] }
  0x1c   : > { %v8017_v9 = vcombine.low %v8008_v5, %v266_v6  ;;  %v8020_v10 = vld [vmem:[%s7994_s11 + $0x20] sm:$0xf]  ;;  %v8022_v11 = vcombine.low %v266_v6, %v267_v8  ;;  %v8034_v18 = vld [vmem:[%s7994_s11 + $0x34] sm:$0xf]  ;;  %v8037_v19 = vld [vmem:[%s7994_s11 + $0x38] sm:$0xf] }
  0x1d   : > { %v1017_v12 = vshrl.u32 %v8013_v7, 16  ;;  %v1019_v13 = vshll.u32 %v8013_v7, 16  ;;  %v8027_v14 = vcombine.low %v267_v8, %v8020_v10  ;;  %10303 = vst [vmem:[#allocation3_spill] sm:$0xff] %v8034_v18  ;;  %10304 = vst [vmem:[#allocation4_spill] sm:$0xff] %v8037_v19  ;;  %v8043_v25 = vld [vmem:[%s7994_s11 + $0x24] sm:$0xf]  ;;  %v8050_v27 = vcombine.low %v8034_v18, %v8037_v19 }
  0x1e   : > { %v1023_v15 = vshll.u32 %v8017_v9, 16  ;;  %v1027_v22 = vshrl.u32 %v8017_v9, 16  ;;  %10305 = vst [vmem:[#allocation5_spill] sm:$0xff] %v8043_v25  ;;  %v8046_v26 = vld [vmem:[%s7994_s11 + $0x28] sm:$0xf]  ;;  %v8106_v59 = vcombine.low %v8020_v10, %v8043_v25 }
  0x1f   : > { %v1021_v17 = vrot.slane %v1019_v13, 1  ;;  %v1030_v23 = vshll.u32 %v8027_v14, 16  ;;  %10306 = vst [vmem:[#allocation6_spill] sm:$0xff] %v8046_v26  ;;  %v1051_v29 = vshll.u32 %v8050_v27, 16  ;;  %v8059_v32 = vcombine.low %v8043_v25, %v8046_v26  ;;  %v8071_v39 = vld [vmem:[%s7994_s11 + $0x2c] sm:$0xf] }
  0x20   : > { %v1025_v20 = vrot.slane %v1023_v15, 1  ;;  %v1055_v34 = vshrl.u32 %v8050_v27, 16  ;;  %v1034_v37 = vshrl.u32 %v8027_v14, 16  ;;  %10307 = vst [vmem:[#allocation7_spill] sm:$0xff] %v8071_v39  ;;  %v8074_v40 = vld [vmem:[%s7994_s11 + $0x30] sm:$0xf]  ;;  %v8118_v8 = vcombine.low %v8046_v26, %v8071_v39 }
  0x21   : > { %v1022_v21 = vor.u32 %v1021_v17, %v1017_v12  ;;  %v1032_v31 = vrot.slane %v1030_v23, 1  ;;  %v1053_v33 = vrot.slane %v1051_v29, 1  ;;  %v1037_v38 = vshll.u32 %v8059_v32, 16  ;;  %10308 = vst [vmem:[#allocation8_spill] sm:$0xff] %v8074_v40  ;;  %v8130_v17 = vld [vmem:[%s7994_s11 + $0x3c] sm:$0xf] }
  0x22   : > { %v1029_v30 = vor.u32 %v1027_v22, %v1025_v20  ;;  %v8081_v43 = vcombine.low %v8071_v39, %v8074_v40  ;;  %v1041_v45 = vshrl.u32 %v8059_v32, 16  ;;  %v1366_v52 = vrot.slane %v1023_v15, 4  ;;  %10311 = vst [vmem:[#allocation11_spill] sm:$0xff] %v8130_v17  ;;  %v8199_v60 = vld [vmem:[%s7994_s11 + $0x58] sm:$0xf] }
  0x23   : > { %v1026_v28 = vsel %vm1016_vm2, %v1022_v21, %v1025_v20  ;;  %v8065_v35 = vor.u32 %v1055_v34, %v1053_v33  ;;  %v1036_v41 = vor.u32 %v1034_v37, %v1032_v31  ;;  %v1039_v42 = vrot.slane %v1037_v38, 1  ;;  %v8133_v20 = vld [vmem:[%s7994_s11 + $0x40] sm:$0xf]  ;;  %10318 = vst [vmem:[#allocation18_spill] sm:$0xff] %v8199_v60 }
  0x24   : > { %6389 = vmatmul.mubr.msk.bf16.vlgmr.msra.gmra.mrb[0].mxu0 %vm530_vm3, %v1026_v28  ;;  %v1033_v36 = vsel %vm1016_vm2, %v1029_v30, %v1032_v31  ;;  %v1044_v46 = vshll.u32 %v8081_v43, 16  ;;  %v1048_v50 = vshrl.u32 %v8081_v43, 16  ;;  %v1365_v53 = vrot.slane %v1027_v22, 3  ;;  %10312 = vst [vmem:[#allocation12_spill] sm:$0xff] %v8133_v20 }
  0x25   : > { %6449 = vmatpush3.bf16.msra.mxu0 %v1484_v24  ;;  %6392 = vmatprep.mubr.msk.bf16.mxu0 %vm7912_vm1, %v10226_v1  ;;  %v1040_v44 = vsel %vm1016_vm2, %v1036_v41, %v1039_v42  ;;  %v1043_v47 = vor.u32 %v1041_v45, %v1039_v42  ;;  %v1369_v54 = vrot.slane %v1030_v23, 4  ;;  %v1368_v55 = vrot.slane %v1034_v37, 3 }
  0x26   : > { %6510 = vmatprep.subr.bf16.mxu0 %v10226_v1  ;;  %v1046_v48 = vrot.slane %v1044_v46, 1  ;;  %v1367_v57 = vor.u32 %v1366_v52, %v1365_v53  ;;  %v1372_v62 = vrot.slane %v1041_v45, 3  ;;  %v1373_v63 = vrot.slane %v1037_v38, 4 }
  0x27   : > { %v1370_v58 = vor.u32 %v1369_v54, %v1368_v55  ;;  %v1376_v12 = vrot.slane %v1048_v50, 3  ;;  %v1377_v13 = vrot.slane %v1044_v46, 4  ;;  %v8127_v16 = vcombine.low %v8074_v40, %v8034_v18 }
  0x28   : > { %v8090_v49 = vsel %vm1016_vm2, %v1043_v47, %v1046_v48  ;;  %v1050_v51 = vor.u32 %v1048_v50, %v1046_v48  ;;  %v1374_v6 = vor.u32 %v1373_v63, %v1372_v62  ;;  %v1380_v22 = vrot.slane %v1055_v34, 3  ;;  %v8155_v34 = vld [vmem:[%s7994_s11 + $0x48] sm:$0xf]  ;;  %v8176_v47 = vld [vmem:[%s7994_s11 + $0x4c] sm:$0xf] }
  0x29   : > { %10309 = vst [vmem:[#allocation9_spill] sm:$0xff] %v8090_v49  ;;  %v1371_v61 = vsel %vm386_vm4, %v1367_v57, %v1370_v58  ;;  %v1378_v15 = vor.u32 %v1377_v13, %v1376_v12  ;;  %v1381_v23 = vrot.slane %v1051_v29, 4  ;;  %v8140_v24 = vcombine.low %v8130_v17, %v8133_v20  ;;  %v8152_v29 = vld [vmem:[%s7994_s11 + $0x44] sm:$0xf]  ;;  %10314 = vst [vmem:[#allocation14_spill] sm:$0xff] %v8155_v34 }
  0x2a   : > { %v8098_v56 = vsel %vm1016_vm2, %v1050_v51, %v1053_v33  ;;  %v1375_v10 = vsel %vm386_vm4, %v1370_v58, %v1374_v6  ;;  %v8149_v33 = vcombine.low %v8037_v19, %v8130_v17  ;;  %10313 = vst [vmem:[#allocation13_spill] sm:$0xff] %v8152_v29  ;;  %v8164_v41 = vcombine.low %v8152_v29, %v8155_v34  ;;  %v8179_v48 = vld [vmem:[%s7994_s11 + $0x50] sm:$0xf]  ;;  %v8196_v58 = vld [vmem:[%s7994_s11 + $0x54] sm:$0xf] }
  0x2b   : > { %10310 = vst [vmem:[#allocation10_spill] sm:$0xff] %v8098_v56  ;;  %v1379_v21 = vsel %vm386_vm4, %v1374_v6, %v1378_v15  ;;  %v1382_v28 = vor.u32 %v1381_v23, %v1380_v22  ;;  %v10218_v30 = vshll.u32 %v8140_v24, 16  ;;  %v10215_v31 = vshrl.u32 %v8140_v24, 16  ;;  %10315 = vst [vmem:[#allocation15_spill] sm:$0xff] %v8176_v47  ;;  %v8216_v13 = vld [vmem:[%s7994_s11 + $0x5c] sm:$0xf] }
  0x2c   : > { %6393 = vmatmul.mubr.msk.bf16.gmra.mrb[4].mxu0 %vm530_vm3, %v1033_v36  ;;  %v10211_v45 = vshrl.u32 %v8164_v41, 16  ;;  %v8173_v46 = vcombine.low %v8133_v20, %v8152_v29  ;;  %10316 = vst [vmem:[#allocation16_spill] sm:$0xff] %v8179_v48  ;;  %v8188_v53 = vcombine.low %v8176_v47, %v8179_v48  ;;  %10317 = vst [vmem:[#allocation17_spill] sm:$0xff] %v8196_v58  ;;  %v8348_v29 = vld [vmem:[%s7994_s11 + $0x88] sm:$0xf]  ;;  %v10330_v19 = vmov 0.0  }
  0x2d   : > { %6396 = vmatprep.mubr.msk.bf16.mxu0 %vm7912_vm1, %v10226_v1  ;;  %v1383_v36 = vsel %vm386_vm4, %v1378_v15, %v1382_v28  ;;  %v1384_v37 = vrot.slane %v10215_v31, 3  ;;  %v1385_v38 = vrot.slane %v10218_v30, 4  ;;  %10319 = vst [vmem:[#allocation19_spill] sm:$0xff] %v8216_v13  ;;  %v8219_v15 = vld [vmem:[%s7994_s11 + $0x60] sm:$0xf] }
  0x2e   : > { %v1388_v51 = vrot.slane %v10211_v45, 3  ;;  %v10210_v55 = vshll.u32 %v8188_v53, 16  ;;  %v10209_v57 = vshrl.u32 %v8188_v53, 16  ;;  %10320 = vst [vmem:[#allocation20_spill] sm:$0xff] %v8219_v15  ;;  %v8288_v31 = vld [vmem:[%s7994_s11 + $0x78] sm:$0xf] }
  0x2f   : > { %v1386_v42 = vor.u32 %v1385_v38, %v1384_v37  ;;  %10326 = vst [vmem:[#allocation26_spill] sm:$0xff] %v8288_v31 }
  0x30   : > { %v1392_v62 = vrot.slane %v10209_v57, 3  ;;  %v1393_v63 = vrot.slane %v10210_v55, 4 }
  0x31   : > { %v1387_v50 = vsel %vm386_vm4, %v1382_v28, %v1386_v42  ;;  %v8228_v28 = vcombine.low %v8216_v13, %v8219_v15 }
  0x32   : > { %v1394_v6 = vor.u32 %v1393_v63, %v1392_v62 }
  0x33   : > { %v10206_v37 = vshll.u32 %v8228_v28, 16  ;;  %v10205_v38 = vshrl.u32 %v8228_v28, 16 }
  0x34   : > { %6397 = vmatmul.mubr.msk.bf16.gmra.mrb[8].mxu0 %vm530_vm3, %v1040_v44  ;;  %v10214_v44 = vshll.u32 %v8164_v41, 16 }
  0x35   : > { %6400 = vmatprep.mubr.msk.bf16.mxu0 %vm7912_vm1, %v10226_v1 }
  0x36   : > { %v1389_v52 = vrot.slane %v10214_v44, 4  ;;  %v8285_v44 = vld [vmem:[%s7994_s11 + $0x74] sm:$0xf] }
  0x37   : > { %10325 = vst [vmem:[#allocation25_spill] sm:$0xff] %v8285_v44 }
  0x38   : > { %v1390_v54 = vor.u32 %v1389_v52, %v1388_v51  ;;  %v1400_v52 = vrot.slane %v10205_v38, 3  ;;  %v8263_v38 = vld [vmem:[%s7994_s11 + $0x70] sm:$0xf] }
  0x39   : > { %10324 = vst [vmem:[#allocation24_spill] sm:$0xff] %v8263_v38 }
  0x3c   : > { %6401 = vmatmul.mubr.msk.bf16.gmra.mrb[12].mxu0 %vm530_vm3, %v8090_v49  ;;  %v10332_v49 = vshrl.u32 %v8022_v11, 16 }
  0x3d   : > { %6404 = vmatprep.mubr.msk.bf16.mxu0 %vm7912_vm1, %v10226_v1 }
  0x44   : > { %6405 = vmatmul.mubr.msk.bf16.gmra.mrb[16].mxu0 %vm530_vm3, %v8098_v56 }
  0x45   : > { %6450 = vmatprep.mubr.msk.bf16.mxu0 %vm7912_vm1, %v10226_v1 }
  0x4c   : > { %6451 = vmatmul.mubr.msk.bf16.vlgmr.msra.gmra.mrb[0].mxu0 %vm530_vm3, %v1371_v61  ;;  %v1391_v61 = vsel %vm386_vm4, %v1386_v42, %v1390_v54  ;;  %v8236_v42 = vld [vmem:[%s7994_s11 + $0x64] sm:$0xf] }
  0x4d   : > { %6511 = vmatpush3.bf16.msra.mxu0 %v1706_v0  ;;  %6454 = vmatprep.mubr.msk.bf16.mxu0 %vm7912_vm1, %v10226_v1  ;;  %v8208_v0 = vcombine.low %v8196_v58, %v8199_v60  ;;  %10321 = vst [vmem:[#allocation21_spill] sm:$0xff] %v8236_v42 }
  0x4e   : > { %6572 = vmatprep.subr.bf16.mxu0 %v10226_v1 }
  0x4f   : > { %v10207_v12 = vshrl.u32 %v8208_v0, 16 }
  0x51   : > { %v1396_v22 = vrot.slane %v10207_v12, 3 }
  0x54   : > { %6455 = vmatmul.mubr.msk.bf16.gmra.mrb[4].mxu0 %vm530_vm3, %v1375_v10  ;;  %v10208_v10 = vshll.u32 %v8208_v0, 16 }
  0x55   : > { %6458 = vmatprep.mubr.msk.bf16.mxu0 %vm7912_vm1, %v10226_v1 }
  0x56   : > { %v1397_v23 = vrot.slane %v10208_v10, 4 }
  0x5c   : > { %6459 = vmatmul.mubr.msk.bf16.gmra.mrb[8].mxu0 %vm530_vm3, %v1379_v21  ;;  %v1395_v21 = vsel %vm386_vm4, %v1390_v54, %v1394_v6  ;;  %v1401_v54 = vrot.slane %v10206_v37, 4 }
  0x5d   : > { %6462 = vmatprep.mubr.msk.bf16.mxu0 %vm7912_vm1, %v10226_v1 }
  0x5e   : > { %v1402_v62 = vor.u32 %v1401_v54, %v1400_v52  ;;  %v5576_v52 = vcombine.low %v8000_v4, %v8008_v5 }
  0x60   : > { %v396_v10 = vshrl.u32 %v5576_v52, 16  ;;  %v399_v57 = vshll.u32 %v5576_v52, 16 }
  0x64   : > { %6463 = vmatmul.mubr.msk.bf16.gmra.mrb[12].mxu0 %vm530_vm3, %v1383_v36  ;;  %v1398_v36 = vor.u32 %v1397_v23, %v1396_v22  ;;  %v262_v22 = vld [vmem:[%s7994_s11 + $0x8] sm:$0xf]  ;;  %v8260_v23 = vld [vmem:[%s7994_s11 + $0x6c] sm:$0xf] }
  0x65   : > { %6466 = vmatprep.mubr.msk.bf16.mxu0 %vm7912_vm1, %v10226_v1  ;;  %10323 = vst [vmem:[#allocation23_spill] sm:$0xff] %v8260_v23  ;;  %v8277_v4 = vcombine.low %v8260_v23, %v8263_v38 }
  0x66   : > { %v1399_v51 = vsel %vm386_vm4, %v1394_v6, %v1398_v36  ;;  %v1403_v55 = vsel %vm386_vm4, %v1398_v36, %v1402_v62 }
  0x6c   : > { %6467 = vmatmul.mubr.msk.bf16.gmra.mrb[16].mxu0 %vm530_vm3, %v1387_v50  ;;  %v8239_v50 = vld [vmem:[%s7994_s11 + $0x68] sm:$0xf] }
  0x6d   : > { %6470 = vmatprep.mubr.msk.bf16.mxu0 %vm7912_vm1, %v10226_v1  ;;  %10322 = vst [vmem:[#allocation22_spill] sm:$0xff] %v8239_v50 }
  0x74   : > { %6471 = vmatmul.mubr.msk.bf16.gmra.mrb[20].mxu0 %vm530_vm3, %v1391_v61  ;;  %v8248_v61 = vcombine.low %v8236_v42, %v8239_v50 }
  0x75   : > { %6474 = vmatprep.mubr.msk.bf16.mxu0 %vm7912_vm1, %v10226_v1 }
  0x76   : > { %v10213_v63 = vshll.u32 %v8248_v61, 16  ;;  %v10212_v6 = vshrl.u32 %v8248_v61, 16 }
  0x78   : > { %v1404_v45 = vrot.slane %v10212_v6, 3  ;;  %v10217_v6 = vshll.u32 %v8277_v4, 16 }
  0x7c   : > { %6475 = vmatmul.mubr.msk.bf16.gmra.mrb[24].mxu0 %vm530_vm3, %v1395_v21  ;;  %v307_v21 = vld [vmem:[%s10200_s1] sm:$0x3] }
  0x7d   : > { %6478 = vmatprep.mubr.msk.bf16.mxu0 %vm7912_vm1, %v10226_v1  ;;  %v578_v37 = vsel %vm576_vm0, %v307_v21, 0  ;;  %v398_v21 = vrot.slane %v396_v10, 3 }
  0x7e   : > { %6263 = vmatpush3.bf16.msra.mxu1 %v578_v37 }
  0x7f   : > { %6324 = vmatprep.subr.bf16.mxu1 %v10226_v1 }
  0x84   : > { %6479 = vmatmul.mubr.msk.bf16.gmra.mrb[28].mxu0 %vm530_vm3, %v1399_v51  ;;  %v5575_v51 = vcombine.low %v262_v22, %v7997_v3  ;;  %v1405_v3 = vrot.slane %v10213_v63, 4  ;;  %v401_v22 = vrot.slane %v399_v57, 4  ;;  %v10216_v63 = vshrl.u32 %v8277_v4, 16 }
  0x85   : > { %6482 = vmatprep.mubr.msk.bf16.mxu0 %vm7912_vm1, %v10226_v1 }
  0x86   : > { %v388_v54 = vshrl.u32 %v5575_v51, 16  ;;  %v391_v12 = vshll.u32 %v5575_v51, 16  ;;  %v402_v52 = vor.u32 %v401_v22, %v398_v21  ;;  %v1406_v36 = vor.u32 %v1405_v3, %v1404_v45 }
  0x87   : > { %v10222_v45 = vshll.u32 %v8022_v11, 16  ;;  %v1408_v10 = vrot.slane %v10216_v63, 3  ;;  %v8303_v3 = vcombine.low %v8285_v44, %v8288_v31  ;;  %v8318_v63 = vld [vmem:[%s7994_s11 + $0x80] sm:$0xf] }
  0x88   : > { %v390_v5 = vrot.slane %v388_v54, 3  ;;  %v393_v37 = vrot.slane %v391_v12, 4  ;;  %v1407_v57 = vsel %vm386_vm4, %v1402_v62, %v1406_v36  ;;  %v1409_v54 = vrot.slane %v10217_v6, 4  ;;  %10328 = vst [vmem:[#allocation28_spill] sm:$0xff] %v8318_v63 }
  0x89   : > { %v10221_v22 = vshll.u32 %v8303_v3, 16 }
  0x8a   : > { %v394_v51 = vor.u32 %v393_v37, %v390_v5  ;;  %v410_v37 = vrot.slane %v10222_v45, 4  ;;  %v1410_v62 = vor.u32 %v1409_v54, %v1408_v10  ;;  %v10225_v10 = vshll.u32 %v8106_v59, 16  ;;  %v8345_v45 = vld [vmem:[%s7994_s11 + $0x84] sm:$0xf] }
  0x8c   : > { %6483 = vmatmul.mubr.msk.bf16.gmra.mrb[32].mxu0 %vm530_vm3, %v1403_v55  ;;  %v403_v12 = vsel %vm386_vm4, %v394_v51, %v402_v52  ;;  %v10219_v55 = vshrl.u32 %v8022_v11, 16  ;;  %v10220_v51 = vshrl.u32 %v8303_v3, 16  ;;  %v1411_v54 = vsel %vm386_vm4, %v1406_v36, %v1410_v62 }
  0x8d   : > { %6486 = vmatprep.mubr.msk.bf16.mxu0 %vm7912_vm1, %v10226_v1  ;;  %6265 = vmatmul.mubr.msk.bf16.vlgmr.msra.gmra.mrb[0].mxu1 %vm530_vm3, %v403_v12  ;;  %v8315_v12 = vld [vmem:[%s7994_s11 + $0x7c] sm:$0xf]  ;;  %v419_v30 = vrot.slane %v10225_v10, 4 }
  0x8e   : > { %6268 = vmatprep.mubr.msk.bf16.mxu1 %vm7912_vm1, %v10226_v1  ;;  %v407_v5 = vrot.slane %v10219_v55, 3  ;;  %10327 = vst [vmem:[#allocation27_spill] sm:$0xff] %v8315_v12 }
  0x90   : > { %v411_v21 = vor.u32 %v410_v37, %v407_v5  ;;  %v1412_v5 = vrot.slane %v10220_v51, 3  ;;  %v1413_v37 = vrot.slane %v10221_v22, 4 }
  0x92   : > { %v412_v6 = vsel %vm386_vm4, %v402_v52, %v411_v21  ;;  %v1414_v36 = vor.u32 %v1413_v37, %v1412_v5 }
  0x94   : > { %6487 = vmatmul.mubr.msk.bf16.gmra.mrb[36].mxu0 %vm530_vm3, %v1407_v57  ;;  %v10224_v57 = vshrl.u32 %v8106_v59, 16  ;;  %v1415_v5 = vsel %vm386_vm4, %v1410_v62, %v1414_v36 }
  0x95   : > { %6490 = vmatprep.mubr.msk.bf16.mxu0 %vm7912_vm1, %v10226_v1  ;;  %6269 = vmatmul.mubr.msk.bf16.gmra.mrb[4].mxu1 %vm530_vm3, %v412_v6  ;;  %v8333_v6 = vcombine.low %v8315_v12, %v8318_v63 }
  0x96   : > { %6272 = vmatprep.mubr.msk.bf16.mxu1 %vm7912_vm1, %v10226_v1  ;;  %v416_v52 = vrot.slane %v10224_v57, 3 }
  0x97   : > { %v10231_v51 = vshll.u32 %v8333_v6, 16  ;;  %v10229_v22 = vshrl.u32 %v8333_v6, 16 }
  0x98   : > { %v420_v55 = vor.u32 %v419_v30, %v416_v52  ;;  %v10233_v30 = vshrl.u32 %v8118_v8, 16 }
  0x99   : > { %v1416_v37 = vrot.slane %v10229_v22, 3  ;;  %v1417_v52 = vrot.slane %v10231_v51, 4  ;;  %v8373_v51 = vld [vmem:[%s7994_s11 + $0x8c] sm:$0xf] }
  0x9a   : > { %v421_v57 = vsel %vm386_vm4, %v411_v21, %v420_v55  ;;  %v8363_v21 = vcombine.low %v8345_v45, %v8348_v29 }
  0x9b   : > { %v1418_v62 = vor.u32 %v1417_v52, %v1416_v37 }
  0x9c   : > { %6491 = vmatmul.mubr.msk.bf16.gmra.mrb[40].mxu0 %vm530_vm3, %v1411_v54  ;;  %v426_v54 = vshll.u32 %v8118_v8, 16  ;;  %10329 = vst [vmem:[#allocation29_spill] sm:$0xff] %v8363_v21  ;;  %v10238_v22 = vshrl.u32 %v8363_v21, 16  ;;  %v10239_v20 = vshll.u32 %v8363_v21, 16 }
  0x9d   : > { %6494 = vmatprep.mubr.msk.bf16.mxu0 %vm7912_vm1, %v10226_v1  ;;  %6273 = vmatmul.mubr.msk.bf16.gmra.mrb[8].mxu1 %vm530_vm3, %v421_v57  ;;  %v425_v57 = vrot.slane %v10233_v30, 3  ;;  %v1419_v37 = vsel %vm386_vm4, %v1414_v36, %v1418_v62 }
  0x9e   : > { %6276 = vmatprep.mubr.msk.bf16.mxu1 %vm7912_vm1, %v10226_v1  ;;  %v428_v10 = vrot.slane %v426_v54, 4  ;;  %v1423_v52 = vrot.slane %v10238_v22, 3 }
  0xa0   : > { %v429_v1 = vor.u32 %v428_v10, %v425_v57  ;;  %v10240_v10 = vshrl.u32 %v8127_v16, 16  ;;  %v1426_v57 = vrot.slane %v10239_v20, 4  ;;  %v10247_v20 = vshrl.u32 %v8149_v33, 16 }
  0xa2   : > { %v8376_v18 = vsel %vm386_vm4, %v420_v55, %v429_v1  ;;  %v5656_v55 = vcombine.low %v8373_v51, %v8373_v51  ;;  %v434_v30 = vrot.slane %v10240_v10, 3  ;;  %v1427_v36 = vor.u32 %v1426_v57, %v1423_v52 }
  0xa3   : > { %v10331_v52 = vshll.u32 %v8022_v11, 16 }
  0xa4   : > { %6495 = vmatmul.mubr.msk.bf16.gmra.mrb[44].mxu0 %vm530_vm3, %v1415_v5  ;;  %v435_v5 = vshll.u32 %v8127_v16, 16  ;;  %v1430_v40 = vshrl.u32 %v5656_v55, 16  ;;  %v1433_v25 = vshll.u32 %v5656_v55, 16 }
  0xa5   : > { %6498 = vmatprep.mubr.msk.bf16.mxu0 %vm7912_vm1, %v10330_v19  ;;  %6277 = vmatmul.mubr.msk.bf16.gmra.mrb[12].mxu1 %vm530_vm3, %v8376_v18  ;;  %v1896_v57 = vrot.slane %v10331_v52, 1 }
  0xa6   : > { %6280 = vmatprep.mubr.msk.bf16.mxu1 %vm7912_vm1, %v10330_v19  ;;  %v437_v17 = vrot.slane %v435_v5, 4  ;;  %v1435_v10 = vrot.slane %v1433_v25, 4 }
  0xa7   : > { %v1897_v21 = vor.u32 %v1896_v57, %v10332_v49 }
  0xa8   : > { %v438_v26 = vor.u32 %v437_v17, %v434_v30  ;;  %v1428_v17 = vsel %vm386_vm4, %v1418_v62, %v1427_v36  ;;  %v1432_v30 = vrot.slane %v1430_v40, 3  ;;  %v10333_v40 = vshll.u32 %v8106_v59, 16 }
  0xaa   : > { %v8397_v22 = vsel %vm386_vm4, %v429_v1, %v438_v26  ;;  %v443_v1 = vrot.slane %v10247_v20, 3  ;;  %v1436_v56 = vor.u32 %v1435_v10, %v1432_v30  ;;  %v1898_v25 = vrot.slane %v10333_v40, 1 }
  0xab   : > { %v10246_v10 = vshrl.u32 %v8173_v46, 16  ;;  %v8439_v40 = vcombine.low %v8155_v34, %v8176_v47  ;;  %v1904_v20 = vrot.slane %v435_v5, 1  ;;  %v8467_v34 = vcombine.low %v8179_v48, %v8196_v58 }
  0xac   : > { %6499 = vmatmul.mubr.msk.bf16.gmra.mrb[48].mxu0 %vm530_vm3, %v1419_v37  ;;  %v444_v37 = vshll.u32 %v8149_v33, 16  ;;  %v8423_v52 = vsel %vm1016_vm2, %v1897_v21, %v1898_v25  ;;  %v1437_v49 = vsel %vm386_vm4, %v1427_v36, %v1436_v56  ;;  %v10334_v21 = vshrl.u32 %v8106_v59, 16  ;;  %v5690_v36 = vld [vmem:[%s10200_s1 + $0xa] sm:$0x3] }
  0xad   : > { %6502 = vmatprep.mubr.msk.bf16.mxu0 %vm7912_vm1, %v10330_v19  ;;  %6281 = vmatmul.mubr.msk.bf16.gmra.mrb[16].mxu1 %vm530_vm3, %v8397_v22  ;;  %v452_v30 = vrot.slane %v10246_v10, 3  ;;  %v10251_v5 = vshrl.u32 %v8467_v34, 16 }
  0xae   : > { %6284 = vmatprep.mubr.msk.bf16.mxu1 %vm7912_vm1, %v10330_v19  ;;  %v446_v55 = vrot.slane %v444_v37, 4 }
  0xb0   : > { %v447_v39 = vor.u32 %v446_v55, %v443_v1  ;;  %v1900_v1 = vor.u32 %v1898_v25, %v10334_v21  ;;  %v1901_v55 = vrot.slane %v426_v54, 1  ;;  %v10249_v54 = vshrl.u32 %v8439_v40, 16 }
  0xb1   : > { %v462_v25 = vshll.u32 %v8439_v40, 16 }
  0xb2   : > { %v8418_v62 = vsel %vm386_vm4, %v438_v26, %v447_v39 }
  0xb4   : > { %6503 = vmatmul.mubr.msk.bf16.gmra.mrb[52].mxu0 %vm530_vm3, %v1428_v17  ;;  %v453_v17 = vshll.u32 %v8173_v46, 16 }
  0xb5   : > { %6506 = vmatprep.mubr.msk.bf16.mxu0 %vm7912_vm1, %v10330_v19  ;;  %6285 = vmatmul.mubr.msk.bf16.gmra.mrb[20].mxu1 %vm530_vm3, %v8418_v62 }
  0xb6   : > { %6288 = vmatprep.mubr.msk.bf16.mxu1 %vm7912_vm1, %v10330_v19  ;;  %v455_v26 = vrot.slane %v453_v17, 4 }
  0xb8   : > { %v456_v57 = vor.u32 %v455_v26, %v452_v30  ;;  %v461_v30 = vrot.slane %v10249_v54, 3  ;;  %v464_v26 = vrot.slane %v462_v25, 4  ;;  %v8492_v54 = vcombine.low %v8199_v60, %v8216_v13 }
  0xb9   : > { %v8516_v60 = vcombine.low %v8219_v15, %v8236_v42  ;;  %v8540_v42 = vcombine.low %v8239_v50, %v8260_v23  ;;  %v8562_v50 = vcombine.low %v8263_v38, %v8285_v44  ;;  %v5589_v38 = vcombine.low %v8288_v31, %v8315_v12 }
  0xba   : > { %v8442_v56 = vsel %vm386_vm4, %v447_v39, %v456_v57  ;;  %v1999_v39 = vsel %vm576_vm0, %v5690_v36, 0  ;;  %v465_v21 = vor.u32 %v464_v26, %v461_v30  ;;  %v5590_v12 = vcombine.low %v8318_v63, %v8318_v63 }
  0xbc   : > { %6507 = vmatmul.mubr.msk.bf16.gmra.mrb[56].mxu0 %vm530_vm3, %v1437_v49  ;;  %v8450_v49 = vsel %vm1016_vm2, %v1900_v1, %v1901_v55  ;;  %v10335_v1 = vshrl.u32 %v8118_v8, 16  ;;  %v8471_v36 = vsel %vm386_vm4, %v456_v57, %v465_v21 }
  0xbd   : > { %6512 = vmatprep.mubr.msk.bf16.mxu0 %vm7912_vm1, %v10330_v19  ;;  %6289 = vmatmul.mubr.msk.bf16.gmra.mrb[24].mxu1 %vm530_vm3, %v8442_v56 }
  0xbe   : > { %6292 = vmatprep.mubr.msk.bf16.mxu1 %vm7912_vm1, %v10330_v19  ;;  %v1903_v10 = vor.u32 %v1901_v55, %v10335_v1  ;;  %v471_v55 = vshll.u32 %v8467_v34, 16  ;;  %v1907_v1 = vrot.slane %v444_v37, 1 }
  0xc0   : > { %v473_v30 = vrot.slane %v471_v55, 4 }
  0xc4   : > { %6513 = vmatmul.mubr.msk.bf16.vlgmr.msra.gmra.mrb[0].mxu0 %vm530_vm3, %v8022_v11  ;;  %v8476_v11 = vsel %vm1016_vm2, %v1903_v10, %v1904_v20  ;;  %v10336_v10 = vshrl.u32 %v8127_v16, 16 }
  0xc5   : > { %6573 = vmatpush3.bf16.msra.mxu0 %v1999_v39  ;;  %6516 = vmatprep.mubr.msk.bf16.mxu0 %vm7912_vm1, %v10330_v19  ;;  %v470_v39 = vrot.slane %v10251_v5, 3  ;;  %v1910_v5 = vrot.slane %v453_v17, 1  ;;  %v489_v17 = vshll.u32 %v8516_v60, 16 }
  0xc6   : > { %6634 = vmatprep.subr.bf16.mxu0 %v10330_v19  ;;  %6293 = vmatmul.mubr.msk.bf16.gmra.mrb[28].mxu1 %vm530_vm3, %v8471_v36  ;;  %v1906_v26 = vor.u32 %v1904_v20, %v10336_v10  ;;  %v480_v20 = vshll.u32 %v8492_v54, 16  ;;  %v10337_v10 = vshrl.u32 %v8149_v33, 16 }
  0xc7   : > { %6296 = vmatprep.mubr.msk.bf16.mxu1 %vm7912_vm1, %v10330_v19  ;;  %v474_v57 = vor.u32 %v473_v30, %v470_v39  ;;  %v10254_v39 = vshrl.u32 %v8492_v54, 16 }
  0xc8   : > { %v482_v30 = vrot.slane %v480_v20, 4  ;;  %v1919_v44 = vrot.slane %v480_v20, 1 }
  0xc9   : > { %v8495_v58 = vsel %vm386_vm4, %v465_v21, %v474_v57  ;;  %v479_v37 = vrot.slane %v10254_v39, 3  ;;  %v1913_v39 = vrot.slane %v462_v25, 1  ;;  %v498_v25 = vshll.u32 %v8540_v42, 16 }
  0xcb   : > { %v483_v21 = vor.u32 %v482_v30, %v479_v37  ;;  %v10257_v37 = vshrl.u32 %v8516_v60, 16  ;;  %v491_v30 = vrot.slane %v489_v17, 4 }
  0xcc   : > { %6517 = vmatmul.mubr.msk.bf16.gmra.mrb[4].mxu0 %vm530_vm3, %v8106_v59  ;;  %v8500_v59 = vsel %vm1016_vm2, %v1906_v26, %v1907_v1  ;;  %v1909_v26 = vor.u32 %v1907_v1, %v10337_v10  ;;  %v10338_v10 = vshrl.u32 %v8173_v46, 16 }
  0xcd   : > { %6520 = vmatprep.mubr.msk.bf16.mxu0 %vm7912_vm1, %v10330_v19  ;;  %v8519_v13 = vsel %vm386_vm4, %v474_v57, %v483_v21  ;;  %v488_v1 = vrot.slane %v10257_v37, 3  ;;  %v1916_v37 = vrot.slane %v471_v55, 1  ;;  %v507_v55 = vshll.u32 %v8562_v50, 16 }
  0xce   : > { %6297 = vmatmul.mubr.msk.bf16.gmra.mrb[32].mxu1 %vm530_vm3, %v8495_v58 }
  0xcf   : > { %6300 = vmatprep.mubr.msk.bf16.mxu1 %vm7912_vm1, %v10330_v19  ;;  %v492_v57 = vor.u32 %v491_v30, %v488_v1  ;;  %v495_v1 = vshrl.u32 %v8540_v42, 16  ;;  %v500_v30 = vrot.slane %v498_v25, 4 }
  0xd1   : > { %v8543_v15 = vsel %vm386_vm4, %v483_v21, %v492_v57 }
  0xd4   : > { %6521 = vmatmul.mubr.msk.bf16.gmra.mrb[8].mxu0 %vm530_vm3, %v8118_v8  ;;  %v8524_v8 = vsel %vm1016_vm2, %v1909_v26, %v1910_v5  ;;  %v1912_v26 = vor.u32 %v1910_v5, %v10338_v10  ;;  %v497_v5 = vrot.slane %v495_v1, 3  ;;  %v10339_v10 = vshrl.u32 %v8439_v40, 16 }
  0xd5   : > { %6524 = vmatprep.mubr.msk.bf16.mxu0 %vm7912_vm1, %v10330_v19 }
  0xd6   : > { %6301 = vmatmul.mubr.msk.bf16.gmra.mrb[36].mxu1 %vm530_vm3, %v8519_v13  ;;  %v501_v21 = vor.u32 %v500_v30, %v497_v5  ;;  %v504_v5 = vshrl.u32 %v8562_v50, 16  ;;  %v509_v30 = vrot.slane %v507_v55, 4 }
  0xd7   : > { %6304 = vmatprep.mubr.msk.bf16.mxu1 %vm7912_vm1, %v10330_v19 }
  0xd8   : > { %v8565_v23 = vsel %vm386_vm4, %v492_v57, %v501_v21 }
  0xdc   : > { %6525 = vmatmul.mubr.msk.bf16.gmra.mrb[12].mxu0 %vm530_vm3, %v8127_v16  ;;  %v8548_v16 = vsel %vm1016_vm2, %v1912_v26, %v1913_v39  ;;  %v1915_v26 = vor.u32 %v1913_v39, %v10339_v10  ;;  %v506_v39 = vrot.slane %v504_v5, 3  ;;  %v10340_v10 = vshrl.u32 %v8467_v34, 16 }
  0xdd   : > { %6528 = vmatprep.mubr.msk.bf16.mxu0 %vm7912_vm1, %v10330_v19 }
  0xde   : > { %6305 = vmatmul.mubr.msk.bf16.gmra.mrb[40].mxu1 %vm530_vm3, %v8543_v15  ;;  %v510_v57 = vor.u32 %v509_v30, %v506_v39  ;;  %v516_v39 = vshll.u32 %v5589_v38, 16 }
  0xdf   : > { %6308 = vmatprep.mubr.msk.bf16.mxu1 %vm7912_vm1, %v10330_v19 }
  0xe0   : > { %v8585_v48 = vsel %vm386_vm4, %v501_v21, %v510_v57  ;;  %v10342_v21 = vshrl.u32 %v8492_v54, 16 }
  0xe1   : > { %10341 = vst [vmem:[#allocation30_spill] sm:$0xff] %v8585_v48 }
  0xe4   : > { %6529 = vmatmul.mubr.msk.bf16.gmra.mrb[16].mxu0 %vm530_vm3, %v8149_v33  ;;  %v8570_v33 = vsel %vm1016_vm2, %v1915_v26, %v1916_v37  ;;  %v1918_v26 = vor.u32 %v1916_v37, %v10340_v10  ;;  %v518_v37 = vrot.slane %v516_v39, 4  ;;  %v1921_v10 = vor.u32 %v1919_v44, %v10342_v21  ;;  %v5606_v21 = vld [vmem:[%s10200_s1 + $0x2] sm:$0x3] }
  0xe5   : > { %6532 = vmatprep.mubr.msk.bf16.mxu0 %vm7912_vm1, %v10330_v19 }
  0xe6   : > { %6309 = vmatmul.mubr.msk.bf16.gmra.mrb[44].mxu1 %vm530_vm3, %v8565_v23  ;;  %v8590_v47 = vsel %vm1016_vm2, %v1918_v26, %v1919_v44  ;;  %v1922_v26 = vrot.slane %v489_v17, 1 }
  0xe7   : > { %6312 = vmatprep.mubr.msk.bf16.mxu1 %vm7912_vm1, %v10330_v19 }
  0xec   : > { %6533 = vmatmul.mubr.msk.bf16.gmra.mrb[20].mxu0 %vm530_vm3, %v8173_v46  ;;  %v513_v46 = vshrl.u32 %v5589_v38, 16 }
  0xed   : > { %6536 = vmatprep.mubr.msk.bf16.mxu0 %vm7912_vm1, %v10330_v19 }
  0xee   : > { %6313 = vmatmul.mubr.msk.bf16.gmra.mrb[48].mxu1 %vm530_vm3, %v8585_v48  ;;  %v515_v30 = vrot.slane %v513_v46, 3  ;;  %v1925_v48 = vrot.slane %v498_v25, 1 }
  0xef   : > { %6316 = vmatprep.mubr.msk.bf16.mxu1 %vm7912_vm1, %v10330_v19 }
  0xf0   : > { %v8596_v20 = vor.u32 %v518_v37, %v515_v30  ;;  %v522_v30 = vshrl.u32 %v5590_v12, 16  ;;  %v525_v37 = vshll.u32 %v5590_v12, 16  ;;  %v1927_v25 = vor.u32 %v1925_v48, %v495_v1 }
  0xf2   : > { %v8604_v31 = vsel %vm386_vm4, %v510_v57, %v8596_v20  ;;  %v524_v44 = vrot.slane %v522_v30, 3  ;;  %v527_v17 = vrot.slane %v525_v37, 4  ;;  %v826_v30 = vsel %vm576_vm0, %v5606_v21, 0 }
  0xf3   : > { %10343 = vst [vmem:[#allocation31_spill] sm:$0xff] %v8604_v31  ;;  %6325 = vmatpush3.bf16.msra.mxu1 %v826_v30 }
  0xf4   : > { %6537 = vmatmul.mubr.msk.bf16.gmra.mrb[24].mxu0 %vm530_vm3, %v8439_v40  ;;  %v8611_v40 = vsel %vm1016_vm2, %v1921_v10, %v1922_v26  ;;  %v528_v57 = vor.u32 %v527_v17, %v524_v44  ;;  %v10344_v10 = vshrl.u32 %v8516_v60, 16  ;;  %7054 = vmatprep.subr.bf16.mxu1 %v10330_v19 }
  0xf5   : > { %6540 = vmatprep.mubr.msk.bf16.mxu0 %vm7912_vm1, %v10330_v19 }
  0xf6   : > { %6317 = vmatmul.mubr.msk.bf16.gmra.mrb[52].mxu1 %vm530_vm3, %v8604_v31  ;;  %v1924_v31 = vor.u32 %v1922_v26, %v10344_v10  ;;  %v529_v12 = vsel %vm386_vm4, %v8596_v20, %v528_v57  ;;  %v1928_v26 = vrot.slane %v507_v55, 1  ;;  %v10350_v55 = vshrl.u32 %v8188_v53, 16  ;;  %v8842_v10 = vld [vmem:[%s7994_s11 + $0x90] sm:$0xf] }
  0xf7   : > { %6320 = vmatprep.mubr.msk.bf16.mxu1 %vm7912_vm1, %v10330_v19 }
  0xfc   : > { %6541 = vmatmul.mubr.msk.bf16.gmra.mrb[28].mxu0 %vm530_vm3, %v8467_v34  ;;  %v8629_v34 = vsel %vm1016_vm2, %v1924_v31, %v1925_v48  ;;  %v8641_v31 = vsel %vm1016_vm2, %v1927_v25, %v1928_v26  ;;  %v1931_v48 = vrot.slane %v516_v39, 1  ;;  %v10351_v39 = vshll.u32 %v8208_v0, 16 }
  0xfd   : > { %6544 = vmatprep.mubr.msk.bf16.mxu0 %vm7912_vm1, %v10330_v19 }
  0xfe   : > { %6321 = vmatmul.mubr.msk.bf16.gmra.mrb[56].mxu1 %vm530_vm3, %v529_v12  ;;  %v10352_v12 = vshrl.u32 %v8208_v0, 16 }
  0xff   : > { %6326 = vmatprep.mubr.msk.bf16.mxu1 %vm7912_vm1, %v10330_v19 }
 0x104   : > { %6545 = vmatmul.mubr.msk.bf16.gmra.mrb[32].mxu0 %vm530_vm3, %v8492_v54  ;;  %v1930_v54 = vor.u32 %v1928_v26, %v504_v5 }
 0x105   : > { %6548 = vmatprep.mubr.msk.bf16.mxu0 %vm7912_vm1, %v10330_v19 }
 0x106   : > { %6327 = vmatmul.mubr.msk.bf16.vlgmr.msra.gmra.mrb[0].mxu1 %vm530_vm3, %v8013_v7  ;;  %v8653_v7 = vsel %vm1016_vm2, %v1930_v54, %v1931_v48  ;;  %v5691_v54 = vcombine.low %v8842_v10, %v8842_v10 }
 0x107   : > { %6330 = vmatprep.mubr.msk.bf16.mxu1 %vm7912_vm1, %v10330_v19  ;;  %7055 = vmatpush3.bf16.msra.mxu1 %v7980_v2  ;;  %v8661_v2 = vor.u32 %v1931_v48, %v513_v46 }
 0x10c   : > { %6549 = vmatmul.mubr.msk.bf16.gmra.mrb[36].mxu0 %vm530_vm3, %v8516_v60  ;;  %v5707_v60 = vld [vmem:[%s10200_s1 + $0xc] sm:$0x3] }
 0x10d   : > { %6552 = vmatprep.mubr.msk.bf16.mxu0 %vm7912_vm1, %v10330_v19 }
 0x10e   : > { %6331 = vmatmul.mubr.msk.bf16.gmra.mrb[4].mxu1 %vm530_vm3, %v8017_v9  ;;  %v8682_v9 = vcombine.low %v8318_v63, %v8345_v45 }
 0x10f   : > { %6334 = vmatprep.mubr.msk.bf16.mxu1 %vm7912_vm1, %v10330_v19 }
 0x110   : > { %v1934_v5 = vshll.u32 %v8682_v9, 16  ;;  %v1938_v57 = vshrl.u32 %v8682_v9, 16 }
 0x112   : > { %v1936_v37 = vrot.slane %v1934_v5, 1 }
 0x114   : > { %6553 = vmatmul.mubr.msk.bf16.gmra.mrb[40].mxu0 %vm530_vm3, %v8540_v42  ;;  %v1937_v17 = vsel %vm1016_vm2, %v8661_v2, %v1936_v37  ;;  %v1940_v26 = vor.u32 %v1938_v57, %v1936_v37  ;;  %v10358_v37 = vshrl.u32 %v8277_v4, 16 }
 0x115   : > { %6556 = vmatprep.mubr.msk.bf16.mxu0 %vm7912_vm1, %v10330_v19 }
 0x116   : > { %6335 = vmatmul.mubr.msk.bf16.gmra.mrb[8].mxu1 %vm530_vm3, %v8027_v14  ;;  %v8694_v14 = vcombine.low %v8348_v29, %v8373_v51  ;;  %v2231_v29 = vsel %vm576_vm0, %v5707_v60, 0  ;;  %v1949_v60 = vshll.u32 %v5691_v54, 16 }
 0x117   : > { %6338 = vmatprep.mubr.msk.bf16.mxu1 %vm7912_vm1, %v10330_v19 }
 0x118   : > { %v1941_v21 = vshll.u32 %v8694_v14, 16  ;;  %v1945_v2 = vshrl.u32 %v8694_v14, 16 }
 0x11c   : > { %6557 = vmatmul.mubr.msk.bf16.gmra.mrb[44].mxu0 %vm530_vm3, %v8562_v50  ;;  %v10346_v50 = vshrl.u32 %v8140_v24, 16 }
 0x11d   : > { %6560 = vmatprep.mubr.msk.bf16.mxu0 %vm7912_vm1, %v10330_v19 }
 0x11e   : > { %6339 = vmatmul.mubr.msk.bf16.gmra.mrb[12].mxu1 %vm530_vm3, %v8059_v32 }
 0x11f   : > { %6342 = vmatprep.mubr.msk.bf16.mxu1 %vm7912_vm1, %v10330_v19 }
 0x124   : > { %6561 = vmatmul.mubr.msk.bf16.gmra.mrb[48].mxu0 %vm530_vm3, %v5589_v38  ;;  %v10345_v38 = vshll.u32 %v8140_v24, 16 }
 0x125   : > { %6564 = vmatprep.mubr.msk.bf16.mxu0 %vm7912_vm1, %v10330_v19 }
 0x126   : > { %6343 = vmatmul.mubr.msk.bf16.gmra.mrb[16].mxu1 %vm530_vm3, %v8081_v43  ;;  %v1060_v42 = vrot.slane %v10345_v38, 1 }
 0x127   : > { %6346 = vmatprep.mubr.msk.bf16.mxu1 %vm7912_vm1, %v10330_v19 }
 0x12c   : > { %6565 = vmatmul.mubr.msk.bf16.gmra.mrb[52].mxu0 %vm530_vm3, %v8682_v9 }
 0x12d   : > { %6568 = vmatprep.mubr.msk.bf16.mxu0 %vm7912_vm1, %v10330_v19 }
 0x12e   : > { %6347 = vmatmul.mubr.msk.bf16.gmra.mrb[20].mxu1 %vm530_vm3, %v8050_v27 }
 0x12f   : > { %6350 = vmatprep.mubr.msk.bf16.mxu1 %vm7912_vm1, %v10330_v19 }
 0x134   : > { %6569 = vmatmul.mubr.msk.bf16.gmra.mrb[56].mxu0 %vm530_vm3, %v8694_v14 }
 0x135   : > { %6574 = vmatprep.mubr.msk.bf16.mxu0 %vm7912_vm1, %v10330_v19 }
 0x136   : > { %6351 = vmatmul.mubr.msk.bf16.gmra.mrb[24].mxu1 %vm530_vm3, %v8140_v24 }
 0x137   : > { %6354 = vmatprep.mubr.msk.bf16.mxu1 %vm7912_vm1, %v10330_v19 }
 0x13c   : > { %6575 = vmatmul.mubr.msk.bf16.vlgmr.msra.gmra.mrb[0].mxu0 %vm530_vm3, %v8423_v52  ;;  %v1064_v52 = vor.u32 %v10346_v50, %v1060_v42 }
 0x13d   : > { %6635 = vmatpush3.bf16.msra.mxu0 %v2231_v29  ;;  %6578 = vmatprep.mubr.msk.bf16.mxu0 %vm7912_vm1, %v10330_v19  ;;  %v10354_v29 = vshrl.u32 %v8228_v28, 16 }
 0x13e   : > { %6696 = vmatprep.subr.bf16.mxu0 %v10330_v19  ;;  %6355 = vmatmul.mubr.msk.bf16.gmra.mrb[28].mxu1 %vm530_vm3, %v8164_v41 }
 0x13f   : > { %6358 = vmatprep.mubr.msk.bf16.mxu1 %vm7912_vm1, %v10330_v19 }
 0x144   : > { %6579 = vmatmul.mubr.msk.bf16.gmra.mrb[4].mxu0 %vm530_vm3, %v8450_v49  ;;  %v10347_v49 = vshll.u32 %v8164_v41, 16 }
 0x145   : > { %6582 = vmatprep.mubr.msk.bf16.mxu0 %vm7912_vm1, %v10330_v19 }
 0x146   : > { %6359 = vmatmul.mubr.msk.bf16.gmra.mrb[32].mxu1 %vm530_vm3, %v8188_v53 }
 0x147   : > { %6362 = vmatprep.mubr.msk.bf16.mxu1 %vm7912_vm1, %v10330_v19 }
 0x14c   : > { %6583 = vmatmul.mubr.msk.bf16.gmra.mrb[8].mxu0 %vm530_vm3, %v8476_v11  ;;  %v1067_v11 = vrot.slane %v10347_v49, 1  ;;  %v1951_v49 = vrot.slane %v1949_v60, 1  ;;  %v10362_v60 = vshrl.u32 %v8333_v6, 16 }
 0x14d   : > { %6586 = vmatprep.mubr.msk.bf16.mxu0 %vm7912_vm1, %v10330_v19 }
 0x14e   : > { %6363 = vmatmul.mubr.msk.bf16.gmra.mrb[36].mxu1 %vm530_vm3, %v8208_v0 }
 0x14f   : > { %6366 = vmatprep.mubr.msk.bf16.mxu1 %vm7912_vm1, %v10330_v19 }
 0x154   : > { %6587 = vmatmul.mubr.msk.bf16.gmra.mrb[12].mxu0 %vm530_vm3, %v8500_v59  ;;  %v10348_v59 = vshrl.u32 %v8164_v41, 16 }
 0x155   : > { %6590 = vmatprep.mubr.msk.bf16.mxu0 %vm7912_vm1, %v10330_v19 }
 0x156   : > { %6367 = vmatmul.mubr.msk.bf16.gmra.mrb[40].mxu1 %vm530_vm3, %v8228_v28 }
 0x157   : > { %6370 = vmatprep.mubr.msk.bf16.mxu1 %vm7912_vm1, %v10330_v19 }
 0x15c   : > { %6591 = vmatmul.mubr.msk.bf16.gmra.mrb[16].mxu0 %vm530_vm3, %v8524_v8  ;;  %v1071_v8 = vor.u32 %v10348_v59, %v1067_v11 }
 0x15d   : > { %6594 = vmatprep.mubr.msk.bf16.mxu0 %vm7912_vm1, %v10330_v19 }
 0x15e   : > { %6371 = vmatmul.mubr.msk.bf16.gmra.mrb[44].mxu1 %vm530_vm3, %v8248_v61 }
 0x15f   : > { %6374 = vmatprep.mubr.msk.bf16.mxu1 %vm7912_vm1, %v10330_v19 }
 0x164   : > { %6595 = vmatmul.mubr.msk.bf16.gmra.mrb[20].mxu0 %vm530_vm3, %v8548_v16  ;;  %v10349_v16 = vshll.u32 %v8188_v53, 16 }
 0x165   : > { %6598 = vmatprep.mubr.msk.bf16.mxu0 %vm7912_vm1, %v10330_v19 }
 0x166   : > { %6375 = vmatmul.mubr.msk.bf16.gmra.mrb[48].mxu1 %vm530_vm3, %v8277_v4  ;;  %v1074_v1 = vrot.slane %v10349_v16, 1 }
 0x167   : > { %6378 = vmatprep.mubr.msk.bf16.mxu1 %vm7912_vm1, %v10330_v19 }
 0x168   : > { %v1078_v46 = vor.u32 %v10350_v55, %v1074_v1 }
 0x16c   : > { %6599 = vmatmul.mubr.msk.bf16.gmra.mrb[24].mxu0 %vm530_vm3, %v8570_v33  ;;  %v8813_v33 = vsel %vm1016_vm2, %v1071_v8, %v1074_v1  ;;  %v10356_v8 = vshrl.u32 %v8248_v61, 16  ;;  %v10357_v1 = vshll.u32 %v8277_v4, 16 }
 0x16d   : > { %6602 = vmatprep.mubr.msk.bf16.mxu0 %vm7912_vm1, %v10330_v19 }
 0x16e   : > { %6379 = vmatmul.mubr.msk.bf16.gmra.mrb[52].mxu1 %vm530_vm3, %v8303_v3  ;;  %v1102_v55 = vrot.slane %v10357_v1, 1 }
 0x16f   : > { %6382 = vmatprep.mubr.msk.bf16.mxu1 %vm7912_vm1, %v10330_v19 }
 0x174   : > { %6603 = vmatmul.mubr.msk.bf16.gmra.mrb[28].mxu0 %vm530_vm3, %v8590_v47  ;;  %v8783_v47 = vsel %vm1016_vm2, %v8065_v35, %v1060_v42  ;;  %v8798_v35 = vsel %vm1016_vm2, %v1064_v52, %v1067_v11  ;;  %v10355_v42 = vshll.u32 %v8248_v61, 16 }
 0x175   : > { %6606 = vmatprep.mubr.msk.bf16.mxu0 %vm7912_vm1, %v10330_v19 }
 0x176   : > { %6383 = vmatmul.mubr.msk.bf16.gmra.mrb[56].mxu1 %vm530_vm3, %v8333_v6  ;;  %v1095_v50 = vrot.slane %v10355_v42, 1 }
 0x177   : > { %6408 = vmatprep.mubr.msk.bf16.mxu1 %vm7912_vm1, %v10330_v19 }
 0x178   : > { %v1099_v16 = vor.u32 %v10356_v8, %v1095_v50 }
 0x17c   : > { %6607 = vmatmul.mubr.msk.bf16.gmra.mrb[32].mxu0 %vm530_vm3, %v8611_v40  ;;  %v1081_v40 = vrot.slane %v10351_v39, 1  ;;  %v5725_v39 = vld [vmem:[%s10200_s1 + $0xe] sm:$0x3] }
 0x17d   : > { %6610 = vmatprep.mubr.msk.bf16.mxu0 %vm7912_vm1, %v10330_v19 }
 0x17e   : > { %6409 = vmatmul.mubr.msk.bf16.vlgmr.msra.gmra.mrb[20].mxu1 %vm530_vm3, %v8783_v47  ;;  %v8831_v44 = vsel %vm1016_vm2, %v1078_v46, %v1081_v40  ;;  %v1085_v30 = vor.u32 %v10352_v12, %v1081_v40  ;;  %v8891_v46 = vsel %vm1016_vm2, %v1099_v16, %v1102_v55  ;;  %v2429_v40 = vsel %vm576_vm0, %v5725_v39, 0 }
 0x17f   : > { %6412 = vmatprep.mubr.msk.bf16.mxu1 %vm7912_vm1, %v10330_v19  ;;  %v10359_v12 = vshll.u32 %v8303_v3, 16 }
 0x184   : > { %6611 = vmatmul.mubr.msk.bf16.gmra.mrb[36].mxu0 %vm530_vm3, %v8629_v34  ;;  %v10353_v34 = vshll.u32 %v8228_v28, 16 }
 0x185   : > { %6614 = vmatprep.mubr.msk.bf16.mxu0 %vm7912_vm1, %v10330_v19 }
 0x186   : > { %6413 = vmatmul.mubr.msk.bf16.gmra.mrb[24].mxu1 %vm530_vm3, %v8798_v35  ;;  %v1088_v25 = vrot.slane %v10353_v34, 1 }
 0x187   : > { %6416 = vmatprep.mubr.msk.bf16.mxu1 %vm7912_vm1, %v10330_v19 }
 0x188   : > { %v8858_v48 = vsel %vm1016_vm2, %v1085_v30, %v1088_v25  ;;  %v1092_v38 = vor.u32 %v10354_v29, %v1088_v25  ;;  %v1109_v30 = vrot.slane %v10359_v12, 1 }
 0x18a   : > { %v8876_v11 = vsel %vm1016_vm2, %v1092_v38, %v1095_v50 }
 0x18c   : > { %6615 = vmatmul.mubr.msk.bf16.gmra.mrb[40].mxu0 %vm530_vm3, %v8641_v31  ;;  %v1943_v31 = vrot.slane %v1941_v21, 1 }
 0x18d   : > { %6618 = vmatprep.mubr.msk.bf16.mxu0 %vm7912_vm1, %v10330_v19 }
 0x18e   : > { %6417 = vmatmul.mubr.msk.bf16.gmra.mrb[28].mxu1 %vm530_vm3, %v8813_v33  ;;  %v1947_v52 = vor.u32 %v1945_v2, %v1943_v31 }
 0x18f   : > { %6420 = vmatprep.mubr.msk.bf16.mxu1 %vm7912_vm1, %v10330_v19 }
 0x190   : > { %v1952_v59 = vsel %vm1016_vm2, %v1947_v52, %v1951_v49  ;;  %v8996_v49 = vld [vmem:[%s7994_s11 + $0x98] sm:$0xf] }
 0x191   : > { %v5709_v14 = vcombine.low %v8996_v49, %v8996_v49 }
 0x193   : > { %v2210_v8 = vshrl.u32 %v5709_v14, 16  ;;  %v2213_v16 = vshll.u32 %v5709_v14, 16 }
 0x194   : > { %6619 = vmatmul.mubr.msk.bf16.gmra.mrb[44].mxu0 %vm530_vm3, %v8653_v7  ;;  %v1944_v7 = vsel %vm1016_vm2, %v1940_v26, %v1943_v31  ;;  %v10361_v26 = vshll.u32 %v8333_v6, 16 }
 0x195   : > { %6622 = vmatprep.mubr.msk.bf16.mxu0 %vm7912_vm1, %v10330_v19  ;;  %v2215_v39 = vrot.slane %v2213_v16, 4 }
 0x196   : > { %6421 = vmatmul.mubr.msk.bf16.gmra.mrb[32].mxu1 %vm530_vm3, %v8831_v44  ;;  %v1116_v31 = vrot.slane %v10361_v26, 1 }
 0x197   : > { %6424 = vmatprep.mubr.msk.bf16.mxu1 %vm7912_vm1, %v10330_v19 }
 0x198   : > { %v8938_v29 = vor.u32 %v10362_v60, %v1116_v31 }
 0x19c   : > { %6623 = vmatmul.mubr.msk.bf16.gmra.mrb[48].mxu0 %vm530_vm3, %v1937_v17  ;;  %v1106_v17 = vor.u32 %v10358_v37, %v1102_v55  ;;  %v2212_v55 = vrot.slane %v2210_v8, 3 }
 0x19d   : > { %6626 = vmatprep.mubr.msk.bf16.mxu0 %vm7912_vm1, %v10330_v19 }
 0x19e   : > { %6425 = vmatmul.mubr.msk.bf16.gmra.mrb[36].mxu1 %vm530_vm3, %v8858_v48  ;;  %v8911_v34 = vsel %vm1016_vm2, %v1106_v17, %v1109_v30 }
 0x19f   : > { %6428 = vmatprep.mubr.msk.bf16.mxu1 %vm7912_vm1, %v10330_v19 }
 0x1a4   : > { %6627 = vmatmul.mubr.msk.bf16.gmra.mrb[52].mxu0 %vm530_vm3, %v1944_v7 }
 0x1a5   : > { %6630 = vmatprep.mubr.msk.bf16.mxu0 %vm7912_vm1, %v10330_v19 }
 0x1a6   : > { %6429 = vmatmul.mubr.msk.bf16.gmra.mrb[40].mxu1 %vm530_vm3, %v8876_v11 }
 0x1a7   : > { %6432 = vmatprep.mubr.msk.bf16.mxu1 %vm7912_vm1, %v10330_v19 }
 0x1ac   : > { %6631 = vmatmul.mubr.msk.bf16.gmra.mrb[56].mxu0 %vm530_vm3, %v1952_v59 }
 0x1ad   : > { %6636 = vmatprep.mubr.msk.bf16.mxu0 %vm7912_vm1, %v10330_v19 }
 0x1ae   : > { %6433 = vmatmul.mubr.msk.bf16.gmra.mrb[44].mxu1 %vm530_vm3, %v8891_v46 }
 0x1af   : > { %6436 = vmatprep.mubr.msk.bf16.mxu1 %vm7912_vm1, %v10330_v19 }
 0x1b4   : > { %6637 = vmatmul.mubr.msk.bf16.vlgmr.msra.gmra.mrb[0].mxu0 %vm530_vm3, %v8376_v18  ;;  %v10360_v18 = vshrl.u32 %v8303_v3, 16 }
 0x1b5   : > { %6697 = vmatpush3.bf16.msra.mxu0 %v2429_v40  ;;  %6640 = vmatprep.mubr.msk.bf16.mxu0 %vm7912_vm1, %v10330_v19  ;;  %v2216_v40 = vor.u32 %v2215_v39, %v2212_v55 }
 0x1b6   : > { %6758 = vmatprep.subr.bf16.mxu0 %v10330_v19  ;;  %6437 = vmatmul.mubr.msk.bf16.gmra.mrb[48].mxu1 %vm530_vm3, %v8911_v34  ;;  %v1113_v25 = vor.u32 %v10360_v18, %v1109_v30  ;;  %v5743_v18 = vld [vmem:[%s10200_s1 + $0x10] sm:$0x3] }
 0x1b7   : > { %6440 = vmatprep.mubr.msk.bf16.mxu1 %vm7912_vm1, %v10330_v19  ;;  %v2654_v26 = vsel %vm576_vm0, %v5743_v18, 0 }
 0x1b8   : > { %v8926_v54 = vsel %vm1016_vm2, %v1113_v25, %v1116_v31 }
 0x1bc   : > { %6641 = vmatmul.mubr.msk.bf16.gmra.mrb[4].mxu0 %vm530_vm3, %v8397_v22  ;;  %v5638_v22 = vcombine.low %v8345_v45, %v8345_v45  ;;  %v10364_v45 = vld [vmem:[#allocation31_spill] sm:$0xff] }
 0x1bd   : > { %6644 = vmatprep.mubr.msk.bf16.mxu0 %vm7912_vm1, %v10330_v19 }
 0x1be   : > { %6441 = vmatmul.mubr.msk.bf16.gmra.mrb[52].mxu1 %vm530_vm3, %v8926_v54  ;;  %v1122_v7 = vshll.u32 %v5638_v22, 16 }
 0x1bf   : > { %6444 = vmatprep.mubr.msk.bf16.mxu1 %vm7912_vm1, %v10330_v19 }
 0x1c0   : > { %v1124_v38 = vrot.slane %v1122_v7, 1 }
 0x1c2   : > { %v1125_v42 = vsel %vm1016_vm2, %v8938_v29, %v1124_v38 }
 0x1c4   : > { %6645 = vmatmul.mubr.msk.bf16.gmra.mrb[8].mxu0 %vm530_vm3, %v8418_v62  ;;  %v8982_v62 = vld [vmem:[%s7994_s11 + $0x94] sm:$0xf] }
 0x1c5   : > { %6648 = vmatprep.mubr.msk.bf16.mxu0 %vm7912_vm1, %v10330_v19  ;;  %v5708_v9 = vcombine.low %v8842_v10, %v8982_v62 }
 0x1c6   : > { %6445 = vmatmul.mubr.msk.bf16.gmra.mrb[56].mxu1 %vm530_vm3, %v1125_v42 }
 0x1c7   : > { %v2201_v50 = vshrl.u32 %v5708_v9, 16  ;;  %v2204_v52 = vshll.u32 %v5708_v9, 16 }
 0x1c9   : > { %v2203_v59 = vrot.slane %v2201_v50, 3 }
 0x1cc   : > { %6649 = vmatmul.mubr.msk.bf16.gmra.mrb[12].mxu0 %vm530_vm3, %v8442_v56 }
 0x1cd   : > { %6652 = vmatprep.mubr.msk.bf16.mxu0 %vm7912_vm1, %v10330_v19 }
 0x1d4   : > { %6653 = vmatmul.mubr.msk.bf16.gmra.mrb[16].mxu0 %vm530_vm3, %v8471_v36  ;;  %v2196_v36 = vrot.slane %v1945_v2, 3  ;;  %v2206_v2 = vrot.slane %v2204_v52, 4 }
 0x1d5   : > { %6656 = vmatprep.mubr.msk.bf16.mxu0 %vm7912_vm1, %v10330_v19 }
 0x1d9   : > { %v9010_v17 = vpop.f32.mrb[0].mxu1 }
 0x1da   : > { %v6328_v12 = vpop.f32.mrb[1].mxu1 }
 0x1db   : > { %v9014_v30 = vpop.f32.mrb[2].mxu1 }
 0x1dc   : > { %6657 = vmatmul.mubr.msk.bf16.gmra.mrb[20].mxu0 %vm530_vm3, %v8495_v58  ;;  %v10363_v58 = vld [vmem:[#allocation30_spill] sm:$0xff]  ;;  %v6329_v25 = vpop.f32.mrb[3].mxu1 }
 0x1dd   : > { %6660 = vmatprep.mubr.msk.bf16.mxu0 %vm7912_vm1, %v10330_v19 }
 0x1e1   : > { %v9022_v31 = vpop.f32.mrb[4].mxu1 }
 0x1e2   : > { %v6332_v22 = vpop.f32.mrb[5].mxu1 }
 0x1e3   : > { %v9026_v7 = vpop.f32.mrb[6].mxu1 }
 0x1e4   : > { %6661 = vmatmul.mubr.msk.bf16.gmra.mrb[24].mxu0 %vm530_vm3, %v8519_v13  ;;  %v2192_v13 = vrot.slane %v1938_v57, 3  ;;  %v2197_v57 = vrot.slane %v1941_v21, 4  ;;  %v2207_v21 = vor.u32 %v2206_v2, %v2203_v59  ;;  %v6333_v60 = vpop.f32.mrb[7].mxu1 }
 0x1e5   : > { %6664 = vmatprep.mubr.msk.bf16.mxu0 %vm7912_vm1, %v10330_v19 }
 0x1e6   : > { %v2217_v37 = vsel %vm386_vm4, %v2207_v21, %v2216_v40 }
 0x1e9   : > { %v9030_v38 = vpop.f32.mrb[8].mxu1 }
 0x1ea   : > { %v6336_v42 = vpop.f32.mrb[9].mxu1 }
 0x1ec   : > { %6665 = vmatmul.mubr.msk.bf16.gmra.mrb[28].mxu0 %vm530_vm3, %v8543_v15  ;;  %v2193_v15 = vrot.slane %v1934_v5, 4  ;;  %v2198_v5 = vor.u32 %v2197_v57, %v2196_v36 }
 0x1ed   : > { %6668 = vmatprep.mubr.msk.bf16.mxu0 %vm7912_vm1, %v10330_v19 }
 0x1ee   : > { %v2208_v1 = vsel %vm386_vm4, %v2198_v5, %v2207_v21 }
 0x1f4   : > { %6669 = vmatmul.mubr.msk.bf16.gmra.mrb[32].mxu0 %vm530_vm3, %v8565_v23  ;;  %v2194_v23 = vor.u32 %v2193_v15, %v2192_v13 }
 0x1f5   : > { %6672 = vmatprep.mubr.msk.bf16.mxu0 %vm7912_vm1, %v10330_v19 }
 0x1f6   : > { %v2195_v56 = vsel %vm386_vm4, %v8596_v20, %v2194_v23  ;;  %v2199_v20 = vsel %vm386_vm4, %v2194_v23, %v2198_v5 }
 0x1fc   : > { %6673 = vmatmul.mubr.msk.bf16.gmra.mrb[36].mxu0 %vm530_vm3, %v10363_v58 }
 0x1fd   : > { %6676 = vmatprep.mubr.msk.bf16.mxu0 %vm7912_vm1, %v10330_v19 }
 0x204   : > { %6677 = vmatmul.mubr.msk.bf16.gmra.mrb[40].mxu0 %vm530_vm3, %v10364_v45 }
 0x205   : > { %6680 = vmatprep.mubr.msk.bf16.mxu0 %vm7912_vm1, %v10330_v19 }
 0x20c   : > { %6681 = vmatmul.mubr.msk.bf16.gmra.mrb[44].mxu0 %vm530_vm3, %v2195_v56 }
 0x20d   : > { %6684 = vmatprep.mubr.msk.bf16.mxu0 %vm7912_vm1, %v10330_v19 }
 0x214   : > { %6685 = vmatmul.mubr.msk.bf16.gmra.mrb[48].mxu0 %vm530_vm3, %v2199_v20 }
 0x215   : > { %6688 = vmatprep.mubr.msk.bf16.mxu0 %vm7912_vm1, %v10330_v19 }
 0x21c   : > { %6689 = vmatmul.mubr.msk.bf16.gmra.mrb[52].mxu0 %vm530_vm3, %v2208_v1 }
 0x21d   : > { %6692 = vmatprep.mubr.msk.bf16.mxu0 %vm7912_vm1, %v10330_v19 }
 0x224   : > { %6693 = vmatmul.mubr.msk.bf16.gmra.mrb[56].mxu0 %vm530_vm3, %v2217_v37 }
 0x225   : > { %6698 = vmatprep.mubr.msk.bf16.mxu0 %vm7912_vm1, %v10330_v19 }
 0x22c   : > { %6699 = vmatmul.mubr.msk.bf16.vlgmr.msra.gmra.mrb[0].mxu0 %vm530_vm3, %v8059_v32  ;;  %v9034_v32 = vpop.f32.mrb[10].mxu1 }
 0x22d   : > { %6759 = vmatpush3.bf16.msra.mxu0 %v2654_v26  ;;  %6702 = vmatprep.mubr.msk.bf16.mxu0 %vm7912_vm1, %v10330_v19  ;;  %v6337_v58 = vpop.f32.mrb[11].mxu1  ;;  %v9110_v26 = vcombine.low %v8982_v62, %v8996_v49 }
 0x22e   : > { %v9038_v13 = vpop.f32.mrb[12].mxu1 }
 0x22f   : > { %v6340_v15 = vpop.f32.mrb[13].mxu1 }
 0x230   : > { %v9042_v45 = vpop.f32.mrb[14].mxu1 }
 0x234   : > { %6703 = vmatmul.mubr.msk.bf16.gmra.mrb[4].mxu0 %vm530_vm3, %v8081_v43  ;;  %v6341_v43 = vpop.f32.mrb[15].mxu1 }
 0x235   : > { %6706 = vmatprep.mubr.msk.bf16.mxu0 %vm7912_vm1, %v10330_v19  ;;  %v9046_v23 = vpop.f32.mrb[16].mxu1 }
 0x236   : > { %v6344_v56 = vpop.f32.mrb[17].mxu1 }
 0x237   : > { %v9050_v36 = vpop.f32.mrb[18].mxu1  ;;  %v10365_v56 = vld [vmem:[#allocation29_spill] sm:$0xff] }
 0x23c   : > { %6707 = vmatmul.mubr.msk.bf16.gmra.mrb[8].mxu0 %vm530_vm3, %v8050_v27  ;;  %v6345_v27 = vpop.f32.mrb[19].mxu1 }
 0x23d   : > { %6710 = vmatprep.mubr.msk.bf16.mxu0 %vm7912_vm1, %v10330_v19 }
 0x244   : > { %6711 = vmatmul.mubr.msk.bf16.gmra.mrb[12].mxu0 %vm530_vm3, %v8140_v24 }
 0x245   : > { %6714 = vmatprep.mubr.msk.bf16.mxu0 %vm7912_vm1, %v10330_v19 }
 0x24c   : > { %6715 = vmatmul.mubr.msk.bf16.gmra.mrb[16].mxu0 %vm530_vm3, %v8164_v41 }
 0x24d   : > { %6718 = vmatprep.mubr.msk.bf16.mxu0 %vm7912_vm1, %v10330_v19 }
 0x251   : > { %v9056_v57 = vpop.f32.mrb[20].mxu1 }
 0x252   : > { %v6410_v9 = vpop.f32.mrb[21].mxu1 }
 0x253   : > { %v9060_v24 = vpop.f32.mrb[22].mxu1 }
 0x254   : > { %6719 = vmatmul.mubr.msk.bf16.gmra.mrb[20].mxu0 %vm530_vm3, %v8188_v53  ;;  %v6411_v5 = vpop.f32.mrb[23].mxu1 }
 0x255   : > { %6722 = vmatprep.mubr.msk.bf16.mxu0 %vm7912_vm1, %v10330_v19 }
 0x259   : > { %v9064_v50 = vpop.f32.mrb[24].mxu1 }
 0x25a   : > { %v6414_v52 = vpop.f32.mrb[25].mxu1 }
 0x25b   : > { %v9068_v41 = vpop.f32.mrb[26].mxu1 }
 0x25c   : > { %6723 = vmatmul.mubr.msk.bf16.gmra.mrb[24].mxu0 %vm530_vm3, %v8208_v0  ;;  %v6415_v20 = vpop.f32.mrb[27].mxu1 }
 0x25d   : > { %6726 = vmatprep.mubr.msk.bf16.mxu0 %vm7912_vm1, %v10330_v19 }
 0x261   : > { %v9072_v59 = vpop.f32.mrb[28].mxu1 }
 0x262   : > { %v6418_v53 = vpop.f32.mrb[29].mxu1 }
 0x263   : > { %v9076_v2 = vpop.f32.mrb[30].mxu1 }
 0x264   : > { %6727 = vmatmul.mubr.msk.bf16.gmra.mrb[28].mxu0 %vm530_vm3, %v8228_v28  ;;  %v6419_v14 = vpop.f32.mrb[31].mxu1 }
 0x265   : > { %6730 = vmatprep.mubr.msk.bf16.mxu0 %vm7912_vm1, %v10330_v19 }
 0x269   : > { %v9080_v21 = vpop.f32.mrb[32].mxu1 }
 0x26a   : > { %v6422_v0 = vpop.f32.mrb[33].mxu1 }
 0x26b   : > { %v9084_v8 = vpop.f32.mrb[34].mxu1 }
 0x26c   : > { %6731 = vmatmul.mubr.msk.bf16.gmra.mrb[32].mxu0 %vm530_vm3, %v8248_v61  ;;  %v6423_v16 = vpop.f32.mrb[35].mxu1 }
 0x26d   : > { %6734 = vmatprep.mubr.msk.bf16.mxu0 %vm7912_vm1, %v10330_v19 }
 0x271   : > { %v9088_v1 = vpop.f32.mrb[36].mxu1 }
 0x272   : > { %v6426_v28 = vpop.f32.mrb[37].mxu1 }
 0x273   : > { %v9092_v55 = vpop.f32.mrb[38].mxu1  ;;  %v10366_v28 = vld [vmem:[#allocation9_spill] sm:$0xff] }
 0x274   : > { %6735 = vmatmul.mubr.msk.bf16.gmra.mrb[36].mxu0 %vm530_vm3, %v8277_v4  ;;  %v6427_v39 = vpop.f32.mrb[39].mxu1  ;;  %v5726_v4 = vcombine.low %v8373_v51, %v8842_v10  ;;  %v2629_v51 = vshll.u32 %v9110_v26, 16 }
 0x275   : > { %6738 = vmatprep.mubr.msk.bf16.mxu0 %vm7912_vm1, %v10330_v19  ;;  %v10367_v39 = vld [vmem:[#allocation10_spill] sm:$0xff] }
 0x276   : > { %v2622_v18 = vshll.u32 %v5726_v4, 16  ;;  %v2626_v58 = vshrl.u32 %v5726_v4, 16  ;;  %v2631_v15 = vrot.slane %v2629_v51, 1 }
 0x278   : > { %v2624_v60 = vrot.slane %v2622_v18, 1 }
 0x279   : > { %v9096_v40 = vpop.f32.mrb[40].mxu1 }
 0x27a   : > { %v6430_v61 = vpop.f32.mrb[41].mxu1  ;;  %v2628_v10 = vor.u32 %v2626_v58, %v2624_v60 }
 0x27b   : > { %v9100_v37 = vpop.f32.mrb[42].mxu1 }
 0x27c   : > { %6739 = vmatmul.mubr.msk.bf16.gmra.mrb[40].mxu0 %vm530_vm3, %v8303_v3  ;;  %v6431_v12 = vpop.f32.mrb[43].mxu1  ;;  %v2632_v43 = vsel %vm1016_vm2, %v2628_v10, %v2631_v15 }
 0x27d   : > { %6742 = vmatprep.mubr.msk.bf16.mxu0 %vm7912_vm1, %v10330_v19 }
 0x281   : > { %v9106_v25 = vpop.f32.mrb[44].mxu1 }
 0x282   : > { %v6434_v22 = vpop.f32.mrb[45].mxu1 }
 0x283   : > { %v9114_v3 = vpop.f32.mrb[46].mxu1 }
 0x284   : > { %6743 = vmatmul.mubr.msk.bf16.gmra.mrb[44].mxu0 %vm530_vm3, %v8333_v6  ;;  %v6435_v42 = vpop.f32.mrb[47].mxu1 }
 0x285   : > { %6746 = vmatprep.mubr.msk.bf16.mxu0 %vm7912_vm1, %v10330_v19 }
 0x289   : > { %v9120_v62 = vpop.f32.mrb[48].mxu1 }
 0x28a   : > { %v6438_v49 = vpop.f32.mrb[49].mxu1 }
 0x28b   : > { %v9124_v6 = vpop.f32.mrb[50].mxu1 }
 0x28c   : > { %6747 = vmatmul.mubr.msk.bf16.gmra.mrb[48].mxu0 %vm530_vm3, %v10365_v56  ;;  %v6439_v27 = vpop.f32.mrb[51].mxu1 }
 0x28d   : > { %6750 = vmatprep.mubr.msk.bf16.mxu0 %vm7912_vm1, %v10330_v19 }
 0x291   : > { %v9128_v9 = vpop.f32.mrb[52].mxu1 }
 0x292   : > { %v6442_v5 = vpop.f32.mrb[53].mxu1 }
 0x293   : > { %v9131_v52 = vpop.f32.mrb[54].mxu1 }
 0x294   : > { %6751 = vmatmul.mubr.msk.bf16.gmra.mrb[52].mxu0 %vm530_vm3, %v5726_v4  ;;  %v6443_v20 = vpop.f32.mrb[55].mxu1  ;;  %v9210_v4 = vld [vmem:[%s10201_s2] ss:$0 sm:$0xff] }
 0x295   : > { %6754 = vmatprep.mubr.msk.bf16.mxu0 %vm7912_vm1, %v10330_v19  ;;  %v7056_v18 = vadd.f32 %v9210_v4, %v9010_v17  ;;  %v7058_v22 = vadd.f32 %v9210_v4, %v9014_v30  ;;  %v7060_v49 = vadd.f32 %v9210_v4, %v9022_v31  ;;  %v7062_v27 = vadd.f32 %v9210_v4, %v9026_v7 }
 0x296   : > { %v7064_v31 = vadd.f32 %v9210_v4, %v9030_v38  ;;  %v7066_v7 = vadd.f32 %v9210_v4, %v9034_v32  ;;  %v7068_v38 = vadd.f32 %v9210_v4, %v9038_v13  ;;  %v7070_v32 = vadd.f32 %v9210_v4, %v9042_v45 }
 0x297   : > { %v7072_v13 = vadd.f32 %v9210_v4, %v9046_v23  ;;  %v7074_v45 = vadd.f32 %v9210_v4, %v9050_v36  ;;  %v7076_v23 = vadd.f32 %v9210_v4, %v9056_v57  ;;  %v7078_v36 = vadd.f32 %v9210_v4, %v9060_v24 }
 0x298   : > { %v7080_v57 = vadd.f32 %v9210_v4, %v9064_v50  ;;  %v7082_v24 = vadd.f32 %v9210_v4, %v9068_v41  ;;  %v7084_v50 = vadd.f32 %v9210_v4, %v9072_v59  ;;  %v7086_v41 = vadd.f32 %v9210_v4, %v9076_v2 }
 0x299   : > { %v9135_v53 = vpop.f32.mrb[56].mxu1  ;;  %v7088_v59 = vadd.f32 %v9210_v4, %v9080_v21  ;;  %v7090_v2 = vadd.f32 %v9210_v4, %v9084_v8  ;;  %v7092_v21 = vadd.f32 %v9210_v4, %v9088_v1  ;;  %v7094_v8 = vadd.f32 %v9210_v4, %v9092_v55 }
 0x29a   : > { %v6446_v14 = vpop.f32.mrb[57].mxu1  ;;  %v7096_v1 = vadd.f32 %v9210_v4, %v9096_v40  ;;  %v7098_v55 = vadd.f32 %v9210_v4, %v9100_v37  ;;  %v7100_v40 = vadd.f32 %v9210_v4, %v9106_v25  ;;  %v7102_v37 = vadd.f32 %v9210_v4, %v9114_v3 }
 0x29b   : > { %v9139_v0 = vpop.f32.mrb[58].mxu1  ;;  %v7104_v25 = vadd.f32 %v9210_v4, %v9120_v62  ;;  %v7106_v3 = vadd.f32 %v9210_v4, %v9124_v6  ;;  %v7108_v62 = vadd.f32 %v9210_v4, %v9128_v9  ;;  %v7110_v6 = vadd.f32 %v9210_v4, %v9131_v52 }
 0x29c   : > { %6755 = vmatmul.mubr.msk.bf16.gmra.mrb[56].mxu0 %vm530_vm3, %v9110_v26  ;;  %v6447_v16 = vpop.f32.mrb[59].mxu1  ;;  %v7112_v9 = vadd.f32 %v9210_v4, %v9135_v53  ;;  %v7114_v52 = vadd.f32 %v9210_v4, %v9139_v0 }
 0x29d   : > { %6760 = vmatprep.mubr.msk.bf16.mxu0 %vm7912_vm1, %v10330_v19 }
 0x2a4   : > { %6761 = vmatmul.mubr.msk.bf16.vlgmr.msra.gmra.mrb[0].mxu0 %vm530_vm3, %v10366_v28 }
 0x2a5   : > { %6764 = vmatprep.mubr.msk.bf16.mxu0 %vm7912_vm1, %v10330_v19 }
 0x2ac   : > { %6765 = vmatmul.mubr.msk.bf16.gmra.mrb[4].mxu0 %vm530_vm3, %v10367_v39 }
 0x2ad   : > { %6768 = vmatprep.mubr.msk.bf16.mxu0 %vm7912_vm1, %v10330_v19 }
 0x2b4   : > { %6769 = vmatmul.mubr.msk.bf16.gmra.mrb[8].mxu0 %vm530_vm3, %v8783_v47  ;;  %v10368_v47 = vshll.u32 %v10365_v56, 16 }
 0x2b5   : > { %6772 = vmatprep.mubr.msk.bf16.mxu0 %vm7912_vm1, %v10330_v19 }
 0x2bc   : > { %6773 = vmatmul.mubr.msk.bf16.gmra.mrb[12].mxu0 %vm530_vm3, %v8798_v35  ;;  %v2619_v35 = vrot.slane %v10368_v47, 1 }
 0x2bd   : > { %6776 = vmatprep.mubr.msk.bf16.mxu0 %vm7912_vm1, %v10330_v19 }
 0x2c4   : > { %6777 = vmatmul.mubr.msk.bf16.gmra.mrb[16].mxu0 %vm530_vm3, %v8813_v33  ;;  %v2620_v33 = vsel %vm1016_vm2, %v8938_v29, %v2619_v35 }
 0x2c5   : > { %6780 = vmatprep.mubr.msk.bf16.mxu0 %vm7912_vm1, %v10330_v19 }
 0x2cc   : > { %6781 = vmatmul.mubr.msk.bf16.gmra.mrb[20].mxu0 %vm530_vm3, %v8831_v44  ;;  %v10369_v44 = vshrl.u32 %v10365_v56, 16 }
 0x2cd   : > { %6784 = vmatprep.mubr.msk.bf16.mxu0 %vm7912_vm1, %v10330_v19 }
 0x2d4   : > { %6785 = vmatmul.mubr.msk.bf16.gmra.mrb[24].mxu0 %vm530_vm3, %v8858_v48  ;;  %v2621_v48 = vor.u32 %v2619_v35, %v10369_v44 }
 0x2d5   : > { %6788 = vmatprep.mubr.msk.bf16.mxu0 %vm7912_vm1, %v10330_v19 }
 0x2dc   : > { %6789 = vmatmul.mubr.msk.bf16.gmra.mrb[28].mxu0 %vm530_vm3, %v8876_v11  ;;  %v2625_v11 = vsel %vm1016_vm2, %v2621_v48, %v2624_v60 }
 0x2dd   : > { %6792 = vmatprep.mubr.msk.bf16.mxu0 %vm7912_vm1, %v10330_v19 }
 0x2e4   : > { %6793 = vmatmul.mubr.msk.bf16.gmra.mrb[32].mxu0 %vm530_vm3, %v8891_v46  ;;  %v7848_v46 = vld [vmem:[%s7994_s11 + $0x9c] ss:$0 sps:$4 sm:$0xff]  }
 0x2e5   : > { %6796 = vmatprep.mubr.msk.bf16.mxu0 %vm7912_vm1, %v10330_v19 }
 0x2ec   : > { %6797 = vmatmul.mubr.msk.bf16.gmra.mrb[36].mxu0 %vm530_vm3, %v8911_v34  ;;  %v2633_v34 = vshrl.u32 %v9110_v26, 16 }
 0x2ed   : > { %6800 = vmatprep.mubr.msk.bf16.mxu0 %vm7912_vm1, %v10330_v19 }
 0x2ee   : > { %v2635_v29 = vor.u32 %v2633_v34, %v2631_v15 }
 0x2f4   : > { %6801 = vmatmul.mubr.msk.bf16.gmra.mrb[40].mxu0 %vm530_vm3, %v8926_v54  ;;  %v2637_v54 = vshll.u32 %v7848_v46, 16 }
 0x2f5   : > { %6804 = vmatprep.mubr.msk.bf16.mxu0 %vm7912_vm1, %v10330_v19 }
 0x2f6   : > { %v2639_v61 = vrot.slane %v2637_v54, 1 }
 0x2f8   : > { %v2640_v12 = vsel %vm1016_vm2, %v2635_v29, %v2639_v61 }
 0x2fc   : > { %6805 = vmatmul.mubr.msk.bf16.gmra.mrb[44].mxu0 %vm530_vm3, %v2620_v33 }
 0x2fd   : > { %6808 = vmatprep.mubr.msk.bf16.mxu0 %vm7912_vm1, %v10330_v19 }
 0x304   : > { %6809 = vmatmul.mubr.msk.bf16.gmra.mrb[48].mxu0 %vm530_vm3, %v2625_v11 }
 0x305   : > { %6812 = vmatprep.mubr.msk.bf16.mxu0 %vm7912_vm1, %v10330_v19 }
 0x30c   : > { %6813 = vmatmul.mubr.msk.bf16.gmra.mrb[52].mxu0 %vm530_vm3, %v2632_v43 }
 0x30d   : > { %6816 = vmatprep.mubr.msk.bf16.mxu0 %vm7912_vm1, %v10330_v19 }
 0x314   : > { %6817 = vmatmul.mubr.msk.bf16.gmra.mrb[56].mxu0 %vm530_vm3, %v2640_v12 }
 0x377   : > { %v2690_v26 = vpop.f32.mrb[0].mxu0 }
 0x378   : > { %v7057_v60 = vadd.f32 %v7056_v18, %v2690_v26  ;;  %v6762_v19 = vpop.f32.mrb[1].mxu0 }
 0x379   : > { %v2693_v42 = vpop.f32.mrb[2].mxu0 }
 0x37a   : > { %v2839_v58 = vmax.f32 %v7057_v60, 0.0  ;;  %v7059_v51 = vadd.f32 %v7058_v22, %v2693_v42  ;;  %v6763_v10 = vpop.f32.mrb[3].mxu0 }
 0x37c   : > { %v5971_v15 = vpack.c.bf16 %v2839_v58, %v2839_v58  ;;  %v2840_v43 = vmax.f32 %v7059_v51, 0.0 }
 0x37e   : > { %2991 = vst.msk [vmem:[#allocation2 + $0xc] sm:$0xf] %vm2990_vm5, %v5971_v15  ;;  %v5972_v56 = vpack.c.bf16 %v2840_v43, %v2840_v43 }
 0x37f   : > { %v2698_v17 = vpop.f32.mrb[4].mxu0 }
 0x380   : > { %2992 = vst.msk [vmem:[#allocation2 + $0x10] sm:$0xf] %vm2990_vm5, %v5972_v56  ;;  %v7061_v30 = vadd.f32 %v7060_v49, %v2698_v17  ;;  %v6766_v5 = vpop.f32.mrb[5].mxu0 }
 0x381   : > { %v2701_v20 = vpop.f32.mrb[6].mxu0 }
 0x382   : > { %v2841_v14 = vmax.f32 %v7061_v30, 0.0  ;;  %v7063_v16 = vadd.f32 %v7062_v27, %v2701_v20  ;;  %v6767_v28 = vpop.f32.mrb[7].mxu0 }
 0x384   : > { %v5973_v39 = vpack.c.bf16 %v2841_v14, %v2841_v14  ;;  %v2842_v47 = vmax.f32 %v7063_v16, 0.0 }
 0x386   : > { %2993 = vst.msk [vmem:[#allocation2 + $0x14] sm:$0xf] %vm2990_vm5, %v5973_v39  ;;  %v5974_v35 = vpack.c.bf16 %v2842_v47, %v2842_v47 }
 0x387   : > { %v2706_v33 = vpop.f32.mrb[8].mxu0 }
 0x388   : > { %2994 = vst.msk [vmem:[#allocation2 + $0x18] sm:$0xf] %vm2990_vm5, %v5974_v35  ;;  %v7065_v44 = vadd.f32 %v7064_v31, %v2706_v33  ;;  %v6770_v48 = vpop.f32.mrb[9].mxu0 }
 0x389   : > { %v2709_v11 = vpop.f32.mrb[10].mxu0 }
 0x38a   : > { %v2843_v46 = vmax.f32 %v7065_v44, 0.0  ;;  %v7067_v34 = vadd.f32 %v7066_v7, %v2709_v11  ;;  %v6771_v54 = vpop.f32.mrb[11].mxu0 }
 0x38c   : > { %v5975_v29 = vpack.c.bf16 %v2843_v46, %v2843_v46  ;;  %v2844_v61 = vmax.f32 %v7067_v34, 0.0 }
 0x38e   : > { %2995 = vst.msk [vmem:[#allocation2 + $0x1c] sm:$0xf] %vm2990_vm5, %v5975_v29  ;;  %v5976_v12 = vpack.c.bf16 %v2844_v61, %v2844_v61 }
 0x38f   : > { %v2714_v18 = vpop.f32.mrb[12].mxu0 }
 0x390   : > { %2996 = vst.msk [vmem:[#allocation2 + $0x20] sm:$0xf] %vm2990_vm5, %v5976_v12  ;;  %v7069_v26 = vadd.f32 %v7068_v38, %v2714_v18  ;;  %v6774_v22 = vpop.f32.mrb[13].mxu0 }
 0x391   : > { %v2717_v60 = vpop.f32.mrb[14].mxu0 }
 0x392   : > { %v2845_v19 = vmax.f32 %v7069_v26, 0.0  ;;  %v7071_v42 = vadd.f32 %v7070_v32, %v2717_v60  ;;  %v6775_v58 = vpop.f32.mrb[15].mxu0 }
 0x394   : > { %v5977_v51 = vpack.c.bf16 %v2845_v19, %v2845_v19  ;;  %v2846_v10 = vmax.f32 %v7071_v42, 0.0 }
 0x396   : > { %2997 = vst.msk [vmem:[#allocation2 + $0x24] sm:$0xf] %vm2990_vm5, %v5977_v51  ;;  %v5978_v15 = vpack.c.bf16 %v2846_v10, %v2846_v10 }
 0x397   : > { %v2722_v43 = vpop.f32.mrb[16].mxu0 }
 0x398   : > { %2998 = vst.msk [vmem:[#allocation2 + $0x28] sm:$0xf] %vm2990_vm5, %v5978_v15  ;;  %v7073_v49 = vadd.f32 %v7072_v13, %v2722_v43  ;;  %v6778_v56 = vpop.f32.mrb[17].mxu0 }
 0x399   : > { %v2725_v17 = vpop.f32.mrb[18].mxu0 }
 0x39a   : > { %v2847_v27 = vmax.f32 %v7073_v49, 0.0  ;;  %v7075_v30 = vadd.f32 %v7074_v45, %v2725_v17  ;;  %v6779_v5 = vpop.f32.mrb[19].mxu0 }
 0x39c   : > { %v5979_v20 = vpack.c.bf16 %v2847_v27, %v2847_v27  ;;  %v2848_v14 = vmax.f32 %v7075_v30, 0.0 }
 0x39e   : > { %2999 = vst.msk [vmem:[#allocation2 + $0x2c] sm:$0xf] %vm2990_vm5, %v5979_v20  ;;  %v5980_v16 = vpack.c.bf16 %v2848_v14, %v2848_v14 }
 0x39f   : > { %v2730_v28 = vpop.f32.mrb[20].mxu0  ;;  %v3027_v0 = vld [vmem:[#allocation2 + $0x28] sm:$0xf] (!%p5790_p7) }
 0x3a0   : > { %3000 = vst.msk [vmem:[#allocation2 + $0x30] sm:$0xf] %vm2990_vm5, %v5980_v16  ;;  %v7077_v39 = vadd.f32 %v7076_v23, %v2730_v28  ;;  %v6782_v47 = vpop.f32.mrb[21].mxu0  ;;  %3030 = vst.msk [vmem:[#allocation2 + $0x10] sm:$0xf] (!%p5790_p7), %vm2990_vm5, %v3027_v0 }
 0x3a1   : > { %v2733_v31 = vpop.f32.mrb[22].mxu0 }
 0x3a2   : > { %v2849_v35 = vmax.f32 %v7077_v39, 0.0  ;;  %v7079_v33 = vadd.f32 %v7078_v36, %v2733_v31  ;;  %v6783_v7 = vpop.f32.mrb[23].mxu0 }
 0x3a4   : > { %v5981_v44 = vpack.c.bf16 %v2849_v35, %v2849_v35  ;;  %v2850_v48 = vmax.f32 %v7079_v33, 0.0 }
 0x3a5   : > { %v3028_v4 = vld [vmem:[#allocation2 + $0x2c] sm:$0xf] (!%p5790_p7) }
 0x3a6   : > { %3001 = vst.msk [vmem:[#allocation2 + $0x34] sm:$0xf] %vm2990_vm5, %v5981_v44  ;;  %v5982_v11 = vpack.c.bf16 %v2850_v48, %v2850_v48  ;;  %3031 = vst.msk [vmem:[#allocation2 + $0x14] sm:$0xf] (!%p5790_p7), %vm2990_vm5, %v3028_v4 }
 0x3a7   : > { %v2738_v46 = vpop.f32.mrb[24].mxu0 }
 0x3a8   : > { %3002 = vst.msk [vmem:[#allocation2 + $0x38] sm:$0xf] %vm2990_vm5, %v5982_v11  ;;  %v7081_v34 = vadd.f32 %v7080_v57, %v2738_v46  ;;  %v6786_v54 = vpop.f32.mrb[25].mxu0 }
 0x3a9   : > { %v2741_v29 = vpop.f32.mrb[26].mxu0 }
 0x3aa   : > { %v2851_v61 = vmax.f32 %v7081_v34, 0.0  ;;  %v7083_v38 = vadd.f32 %v7082_v24, %v2741_v29  ;;  %v6787_v12 = vpop.f32.mrb[27].mxu0 }
 0x3ac   : > { %v5983_v18 = vpack.c.bf16 %v2851_v61, %v2851_v61  ;;  %v2852_v32 = vmax.f32 %v7083_v38, 0.0 }
 0x3ae   : > { %3003 = vst.msk [vmem:[#allocation2 + $0x3c] sm:$0xf] %vm2990_vm5, %v5983_v18  ;;  %v5984_v26 = vpack.c.bf16 %v2852_v32, %v2852_v32 }
 0x3af   : > { %v2746_v22 = vpop.f32.mrb[28].mxu0 }
 0x3b0   : > { %3004 = vst.msk [vmem:[#allocation2 + $0x40] sm:$0xf] %vm2990_vm5, %v5984_v26  ;;  %v7085_v60 = vadd.f32 %v7084_v50, %v2746_v22  ;;  %v6790_v19 = vpop.f32.mrb[29].mxu0 }
 0x3b1   : > { %v2749_v42 = vpop.f32.mrb[30].mxu0 }
 0x3b2   : > { %v2853_v58 = vmax.f32 %v7085_v60, 0.0  ;;  %v7087_v51 = vadd.f32 %v7086_v41, %v2749_v42  ;;  %v6791_v10 = vpop.f32.mrb[31].mxu0 }
 0x3b4   : > { %v5985_v13 = vpack.c.bf16 %v2853_v58, %v2853_v58  ;;  %v2854_v15 = vmax.f32 %v7087_v51, 0.0 }
 0x3b6   : > { %3005 = vst.msk [vmem:[#allocation2 + $0x44] sm:$0xf] %vm2990_vm5, %v5985_v13  ;;  %v5986_v43 = vpack.c.bf16 %v2854_v15, %v2854_v15 }
 0x3b7   : > { %v2754_v45 = vpop.f32.mrb[32].mxu0 }
 0x3b8   : > { %3006 = vst.msk [vmem:[#allocation2 + $0x48] sm:$0xf] %vm2990_vm5, %v5986_v43  ;;  %v7089_v49 = vadd.f32 %v7088_v59, %v2754_v45  ;;  %v6794_v56 = vpop.f32.mrb[33].mxu0 }
 0x3b9   : > { %v2757_v17 = vpop.f32.mrb[34].mxu0 }
 0x3ba   : > { %v2855_v27 = vmax.f32 %v7089_v49, 0.0  ;;  %v7091_v30 = vadd.f32 %v7090_v2, %v2757_v17  ;;  %v6795_v5 = vpop.f32.mrb[35].mxu0 }
 0x3bc   : > { %v5987_v20 = vpack.c.bf16 %v2855_v27, %v2855_v27  ;;  %v2856_v14 = vmax.f32 %v7091_v30, 0.0 }
 0x3be   : > { %3007 = vst.msk [vmem:[#allocation2 + $0x4c] sm:$0xf] %vm2990_vm5, %v5987_v20  ;;  %v5988_v23 = vpack.c.bf16 %v2856_v14, %v2856_v14 }
 0x3bf   : > { %v2762_v16 = vpop.f32.mrb[36].mxu0 }
 0x3c0   : > { %3008 = vst.msk [vmem:[#allocation2 + $0x50] sm:$0xf] %vm2990_vm5, %v5988_v23  ;;  %v7093_v28 = vadd.f32 %v7092_v21, %v2762_v16  ;;  %v6798_v36 = vpop.f32.mrb[37].mxu0 }
 0x3c1   : > { %v2765_v39 = vpop.f32.mrb[38].mxu0 }
 0x3c2   : > { %v2857_v47 = vmax.f32 %v7093_v28, 0.0  ;;  %v7095_v31 = vadd.f32 %v7094_v8, %v2765_v39  ;;  %v6799_v35 = vpop.f32.mrb[39].mxu0 }
 0x3c4   : > { %v5989_v33 = vpack.c.bf16 %v2857_v47, %v2857_v47  ;;  %v2858_v7 = vmax.f32 %v7095_v31, 0.0 }
 0x3c6   : > { %3009 = vst.msk [vmem:[#allocation2 + $0x54] sm:$0xf] %vm2990_vm5, %v5989_v33  ;;  %v5990_v44 = vpack.c.bf16 %v2858_v7, %v2858_v7 }
 0x3c7   : > { %v2770_v48 = vpop.f32.mrb[40].mxu0 }
 0x3c8   : > { %3010 = vst.msk [vmem:[#allocation2 + $0x58] sm:$0xf] %vm2990_vm5, %v5990_v44  ;;  %v7097_v57 = vadd.f32 %v7096_v1, %v2770_v48  ;;  %v6802_v11 = vpop.f32.mrb[41].mxu0  ;;  %v3026_v1 = vld [vmem:[#allocation2 + $0x24] sm:$0xf] (!%p5790_p7) }
 0x3c9   : > { %v2773_v46 = vpop.f32.mrb[42].mxu0  ;;  %3029 = vst.msk [vmem:[#allocation2 + $0xc] sm:$0xf] (!%p5790_p7), %vm2990_vm5, %v3026_v1 }
 0x3ca   : > { %v2859_v24 = vmax.f32 %v7097_v57, 0.0  ;;  %v7099_v34 = vadd.f32 %v7098_v55, %v2773_v46  ;;  %v6803_v54 = vpop.f32.mrb[43].mxu0 }
 0x3cc   : > { %v5991_v29 = vpack.c.bf16 %v2859_v24, %v2859_v24  ;;  %v2860_v61 = vmax.f32 %v7099_v34, 0.0 }
 0x3ce   : > { %3011 = vst.msk [vmem:[#allocation2 + $0x5c] sm:$0xf] %vm2990_vm5, %v5991_v29  ;;  %v5992_v38 = vpack.c.bf16 %v2860_v61, %v2860_v61 }
 0x3cf   : > { %v2778_v12 = vpop.f32.mrb[44].mxu0 }
 0x3d0   : > { %3012 = vst.msk [vmem:[#allocation2 + $0x60] sm:$0xf] %vm2990_vm5, %v5992_v38  ;;  %v7101_v18 = vadd.f32 %v7100_v40, %v2778_v12  ;;  %v6806_v32 = vpop.f32.mrb[45].mxu0 }
 0x3d1   : > { %v2781_v50 = vpop.f32.mrb[46].mxu0 }
 0x3d2   : > { %v2861_v26 = vmax.f32 %v7101_v18, 0.0  ;;  %v7103_v22 = vadd.f32 %v7102_v37, %v2781_v50  ;;  %v6807_v41 = vpop.f32.mrb[47].mxu0 }
 0x3d4   : > { %v5993_v60 = vpack.c.bf16 %v2861_v26, %v2861_v26  ;;  %v2862_v19 = vmax.f32 %v7103_v22, 0.0 }
 0x3d6   : > { %3013 = vst.msk [vmem:[#allocation2 + $0x64] sm:$0xf] %vm2990_vm5, %v5993_v60  ;;  %v5994_v42 = vpack.c.bf16 %v2862_v19, %v2862_v19 }
 0x3d7   : > { %v2786_v58 = vpop.f32.mrb[48].mxu0 }
 0x3d8   : > { %3014 = vst.msk [vmem:[#allocation2 + $0x68] sm:$0xf] %vm2990_vm5, %v5994_v42  ;;  %v7105_v51 = vadd.f32 %v7104_v25, %v2786_v58  ;;  %v6810_v10 = vpop.f32.mrb[49].mxu0 }
 0x3d9   : > { %v2789_v13 = vpop.f32.mrb[50].mxu0 }
 0x3da   : > { %v2863_v15 = vmax.f32 %v7105_v51, 0.0  ;;  %v7107_v59 = vadd.f32 %v7106_v3, %v2789_v13  ;;  %v6811_v43 = vpop.f32.mrb[51].mxu0 }
 0x3dc   : > { %v5995_v45 = vpack.c.bf16 %v2863_v15, %v2863_v15  ;;  %v2864_v2 = vmax.f32 %v7107_v59, 0.0 }
 0x3de   : > { %3015 = vst.msk [vmem:[#allocation2 + $0x6c] sm:$0xf] %vm2990_vm5, %v5995_v45  ;;  %v5996_v49 = vpack.c.bf16 %v2864_v2, %v2864_v2 }
 0x3df   : > { %v2794_v56 = vpop.f32.mrb[52].mxu0 }
 0x3e0   : > { %3016 = vst.msk [vmem:[#allocation2 + $0x70] sm:$0xf] %vm2990_vm5, %v5996_v49  ;;  %v7109_v17 = vadd.f32 %v7108_v62, %v2794_v56  ;;  %v6814_v27 = vpop.f32.mrb[53].mxu0 }
 0x3e1   : > { %v2797_v30 = vpop.f32.mrb[54].mxu0 }
 0x3e2   : > { %v2865_v5 = vmax.f32 %v7109_v17, 0.0  ;;  %v7111_v20 = vadd.f32 %v7110_v6, %v2797_v30  ;;  %v6815_v14 = vpop.f32.mrb[55].mxu0 }
 0x3e4   : > { %v5997_v21 = vpack.c.bf16 %v2865_v5, %v2865_v5  ;;  %v2866_v23 = vmax.f32 %v7111_v20, 0.0 }
 0x3e6   : > { %3017 = vst.msk [vmem:[#allocation2 + $0x74] sm:$0xf] %vm2990_vm5, %v5997_v21  ;;  %v5998_v16 = vpack.c.bf16 %v2866_v23, %v2866_v23 }
 0x3e7   : > { %v2802_v8 = vpop.f32.mrb[56].mxu0 }
 0x3e8   : > { %3018 = vst.msk [vmem:[#allocation2 + $0x78] sm:$0xf] %vm2990_vm5, %v5998_v16  ;;  %v7113_v28 = vadd.f32 %v7112_v9, %v2802_v8  ;;  %v6818_v36 = vpop.f32.mrb[57].mxu0 }
 0x3e9   : > { %v2805_v39 = vpop.f32.mrb[58].mxu0 }
 0x3ea   : > { %v2867_v47 = vmax.f32 %v7113_v28, 0.0  ;;  %v7115_v31 = vadd.f32 %v7114_v52, %v2805_v39  ;;  %v6819_v35 = vpop.f32.mrb[59].mxu0  ;;  %3024 = sbr.rel (%p5790_p7) target bundleno = 1009 (0x3f1), region = 44 }
 0x3ec   : > { %v5999_v33 = vpack.c.bf16 %v2867_v47, %v2867_v47  ;;  %v2868_v7 = vmax.f32 %v7115_v31, 0.0 }
 0x3ee   : > { %3019 = vst.msk [vmem:[#allocation2 + $0x7c] sm:$0xf] %vm2990_vm5, %v5999_v33  ;;  %v6000_v53 = vpack.c.bf16 %v2868_v7, %v2868_v7 }
 0x3f0   : > { %3020 = vst.msk [vmem:[#allocation2 + $0x80] sm:$0xf] %vm2990_vm5, %v6000_v53 }
 0x3f1 PF: > { %p5791_p8 = scmp.ne.s32.totalorder %s7893_s18, 1 }
 0x3f2   : > { %v3037_v44 = vld [vmem:[#allocation2 + $0x60] sm:$0xf] (!%p5791_p8)  ;;  %v3038_v48 = vld [vmem:[#allocation2 + $0x64] sm:$0xf] (!%p5791_p8)  ;;  %v3039_v55 = vld [vmem:[#allocation2 + $0x68] sm:$0xf] (!%p5791_p8) }
 0x3f3   : > { %3035 = sbr.rel (%p5791_p8) target bundleno = 1018 (0x3fa), region = 48  ;;  %3041 = vst.msk [vmem:[#allocation2 + $0x78] sm:$0xf] (!%p5791_p8), %vm2990_vm5, %v3037_v44  ;;  %3042 = vst.msk [vmem:[#allocation2 + $0x7c] sm:$0xf] (!%p5791_p8), %vm2990_vm5, %v3038_v48 }
 0x3f4   : > { %3043 = vst.msk [vmem:[#allocation2 + $0x80] sm:$0xf] (!%p5791_p8), %vm2990_vm5, %v3039_v55 }
 0x3fa PF: > { %v3280_v57 = vld [vmem:[%s10202_s3] sm:$0x3]  ;;  %v3045_v46 = vld [vmem:[#allocation2 + $0xc] sm:$0x2]  ;;  %v3046_v34 = vld [vmem:[#allocation2 + $0x18] sm:$0x2] }
 0x3fb   : > { %v3044_v11 = vld [vmem:[#allocation2] sm:$0x2]  ;;  %7752 = vmatprep.subr.msk.bf16.mxu1 %vm576_vm0, %v3280_v57  ;;  %v3497_v24 = vsel %vm576_vm0, %v3280_v57, 0  ;;  %v5793_v29 = vrot.slane %v3045_v46, 9  ;;  %vm3104_vm6 = vcmask 24576   ;;  %v5794_v61 = vrot.slane %v3046_v34, 9 }
 0x3fc   : > { %v5792_v54 = vrot.slane %v3044_v11, 9  ;;  %6821 = vmatpush3.bf16.msra.mxu1 %v3497_v24  ;;  %vm3105_vm7 = vsmask.f32 256  ;;  %v3107_v40 = vld [vmem:[#allocation2] sm:$0x1] }
 0x3fd   : > { %vm9316_vm8 = vmand %vm3104_vm6, %vm3105_vm7  ;;  %v3110_v12 = vld [vmem:[#allocation2 + $0xc] sm:$0x1]  ;;  %v3113_v37 = vld [vmem:[#allocation2 + $0x18] sm:$0x1]  ;;  %vm3203_vm9 = vsmask.f32 7938 }
 0x3fe   : > { %v3108_v18 = vsel %vm9316_vm8, %v5792_v54, %v3107_v40  ;;  %v3111_v32 = vsel %vm9316_vm8, %v5793_v29, %v3110_v12  ;;  %v3114_v50 = vsel %vm9316_vm8, %v5794_v61, %v3113_v37  ;;  %v3143_v26 = vld [vmem:[#allocation2 + $0x4] sm:$0x8]  ;;  %v3144_v22 = vld [vmem:[#allocation2 + $0x10] sm:$0x8]  ;;  %v3154_v41 = vld [vmem:[#allocation2 + $0x88] sm:$0x8] }
 0x3ff   : > { %3109 = vst [vmem:[#allocation2] sm:$0x1] %v3108_v18  ;;  %3112 = vst [vmem:[#allocation2 + $0xc] sm:$0x1] %v3111_v32  ;;  %v5804_v60 = vrot.slane %v3143_v26, 11  ;;  %v5805_v19 = vrot.slane %v3144_v22, 11 }
 0x400   : > { %3115 = vst [vmem:[#allocation2 + $0x18] sm:$0x1] %v3114_v50  ;;  %v5815_v25 = vrot.slane %v3154_v41, 11  ;;  %vm9327_vm10 = vmand %vm3104_vm6, %vm3203_vm9  ;;  %v3205_v58 = vld [vmem:[#allocation2 + $0x8] sm:$0x1] }
 0x401   : > { %v3208_v3 = vld [vmem:[#allocation2 + $0x14] sm:$0x1]  ;;  %v3238_v51 = vld [vmem:[#allocation2 + $0x8c] sm:$0x1]  ;;  %v3206_v10 = vsel %vm9327_vm10, %v5804_v60, %v3205_v58  ;;  %v5842_v59 = vld [vmem:[%s10202_s3 + $0x2] sm:$0x3] }
 0x402   : > { %v3209_v13 = vsel %vm9327_vm10, %v5805_v19, %v3208_v3  ;;  %v3239_v15 = vsel %vm9327_vm10, %v5815_v25, %v3238_v51  ;;  %v3047_v43 = vld [vmem:[#allocation2 + $0x24] sm:$0x2]  ;;  %3207 = vst [vmem:[#allocation2 + $0x8] sm:$0x1] %v3206_v10  ;;  %7753 = vmatprep.subr.msk.bf16.mxu1 %vm576_vm0, %v5842_v59  ;;  %v3116_v2 = vld [vmem:[#allocation2 + $0x24] sm:$0x1] }
 0x403   : > { %3210 = vst [vmem:[#allocation2 + $0x14] sm:$0x1] %v3209_v13  ;;  %3240 = vst [vmem:[#allocation2 + $0x8c] sm:$0x1] %v3239_v15  ;;  %v5795_v45 = vrot.slane %v3047_v43, 9  ;;  %v3703_v26 = vsel %vm576_vm0, %v5842_v59, 0 }
 0x404   : > { %v3145_v62 = vld [vmem:[#allocation2 + $0x1c] sm:$0x8]  ;;  %v3211_v56 = vld [vmem:[#allocation2 + $0x20] sm:$0x1]  ;;  %v3146_v6 = vld [vmem:[#allocation2 + $0x28] sm:$0x8] }
 0x405   : > { %v5806_v49 = vrot.slane %v3145_v62, 11  ;;  %v9341_v17 = vld [vmem:[#allocation2 + $0x1c] sm:$0xf]  ;;  %v3117_v27 = vsel %vm9316_vm8, %v5795_v45, %v3116_v2  ;;  %v5807_v30 = vrot.slane %v3146_v6, 11  ;;  %v3214_v5 = vld [vmem:[#allocation2 + $0x2c] sm:$0x1] }
 0x406   : > { %v9345_v20 = vld [vmem:[#allocation2 + $0x10] sm:$0xf]  ;;  %3118 = vst [vmem:[#allocation2 + $0x24] sm:$0x1] %v3117_v27  ;;  %v9349_v9 = vld [vmem:[#allocation2 + $0xc] sm:$0xf] }
 0x407   : > { %v3212_v14 = vsel %vm9327_vm10, %v5806_v49, %v3211_v56  ;;  %v3048_v21 = vld [vmem:[#allocation2 + $0x30] sm:$0x2]  ;;  %v3119_v23 = vld [vmem:[#allocation2 + $0x30] sm:$0x1]  ;;  %v9351_v16 = vld [vmem:[#allocation2 + $0x18] sm:$0xf]  ;;  %v3215_v8 = vsel %vm9327_vm10, %v5807_v30, %v3214_v5 }
 0x408   : > { %3213 = vst [vmem:[#allocation2 + $0x20] sm:$0x1] %v3212_v14  ;;  %v5796_v52 = vrot.slane %v3048_v21, 9  ;;  %v9357_v28 = vcombine.low %v9351_v16, %v9341_v17  ;;  %3216 = vst [vmem:[#allocation2 + $0x2c] sm:$0x1] %v3215_v8 }
 0x409   : > { %v3049_v36 = vld [vmem:[#allocation2 + $0x3c] sm:$0x2]  ;;  %v3122_v39 = vld [vmem:[#allocation2 + $0x3c] sm:$0x1]  ;;  %v3147_v47 = vld [vmem:[#allocation2 + $0x34] sm:$0x8] }
 0x40a   : > { %v3120_v31 = vsel %vm9316_vm8, %v5796_v52, %v3119_v23  ;;  %v5797_v35 = vrot.slane %v3049_v36, 9  ;;  %v5808_v33 = vrot.slane %v3147_v47, 11  ;;  %v3217_v7 = vld [vmem:[#allocation2 + $0x38] sm:$0x1]  ;;  %v3148_v53 = vld [vmem:[#allocation2 + $0x40] sm:$0x8] }
 0x40b   : > { %v3241_v1 = vld [vmem:[#allocation2 + $0x8] sm:$0xf]  ;;  %v9361_v0 = vld [vmem:[#allocation2 + $0x14] sm:$0xf]  ;;  %v10286_v4 = vshrl.u32 %v9357_v28, 16  ;;  %v10287_v44 = vshll.u32 %v9357_v28, 16 }
 0x40c   : > { %3121 = vst [vmem:[#allocation2 + $0x30] sm:$0x1] %v3120_v31  ;;  %v5817_v48 = vcombine.low %v3241_v1, %v9349_v9  ;;  %v5818_v55 = vcombine.low %v9345_v20, %v9361_v0  ;;  %v9368_v57 = vld [vmem:[#allocation2 + $0x28] sm:$0xf]  ;;  %v3123_v11 = vsel %vm9316_vm8, %v5797_v35, %v3122_v39  ;;  %v3220_v46 = vld [vmem:[#allocation2 + $0x44] sm:$0x1]  ;;  %v3218_v29 = vsel %vm9327_vm10, %v5808_v33, %v3217_v7 }
 0x40d   : > { %v3050_v24 = vld [vmem:[#allocation2 + $0x48] sm:$0x2]  ;;  %v3364_v34 = vrot.slane %v10286_v4, 3  ;;  %v3367_v54 = vrot.slane %v10287_v44, 4  ;;  %3124 = vst [vmem:[#allocation2 + $0x3c] sm:$0x1] %v3123_v11 }
 0x40e   : > { %v5809_v61 = vrot.slane %v3148_v53, 11  ;;  %v3125_v40 = vld [vmem:[#allocation2 + $0x48] sm:$0x1]  ;;  %v3345_v12 = vshrl.u32 %v5817_v48, 16  ;;  %v3348_v37 = vshll.u32 %v5817_v48, 16  ;;  %v3353_v18 = vshrl.u32 %v5818_v55, 16 }
 0x40f   : > { %v3356_v32 = vshll.u32 %v5818_v55, 16  ;;  %v9378_v50 = vld [vmem:[#allocation2 + $0x24] sm:$0xf]  ;;  %3219 = vst [vmem:[#allocation2 + $0x38] sm:$0x1] %v3218_v29  ;;  %v9381_v22 = vor.u32 %v3367_v54, %v3364_v34  ;;  %v5798_v25 = vrot.slane %v3050_v24, 9 }
 0x410   : > { %v9383_v41 = vld [vmem:[#allocation2 + $0x20] sm:$0xf]  ;;  %v9385_v60 = vld [vmem:[#allocation2 + $0x34] sm:$0xf]  ;;  %v3221_v19 = vsel %vm9327_vm10, %v5809_v61, %v3220_v46  ;;  %v3347_v58 = vrot.slane %v3345_v12, 3  ;;  %v3350_v3 = vrot.slane %v3348_v37, 4 }
 0x411   : > { %v3355_v51 = vrot.slane %v3353_v18, 3  ;;  %v3358_v10 = vrot.slane %v3356_v32, 4  ;;  %v9389_v13 = vld [vmem:[#allocation2 + $0x2c] sm:$0xf]  ;;  %3222 = vst [vmem:[#allocation2 + $0x44] sm:$0x1] %v3221_v19  ;;  %v9393_v15 = vcombine.low %v9383_v41, %v9378_v50  ;;  %v3126_v43 = vsel %vm9316_vm8, %v5798_v25, %v3125_v40 }
 0x412   : > { %v9397_v59 = vcombine.low %v9368_v57, %v9389_v13  ;;  %v3051_v45 = vld [vmem:[#allocation2 + $0x54] sm:$0x2]  ;;  %v3128_v2 = vld [vmem:[#allocation2 + $0x54] sm:$0x1]  ;;  %v3149_v62 = vld [vmem:[#allocation2 + $0x4c] sm:$0x8]  ;;  %v3351_v49 = vor.u32 %v3350_v3, %v3347_v58 }
 0x413   : > { %v3359_v56 = vor.u32 %v3358_v10, %v3355_v51  ;;  %v9401_v6 = vld [vmem:[#allocation2 + $0x30] sm:$0xf]  ;;  %3127 = vst [vmem:[#allocation2 + $0x48] sm:$0x1] %v3126_v43  ;;  %v5799_v27 = vrot.slane %v3051_v45, 9  ;;  %v5810_v30 = vrot.slane %v3149_v62, 11 }
 0x414   : > { %v10283_v5 = vshrl.u32 %v9393_v15, 16  ;;  %v10285_v14 = vshll.u32 %v9393_v15, 16  ;;  %v10280_v21 = vshrl.u32 %v9397_v59, 16  ;;  %v10284_v23 = vshll.u32 %v9397_v59, 16  ;;  %v3223_v8 = vld [vmem:[#allocation2 + $0x50] sm:$0x1] }
 0x415   : > { %v3360_v52 = vsel %vm386_vm4, %v3351_v49, %v3359_v56  ;;  %v3369_v36 = vsel %vm386_vm4, %v3359_v56, %v9381_v22  ;;  %v9412_v39 = vcombine.low %v9401_v6, %v9385_v60  ;;  %v9414_v47 = vld [vmem:[#allocation2 + $0x3c] sm:$0xf]  ;;  %v9416_v31 = vld [vmem:[#allocation2 + $0x40] sm:$0xf]  ;;  %v3129_v35 = vsel %vm9316_vm8, %v5799_v27, %v3128_v2  ;;  %v3150_v33 = vld [vmem:[#allocation2 + $0x58] sm:$0x8] }
 0x416   : > { %6822 = vmatprep.mubr.msk.bf16.mxu1 %vm530_vm3, %v3360_v52  ;;  %v3373_v7 = vrot.slane %v10283_v5, 3  ;;  %v3376_v53 = vrot.slane %v10285_v14, 4  ;;  %v3382_v1 = vrot.slane %v10280_v21, 3  ;;  %v3385_v48 = vrot.slane %v10284_v23, 4  ;;  %v9429_v55 = vld [vmem:[#allocation2 + $0x38] sm:$0xf] }
 0x417   : > { %v9431_v11 = vld [vmem:[#allocation2 + $0x4c] sm:$0xf]  ;;  %3130 = vst [vmem:[#allocation2 + $0x54] sm:$0x1] %v3129_v35  ;;  %6823 = vmatmul.mubr.msk.bf16.vlgmr.msra.gmra.mrb[60].mxu1 %vm530_vm3, %v3369_v36  ;;  %v10275_v46 = vshrl.u32 %v9412_v39, 16  ;;  %v10279_v24 = vshll.u32 %v9412_v39, 16  ;;  %v9438_v34 = vcombine.low %v9429_v55, %v9414_v47  ;;  %v3224_v54 = vsel %vm9327_vm10, %v5810_v30, %v3223_v8 }
 0x418   : > { %v3226_v29 = vld [vmem:[#allocation2 + $0x5c] sm:$0x1]  ;;  %v3052_v61 = vld [vmem:[#allocation2 + $0x60] sm:$0x2]  ;;  %6847 = vmatpush3.bf16.msra.mxu1 %v3703_v26  ;;  %v3377_v40 = vor.u32 %v3376_v53, %v3373_v7  ;;  %v3386_v12 = vor.u32 %v3385_v48, %v3382_v1  ;;  %v9442_v37 = vld [vmem:[#allocation2 + $0x44] sm:$0xf] }
 0x419   : > { %3225 = vst [vmem:[#allocation2 + $0x50] sm:$0x1] %v3224_v54  ;;  %v5811_v18 = vrot.slane %v3150_v33, 11  ;;  %v5800_v32 = vrot.slane %v3052_v61, 9  ;;  %v3131_v19 = vld [vmem:[#allocation2 + $0x60] sm:$0x1]  ;;  %v9457_v45 = vcombine.low %v9416_v31, %v9442_v37 }
 0x41a   : > { %v3391_v25 = vrot.slane %v10275_v46, 3  ;;  %v3394_v58 = vrot.slane %v10279_v24, 4  ;;  %v10274_v3 = vshrl.u32 %v9438_v34, 16  ;;  %v10278_v51 = vshll.u32 %v9438_v34, 16  ;;  %v3151_v10 = vld [vmem:[#allocation2 + $0x64] sm:$0x8] }
 0x41b   : > { %v3378_v26 = vsel %vm386_vm4, %v9381_v22, %v3377_v40  ;;  %v9453_v43 = vsel %vm386_vm4, %v3377_v40, %v3386_v12  ;;  %v9459_v2 = vld [vmem:[#allocation2 + $0x48] sm:$0xf]  ;;  %v3227_v62 = vsel %vm9327_vm10, %v5811_v18, %v3226_v29  ;;  %v9466_v49 = vld [vmem:[%s10202_s3 + $0x4] sm:$0x3]  ;;  %v10269_v52 = vshrl.u32 %v9457_v45, 16 }
 0x41c   : > { %6826 = vmatprep.mubr.msk.bf16.mxu1 %vm530_vm3, %v3378_v26  ;;  %v3395_v22 = vor.u32 %v3394_v58, %v3391_v25  ;;  %v3400_v56 = vrot.slane %v10274_v3, 3  ;;  %v3403_v27 = vrot.slane %v10278_v51, 4  ;;  %v9475_v30 = vcombine.low %v9459_v2, %v9431_v11  ;;  %3228 = vst [vmem:[#allocation2 + $0x5c] sm:$0x1] %v3227_v62  ;;  %v3229_v8 = vld [vmem:[#allocation2 + $0x68] sm:$0x1]  ;;  %7754 = vmatprep.subr.msk.bf16.mxu1 %vm576_vm0, %v9466_v49 }
 0x41d   : > { %v10273_v36 = vshll.u32 %v9457_v45, 16  ;;  %v3132_v35 = vsel %vm9316_vm8, %v5800_v32, %v3131_v19  ;;  %v5812_v33 = vrot.slane %v3151_v10, 11  ;;  %v3409_v1 = vrot.slane %v10269_v52, 3  ;;  %v9506_v19 = vld [vmem:[#allocation2 + $0x58] sm:$0xf] }
 0x41e   : > { %v9484_v7 = vsel %vm386_vm4, %v3386_v12, %v3395_v22  ;;  %v9486_v53 = vld [vmem:[#allocation2 + $0x54] sm:$0xf]  ;;  %3133 = vst [vmem:[#allocation2 + $0x60] sm:$0x1] %v3132_v35  ;;  %v3404_v61 = vor.u32 %v3403_v27, %v3400_v56  ;;  %v10268_v40 = vshrl.u32 %v9475_v30, 16  ;;  %v10272_v12 = vshll.u32 %v9475_v30, 16 }
 0x41f   : > { %v3412_v48 = vrot.slane %v10273_v36, 4  ;;  %v3230_v54 = vsel %vm9327_vm10, %v5812_v33, %v3229_v8  ;;  %6827 = vmatmul.mubr.msk.bf16.gmra.mrb[64].mxu1 %vm530_vm3, %v9453_v43  ;;  %v9512_v26 = vld [vmem:[#allocation2 + $0x64] sm:$0xf]  ;;  %v3134_v5 = vld [vmem:[#allocation2 + $0x6c] sm:$0x1]  ;;  %v10386_v42 = vshll.u32 %v9357_v28, 16 }
 0x420   : > { %v9496_v29 = vld [vmem:[#allocation2 + $0x50] sm:$0xf]  ;;  %3231 = vst [vmem:[#allocation2 + $0x68] sm:$0x1] %v3230_v54  ;;  %6830 = vmatprep.mubr.msk.bf16.mxu1 %vm530_vm3, %v9484_v7  ;;  %v9515_v62 = vsel %vm386_vm4, %v3395_v22, %v3404_v61  ;;  %v3418_v56 = vrot.slane %v10268_v40, 3  ;;  %v3421_v27 = vrot.slane %v10272_v12, 4 }
 0x421   : > { %v9504_v18 = vcombine.low %v9496_v29, %v9486_v53  ;;  %v3413_v32 = vor.u32 %v3412_v48, %v3409_v1  ;;  %v3270_v38 = vld [vmem:[#allocation2 + $0x7c] sm:$0xf] }
 0x422   : > { %v3422_v54 = vor.u32 %v3421_v27, %v3418_v56 }
 0x423   : > { %v10270_v25 = vshrl.u32 %v9504_v18, 16  ;;  %v10271_v58 = vshll.u32 %v9504_v18, 16  ;;  %v9510_v10 = vld [vmem:[#allocation2 + $0x5c] sm:$0xf]  ;;  %v9528_v33 = vsel %vm386_vm4, %v3404_v61, %v3413_v32 }
 0x424   : > { %v9523_v8 = vcombine.low %v9506_v19, %v9510_v10  ;;  %v9549_v36 = vsel %vm386_vm4, %v3413_v32, %v3422_v54 }
 0x425   : > { %v9525_v35 = vld [vmem:[#allocation2 + $0x60] sm:$0xf]  ;;  %v3427_v1 = vrot.slane %v10270_v25, 3  ;;  %v3430_v22 = vrot.slane %v10271_v58, 4 }
 0x426   : > { %v9536_v48 = vcombine.low %v9525_v35, %v9512_v26  ;;  %v10276_v61 = vshrl.u32 %v9523_v8, 16  ;;  %v10277_v40 = vshll.u32 %v9523_v8, 16 }
 0x427   : > { %6831 = vmatmul.mubr.msk.bf16.gmra.mrb[68].mxu1 %vm530_vm3, %v9515_v62  ;;  %v3431_v52 = vor.u32 %v3430_v22, %v3427_v1  ;;  %v9546_v12 = vld [vmem:[#allocation2 + $0x68] sm:$0xf] }
 0x428   : > { %6834 = vmatprep.mubr.msk.bf16.mxu1 %vm530_vm3, %v9528_v33  ;;  %v10281_v25 = vshrl.u32 %v9536_v48, 16  ;;  %v10282_v58 = vshll.u32 %v9536_v48, 16  ;;  %v3436_v3 = vrot.slane %v10276_v61, 3  ;;  %v3439_v56 = vrot.slane %v10277_v40, 4 }
 0x429   : > { %v5829_v27 = vcombine.low %v9546_v12, %v9546_v12  ;;  %v9558_v1 = vsel %vm386_vm4, %v3422_v54, %v3431_v52 }
 0x42a   : > { %v3445_v22 = vrot.slane %v10281_v25, 3  ;;  %v3448_v46 = vrot.slane %v10282_v58, 4  ;;  %v3440_v32 = vor.u32 %v3439_v56, %v3436_v3  ;;  %v3053_v25 = vld [vmem:[#allocation2 + $0x6c] sm:$0x2]  ;;  %v9591_v56 = vcombine.low %v9361_v0, %v9351_v16 }
 0x42b   : > { %v3452_v61 = vshrl.u32 %v5829_v27, 16  ;;  %v3455_v40 = vshll.u32 %v5829_v27, 16  ;;  %v5801_v23 = vrot.slane %v3053_v25, 9  ;;  %v3232_v25 = vld [vmem:[#allocation2 + $0x74] sm:$0x1]  ;;  %v9615_v16 = vcombine.low %v9389_v13, %v9401_v6 }
 0x42c   : > { %v9568_v51 = vor.u32 %v3448_v46, %v3445_v22  ;;  %v9571_v54 = vsel %vm386_vm4, %v3431_v52, %v3440_v32  ;;  %v9623_v0 = vcombine.low %v9385_v60, %v9429_v55  ;;  %v9647_v13 = vcombine.low %v9486_v53, %v9506_v19 }
 0x42d   : > { %v3454_v24 = vrot.slane %v3452_v61, 3  ;;  %v3457_v21 = vrot.slane %v3455_v40, 4  ;;  %v3135_v3 = vsel %vm9316_vm8, %v5801_v23, %v3134_v5  ;;  %v5843_v40 = vcombine.low %v9349_v9, %v9345_v20  ;;  %v3152_v61 = vld [vmem:[#allocation2 + $0x70] sm:$0x8]  ;;  %v5881_v9 = vld [vmem:[%s10202_s3 + $0x6] sm:$0x3] }
 0x42e   : > { %v9575_v58 = vsel %vm386_vm4, %v3440_v32, %v9568_v51  ;;  %3136 = vst [vmem:[#allocation2 + $0x6c] sm:$0x1] %v3135_v3  ;;  %v9595_v5 = vcombine.low %v9341_v17, %v9383_v41  ;;  %v3988_v23 = vsel %vm576_vm0, %v9466_v49, 0  ;;  %v9611_v17 = vcombine.low %v9378_v50, %v9368_v57 }
 0x42f   : > { %6835 = vmatmul.mubr.msk.bf16.gmra.mrb[72].mxu1 %vm530_vm3, %v9549_v36  ;;  %v3458_v46 = vor.u32 %v3457_v21, %v3454_v24  ;;  %v5813_v21 = vrot.slane %v3152_v61, 11  ;;  %v9627_v41 = vcombine.low %v9414_v47, %v9416_v31  ;;  %v9635_v57 = vcombine.low %v9442_v37, %v9459_v2 }
 0x430   : > { %6838 = vmatprep.mubr.msk.bf16.mxu1 %vm530_vm3, %v9558_v1  ;;  %v9639_v50 = vcombine.low %v9431_v11, %v9496_v29  ;;  %v3865_v60 = vshll.u32 %v5843_v40, 16  ;;  %v9651_v6 = vcombine.low %v9510_v10, %v9525_v35  ;;  %v3863_v47 = vshrl.u32 %v5843_v40, 16 }
 0x431   : > { %v3459_v52 = vsel %vm386_vm4, %v9568_v51, %v3458_v46  ;;  %v3233_v20 = vsel %vm9327_vm10, %v5813_v21, %v3232_v25  ;;  %v3869_v55 = vshll.u32 %v9591_v56, 16  ;;  %v3876_v37 = vshll.u32 %v9595_v5, 16  ;;  %v9690_v25 = vld [vmem:[%s10202_s3 + $0x8] sm:$0x3] }
 0x432   : > { %3234 = vst [vmem:[#allocation2 + $0x74] sm:$0x1] %v3233_v20  ;;  %v3867_v31 = vrot.slane %v3865_v60, 1  ;;  %v9663_v2 = vcombine.low %v9512_v26, %v9546_v12  ;;  %v3873_v49 = vshrl.u32 %v9591_v56, 16  ;;  %v3880_v29 = vshrl.u32 %v9595_v5, 16 }
 0x433   : > { %v3871_v24 = vrot.slane %v3869_v55, 1  ;;  %v3883_v19 = vshll.u32 %v9611_v17, 16  ;;  %v3878_v10 = vrot.slane %v3876_v37, 1  ;;  %v3890_v22 = vshll.u32 %v9615_v16, 16 }
 0x434   : > { %v3868_v11 = vor.u32 %v3867_v31, %v3863_v47  ;;  %v3887_v46 = vshrl.u32 %v9611_v17, 16  ;;  %v4249_v3 = vsel %vm576_vm0, %v5881_v9, 0  ;;  %v10296_v61 = vshll.u32 %v9623_v0, 16 }
 0x435   : > { %v3875_v35 = vor.u32 %v3873_v49, %v3871_v24  ;;  %v3882_v26 = vor.u32 %v3880_v29, %v3878_v10  ;;  %v3885_v27 = vrot.slane %v3883_v19, 1  ;;  %v3892_v21 = vrot.slane %v3890_v22, 1 }
 0x436   : > { %v3872_v53 = vsel %vm1016_vm2, %v3868_v11, %v3871_v24  ;;  %v10293_v60 = vshll.u32 %v9627_v41, 16  ;;  %v3901_v31 = vshrl.u32 %v9623_v0, 16  ;;  %v10295_v24 = vshrl.u32 %v9627_v41, 16 }
 0x437   : > { %6839 = vmatmul.mubr.msk.bf16.gmra.mrb[76].mxu1 %vm530_vm3, %v9571_v54  ;;  %v3879_v32 = vsel %vm1016_vm2, %v3875_v35, %v3878_v10  ;;  %v10294_v14 = vshll.u32 %v9651_v6, 16  ;;  %v10297_v44 = vshrl.u32 %v9647_v13, 16 }
 0x438   : > { %6842 = vmatprep.mubr.msk.bf16.mxu1 %vm530_vm3, %v9575_v58  ;;  %v3906_v10 = vrot.slane %v10293_v60, 1 }
 0x43f   : > { %6843 = vmatmul.mubr.msk.bf16.gmra.mrb[80].mxu1 %vm530_vm3, %v3459_v52  ;;  %v3886_v52 = vsel %vm1016_vm2, %v3882_v26, %v3885_v27  ;;  %v3910_v26 = vor.u32 %v10295_v24, %v3906_v10 }
 0x440   : > { %6848 = vmatprep.mubr.msk.bf16.mxu1 %vm530_vm3, %v5843_v40  ;;  %v3894_v40 = vshrl.u32 %v9615_v16, 16 }
 0x442   : > { %v3896_v20 = vor.u32 %v3894_v40, %v3892_v21 }
 0x447   : > { %6849 = vmatmul.mubr.msk.bf16.vlgmr.msra.gmra.mrb[60].mxu1 %vm530_vm3, %v9591_v56 }
 0x448   : > { %6873 = vmatpush3.bf16.msra.mxu1 %v3988_v23  ;;  %6852 = vmatprep.mubr.msk.bf16.mxu1 %vm530_vm3, %v9595_v5  ;;  %v3889_v23 = vor.u32 %v3887_v46, %v3885_v27  ;;  %v4158_v5 = vrot.slane %v3887_v46, 3 }
 0x449   : > { %7755 = vmatprep.subr.msk.bf16.mxu1 %vm576_vm0, %v5881_v9  ;;  %v3899_v9 = vrot.slane %v10296_v61, 1  ;;  %v4151_v61 = vrot.slane %v3873_v49, 3 }
 0x44a   : > { %v9706_v47 = vsel %vm1016_vm2, %v3889_v23, %v3892_v21  ;;  %v10292_v23 = vshrl.u32 %v9639_v50, 16 }
 0x44b   : > { %v9710_v11 = vsel %vm1016_vm2, %v3896_v20, %v3899_v9  ;;  %v3903_v35 = vor.u32 %v3901_v31, %v3899_v9  ;;  %v10291_v20 = vshll.u32 %v9647_v13, 16 }
 0x44f   : > { %6853 = vmatmul.mubr.msk.bf16.gmra.mrb[64].mxu1 %vm530_vm3, %v9611_v17 }
 0x450   : > { %6856 = vmatprep.mubr.msk.bf16.mxu1 %vm530_vm3, %v9615_v16 }
 0x457   : > { %6857 = vmatmul.mubr.msk.bf16.gmra.mrb[68].mxu1 %vm530_vm3, %v9623_v0 }
 0x458   : > { %6860 = vmatprep.mubr.msk.bf16.mxu1 %vm530_vm3, %v9627_v41 }
 0x45f   : > { %6861 = vmatmul.mubr.msk.bf16.gmra.mrb[72].mxu1 %vm530_vm3, %v9635_v57 }
 0x460   : > { %6864 = vmatprep.mubr.msk.bf16.mxu1 %vm530_vm3, %v9639_v50 }
 0x467   : > { %6865 = vmatmul.mubr.msk.bf16.gmra.mrb[76].mxu1 %vm530_vm3, %v9647_v13 }
 0x468   : > { %6868 = vmatprep.mubr.msk.bf16.mxu1 %vm530_vm3, %v9651_v6 }
 0x46f   : > { %6869 = vmatmul.mubr.msk.bf16.gmra.mrb[80].mxu1 %vm530_vm3, %v9663_v2 }
 0x470   : > { %6874 = vmatprep.mubr.msk.bf16.mxu1 %vm530_vm3, %v3872_v53  ;;  %v10289_v53 = vshll.u32 %v9635_v57, 16 }
 0x472   : > { %v3913_v27 = vrot.slane %v10289_v53, 1  ;;  %v10298_v53 = vshrl.u32 %v9651_v6, 16 }
 0x474   : > { %v9732_v21 = vsel %vm1016_vm2, %v3910_v26, %v3913_v27  ;;  %v3927_v26 = vrot.slane %v10291_v20, 1  ;;  %v3934_v20 = vrot.slane %v10294_v14, 1  ;;  %v3943_v14 = vshrl.u32 %v9663_v2, 16 }
 0x477   : > { %6875 = vmatmul.mubr.msk.bf16.vlgmr.msra.gmra.mrb[60].mxu1 %vm530_vm3, %v3879_v32  ;;  %v10288_v32 = vshll.u32 %v9639_v50, 16 }
 0x478   : > { %6899 = vmatpush3.bf16.msra.mxu1 %v4249_v3  ;;  %6878 = vmatprep.mubr.msk.bf16.mxu1 %vm530_vm3, %v3886_v52  ;;  %v9728_v3 = vsel %vm1016_vm2, %v3903_v35, %v3906_v10  ;;  %v10290_v52 = vshrl.u32 %v9635_v57, 16 }
 0x479   : > { %7756 = vmatprep.subr.msk.bf16.mxu1 %vm576_vm0, %v9690_v25  ;;  %v3920_v9 = vrot.slane %v10288_v32, 1 }
 0x47a   : > { %v3917_v10 = vor.u32 %v10290_v52, %v3913_v27  ;;  %v10299_v27 = vshll.u32 %v9663_v2, 16  ;;  %v9758_v52 = vld [vmem:[#allocation2 + $0x6c] sm:$0xf] }
 0x47b   : > { %v3924_v35 = vor.u32 %v10292_v23, %v3920_v9 }
 0x47c   : > { %v9750_v4 = vsel %vm1016_vm2, %v3917_v10, %v3920_v9  ;;  %v3931_v9 = vor.u32 %v10297_v44, %v3927_v26  ;;  %v5868_v10 = vcombine.low %v9758_v52, %v9758_v52  ;;  %v3941_v23 = vrot.slane %v10299_v27, 1 }
 0x47d   : > { %v9754_v32 = vsel %vm1016_vm2, %v3924_v35, %v3927_v26  ;;  %v3938_v35 = vor.u32 %v10298_v53, %v3934_v20  ;;  %v4152_v44 = vrot.slane %v3869_v55, 4  ;;  %v4154_v53 = vrot.slane %v3880_v29, 3  ;;  %v3054_v29 = vld [vmem:[#allocation2 + $0x78] sm:$0x2] }
 0x47e   : > { %v9775_v60 = vsel %vm1016_vm2, %v3931_v9, %v3934_v20  ;;  %v3947_v24 = vshll.u32 %v5868_v10, 16  ;;  %v4155_v27 = vrot.slane %v3876_v37, 4  ;;  %v9795_v49 = vor.u32 %v3943_v14, %v3941_v23 }
 0x47f   : > { %6879 = vmatmul.mubr.msk.bf16.gmra.mrb[64].mxu1 %vm530_vm3, %v9706_v47  ;;  %v9781_v26 = vsel %vm1016_vm2, %v3938_v35, %v3941_v23  ;;  %v4153_v9 = vor.u32 %v4152_v44, %v4151_v61  ;;  %v4159_v55 = vrot.slane %v3883_v19, 4  ;;  %v4162_v35 = vrot.slane %v3894_v40, 3  ;;  %v3137_v61 = vld [vmem:[#allocation2 + $0x78] sm:$0x1] }
 0x480   : > { %6882 = vmatprep.mubr.msk.bf16.mxu1 %vm530_vm3, %v9710_v11  ;;  %v3949_v20 = vrot.slane %v3947_v24, 1  ;;  %v4156_v56 = vor.u32 %v4155_v27, %v4154_v53  ;;  %v4163_v24 = vrot.slane %v3890_v22, 4  ;;  %v5802_v44 = vrot.slane %v3054_v29, 9 }
 0x481   : > { %v4160_v46 = vor.u32 %v4159_v55, %v4158_v5  ;;  %v4166_v40 = vrot.slane %v3901_v31, 3  ;;  %v10374_v27 = vshll.u32 %v9623_v0, 16  ;;  %v10376_v55 = vshll.u32 %v9627_v41, 16 }
 0x482   : > { %v3950_v37 = vsel %vm1016_vm2, %v9795_v49, %v3949_v20  ;;  %v4157_v10 = vsel %vm386_vm4, %v4153_v9, %v4156_v56  ;;  %v3138_v19 = vsel %vm9316_vm8, %v5802_v44, %v3137_v61  ;;  %v4164_v53 = vor.u32 %v4163_v24, %v4162_v35 }
 0x483   : > { %3139 = vst [vmem:[#allocation2 + $0x78] sm:$0x1] %v3138_v19  ;;  %v4161_v23 = vsel %vm386_vm4, %v4156_v56, %v4160_v46  ;;  %v4167_v22 = vrot.slane %v10374_v27, 4  ;;  %v4435_v20 = vsel %vm576_vm0, %v9690_v25, 0  ;;  %v4171_v5 = vrot.slane %v10376_v55, 4 }
 0x484   : > { %v4165_v9 = vsel %vm386_vm4, %v4160_v46, %v4164_v53  ;;  %v5911_v56 = vld [vmem:[%s10202_s3 + $0xa] sm:$0x3]  ;;  %v10377_v35 = vshrl.u32 %v9635_v57, 16  ;;  %v10378_v44 = vshll.u32 %v9635_v57, 16  ;;  %v10379_v46 = vshrl.u32 %v9639_v50, 16 }
 0x485   : > { %v4168_v31 = vor.u32 %v4167_v22, %v4166_v40  ;;  %v10380_v27 = vshll.u32 %v9639_v50, 16  ;;  %v3267_v22 = vld [vmem:[#allocation2 + $0x70] sm:$0xf]  ;;  %v10382_v55 = vshll.u32 %v9647_v13, 16 }
 0x486   : > { %v4174_v24 = vrot.slane %v10377_v35, 3  ;;  %v4175_v61 = vrot.slane %v10378_v44, 4 }
 0x487   : > { %6883 = vmatmul.mubr.msk.bf16.gmra.mrb[68].mxu1 %vm530_vm3, %v9728_v3  ;;  %v4169_v25 = vsel %vm386_vm4, %v4164_v53, %v4168_v31 }
 0x488   : > { %6886 = vmatprep.mubr.msk.bf16.mxu1 %vm530_vm3, %v9732_v21  ;;  %v4176_v40 = vor.u32 %v4175_v61, %v4174_v24  ;;  %v10384_v24 = vshll.u32 %v9651_v6, 16 }
 0x48a   : > { %v4187_v61 = vrot.slane %v10384_v24, 4 }
 0x48f   : > { %6887 = vmatmul.mubr.msk.bf16.gmra.mrb[72].mxu1 %vm530_vm3, %v9750_v4 }
 0x490   : > { %6890 = vmatprep.mubr.msk.bf16.mxu1 %vm530_vm3, %v9754_v32 }
 0x497   : > { %6891 = vmatmul.mubr.msk.bf16.gmra.mrb[76].mxu1 %vm530_vm3, %v9775_v60 }
 0x498   : > { %6894 = vmatprep.mubr.msk.bf16.mxu1 %vm530_vm3, %v9781_v26 }
 0x49f   : > { %6895 = vmatmul.mubr.msk.bf16.gmra.mrb[80].mxu1 %vm530_vm3, %v3950_v37  ;;  %v10375_v37 = vshrl.u32 %v9627_v41, 16 }
 0x4a0   : > { %6900 = vmatprep.mubr.msk.bf16.mxu1 %vm530_vm3, %v4157_v10 }
 0x4a1   : > { %v4170_v29 = vrot.slane %v10375_v37, 3  ;;  %v10381_v37 = vshrl.u32 %v9647_v13, 16 }
 0x4a3   : > { %v4172_v10 = vor.u32 %v4171_v5, %v4170_v29  ;;  %v4182_v29 = vrot.slane %v10381_v37, 3  ;;  %v4183_v5 = vrot.slane %v10382_v55, 4  ;;  %v10385_v37 = vshll.u32 %v9663_v2, 16 }
 0x4a5   : > { %v4173_v19 = vsel %vm386_vm4, %v4168_v31, %v4172_v10  ;;  %v9848_v31 = vcombine.low %v9758_v52, %v3267_v22  ;;  %v4191_v55 = vrot.slane %v10385_v37, 4 }
 0x4a7   : > { %6901 = vmatmul.mubr.msk.bf16.vlgmr.msra.gmra.mrb[60].mxu1 %vm530_vm3, %v4161_v23  ;;  %v4178_v23 = vrot.slane %v10379_v46, 3  ;;  %v10300_v46 = vshrl.u32 %v9848_v31, 16 }
 0x4a8   : > { %6925 = vmatpush3.bf16.msra.mxu1 %v4435_v20  ;;  %6904 = vmatprep.mubr.msk.bf16.mxu1 %vm530_vm3, %v4165_v9  ;;  %v4179_v20 = vrot.slane %v10380_v27, 4  ;;  %v4177_v9 = vsel %vm386_vm4, %v4172_v10, %v4176_v40  ;;  %v4184_v10 = vor.u32 %v4183_v5, %v4182_v29  ;;  %v9859_v27 = vld [vmem:[#allocation2 + $0x74] sm:$0xf] }
 0x4a9   : > { %7757 = vmatprep.subr.msk.bf16.mxu1 %vm576_vm0, %v5911_v56  ;;  %v4197_v5 = vrot.slane %v10300_v46, 3 }
 0x4aa   : > { %v4180_v53 = vor.u32 %v4179_v20, %v4178_v23  ;;  %v10301_v23 = vshll.u32 %v9848_v31, 16 }
 0x4ac   : > { %v4181_v35 = vsel %vm386_vm4, %v4176_v40, %v4180_v53  ;;  %v4185_v20 = vsel %vm386_vm4, %v4180_v53, %v4184_v10  ;;  %v4190_v40 = vrot.slane %v3943_v14, 3 }
 0x4ae   : > { %v4192_v53 = vor.u32 %v4191_v55, %v4190_v40  ;;  %v5925_v55 = vld [vmem:[%s10202_s3 + $0xc] sm:$0x3] }
 0x4af   : > { %6905 = vmatmul.mubr.msk.bf16.gmra.mrb[64].mxu1 %vm530_vm3, %v4169_v25  ;;  %v10383_v25 = vshrl.u32 %v9651_v6, 16 }
 0x4b0   : > { %6908 = vmatprep.mubr.msk.bf16.mxu1 %vm530_vm3, %v4173_v19 }
 0x4b1   : > { %v4186_v44 = vrot.slane %v10383_v25, 3 }
 0x4b3   : > { %v4188_v19 = vor.u32 %v4187_v61, %v4186_v44 }
 0x4b5   : > { %v4189_v29 = vsel %vm386_vm4, %v4184_v10, %v4188_v19  ;;  %v4193_v24 = vsel %vm386_vm4, %v4188_v19, %v4192_v53  ;;  %v4680_v19 = vsel %vm576_vm0, %v5911_v56, 0  ;;  %v4595_v56 = vrot.slane %v10386_v42, 1 }
 0x4b6   : > { %v10396_v42 = vshll.u32 %v9457_v45, 16 }
 0x4b7   : > { %6909 = vmatmul.mubr.msk.bf16.gmra.mrb[68].mxu1 %vm530_vm3, %v4177_v9  ;;  %v5883_v9 = vcombine.low %v9859_v27, %v9859_v27 }
 0x4b8   : > { %6912 = vmatprep.mubr.msk.bf16.mxu1 %vm530_vm3, %v4181_v35  ;;  %v4200_v35 = vrot.slane %v10301_v23, 4  ;;  %v3153_v23 = vld [vmem:[#allocation2 + $0x7c] sm:$0x8] }
 0x4b9   : > { %v4204_v14 = vshrl.u32 %v5883_v9, 16  ;;  %v4207_v25 = vshll.u32 %v5883_v9, 16  ;;  %v5814_v63 = vrot.slane %v3153_v23, 11  ;;  %v10388_v9 = vshll.u32 %v9393_v15, 16 }
 0x4ba   : > { %v4201_v44 = vor.u32 %v4200_v35, %v4197_v5  ;;  %v9921_v35 = vcombine.low %v3267_v22, %v9859_v27 }
 0x4bb   : > { %v4206_v61 = vrot.slane %v4204_v14, 3  ;;  %v4209_v37 = vrot.slane %v4207_v25, 4  ;;  %v4597_v5 = vrot.slane %v10388_v9, 1  ;;  %v10390_v14 = vshrl.u32 %v9393_v15, 16 }
 0x4bc   : > { %v4202_v10 = vsel %vm386_vm4, %v4192_v53, %v4201_v44  ;;  %v10397_v9 = vshll.u32 %v9475_v30, 16 }
 0x4bd   : > { %v4210_v46 = vor.u32 %v4209_v37, %v4206_v61  ;;  %v4599_v25 = vor.u32 %v4597_v5, %v10390_v14  ;;  %v4882_v37 = vsel %vm576_vm0, %v5925_v55, 0 }
 0x4bf   : > { %6913 = vmatmul.mubr.msk.bf16.gmra.mrb[72].mxu1 %vm530_vm3, %v4185_v20  ;;  %v4211_v20 = vsel %vm386_vm4, %v4201_v44, %v4210_v46  ;;  %v10387_v46 = vshrl.u32 %v9357_v28, 16 }
 0x4c0   : > { %6916 = vmatprep.mubr.msk.bf16.mxu1 %vm530_vm3, %v4189_v29  ;;  %v3235_v29 = vld [vmem:[#allocation2 + $0x80] sm:$0x1] }
 0x4c1   : > { %v3236_v40 = vsel %vm9327_vm10, %v5814_v63, %v3235_v29  ;;  %v9908_v63 = vcombine.low %v9546_v12, %v9758_v52  ;;  %v4596_v23 = vor.u32 %v4595_v56, %v10387_v46  ;;  %v10389_v52 = vshll.u32 %v9397_v59, 16 }
 0x4c2   : > { %3237 = vst [vmem:[#allocation2 + $0x80] sm:$0x1] %v3236_v40  ;;  %v4609_v56 = vrot.slane %v10396_v42, 1 }
 0x4c3   : > { %v4598_v12 = vsel %vm1016_vm2, %v4596_v23, %v4597_v5  ;;  %v4600_v53 = vrot.slane %v10389_v52, 1  ;;  %v4612_v5 = vrot.slane %v10397_v9, 1 }
 0x4c5   : > { %v4601_v61 = vsel %vm1016_vm2, %v4599_v25, %v4600_v53 }
 0x4c7   : > { %6917 = vmatmul.mubr.msk.bf16.gmra.mrb[76].mxu1 %vm530_vm3, %v4193_v24  ;;  %v10392_v24 = vshll.u32 %v9412_v39, 16 }
 0x4c8   : > { %6920 = vmatprep.mubr.msk.bf16.mxu1 %vm530_vm3, %v4202_v10 }
 0x4c9   : > { %v4603_v22 = vrot.slane %v10392_v24, 1 }
 0x4cf   : > { %6921 = vmatmul.mubr.msk.bf16.gmra.mrb[80].mxu1 %vm530_vm3, %v4211_v20  ;;  %v5940_v20 = vld [vmem:[%s10202_s3 + $0xe] sm:$0x3] }
 0x4d0   : > { %6926 = vmatprep.mubr.msk.bf16.mxu1 %vm530_vm3, %v9357_v28  ;;  %v10391_v28 = vshrl.u32 %v9397_v59, 16 }
 0x4d2   : > { %v4602_v44 = vor.u32 %v4600_v53, %v10391_v28  ;;  %v10400_v53 = vshll.u32 %v9504_v18, 16 }
 0x4d4   : > { %v4604_v10 = vsel %vm1016_vm2, %v4602_v44, %v4603_v22  ;;  %v4615_v14 = vrot.slane %v10400_v53, 1  ;;  %v10401_v44 = vshll.u32 %v9523_v8, 16 }
 0x4d6   : > { %v4618_v24 = vrot.slane %v10401_v44, 1 }
 0x4d7   : > { %6927 = vmatmul.mubr.msk.bf16.vlgmr.msra.gmra.mrb[60].mxu1 %vm530_vm3, %v9393_v15  ;;  %v10393_v15 = vshll.u32 %v9438_v34, 16 }
 0x4d8   : > { %6951 = vmatpush3.bf16.msra.mxu1 %v4680_v19  ;;  %6930 = vmatprep.mubr.msk.bf16.mxu1 %vm530_vm3, %v9397_v59  ;;  %v10394_v59 = vshrl.u32 %v9412_v39, 16  ;;  %v10395_v19 = vshrl.u32 %v9438_v34, 16 }
 0x4d9   : > { %7758 = vmatprep.subr.msk.bf16.mxu1 %vm576_vm0, %v5925_v55  ;;  %v4606_v29 = vrot.slane %v10393_v15, 1  ;;  %v4624_v15 = vshll.u32 %v9908_v63, 16 }
 0x4da   : > { %v4605_v40 = vor.u32 %v4603_v22, %v10394_v59 }
 0x4db   : > { %v4608_v55 = vor.u32 %v4606_v29, %v10395_v19  ;;  %v4631_v19 = vshll.u32 %v9921_v35, 16 }
 0x4dc   : > { %v4607_v46 = vsel %vm1016_vm2, %v4605_v40, %v4606_v29  ;;  %v4628_v40 = vshrl.u32 %v9908_v63, 16 }
 0x4dd   : > { %v4610_v23 = vsel %vm1016_vm2, %v4608_v55, %v4609_v56  ;;  %v9981_v55 = vld [vmem:[#allocation2 + $0x78] sm:$0xf] }
 0x4de   : > { %v5926_v44 = vcombine.low %v9981_v55, %v3270_v38 }
 0x4df   : > { %6931 = vmatmul.mubr.msk.bf16.gmra.mrb[64].mxu1 %vm530_vm3, %v9412_v39  ;;  %v10398_v39 = vshrl.u32 %v9457_v45, 16 }
 0x4e0   : > { %6934 = vmatprep.mubr.msk.bf16.mxu1 %vm530_vm3, %v9438_v34 }
 0x4e1   : > { %v4611_v34 = vor.u32 %v4609_v56, %v10398_v39  ;;  %v5912_v56 = vcombine.low %v9981_v55, %v9981_v55 }
 0x4e3   : > { %v4613_v25 = vsel %vm1016_vm2, %v4611_v34, %v4612_v5 }
 0x4e7   : > { %6935 = vmatmul.mubr.msk.bf16.gmra.mrb[68].mxu1 %vm530_vm3, %v9457_v45  ;;  %v10402_v45 = vshrl.u32 %v9504_v18, 16 }
 0x4e8   : > { %6938 = vmatprep.mubr.msk.bf16.mxu1 %vm530_vm3, %v9475_v30 }
 0x4e9   : > { %v4617_v22 = vor.u32 %v4615_v14, %v10402_v45  ;;  %v3271_v45 = vld [vmem:[#allocation2 + $0x80] sm:$0xf] }
 0x4eb   : > { %v4619_v29 = vsel %vm1016_vm2, %v4617_v22, %v4618_v24 }
 0x4ef   : > { %6939 = vmatmul.mubr.msk.bf16.gmra.mrb[72].mxu1 %vm530_vm3, %v9504_v18  ;;  %v4626_v18 = vrot.slane %v4624_v15, 1 }
 0x4f0   : > { %6942 = vmatprep.mubr.msk.bf16.mxu1 %vm530_vm3, %v9523_v8 }
 0x4f7   : > { %6943 = vmatmul.mubr.msk.bf16.gmra.mrb[76].mxu1 %vm530_vm3, %v9536_v48 }
 0x4f8   : > { %6946 = vmatprep.mubr.msk.bf16.mxu1 %vm530_vm3, %v9908_v63  ;;  %v4635_v63 = vshrl.u32 %v9921_v35, 16 }
 0x4fa   : > { %v4847_v22 = vrot.slane %v4635_v63, 3 }
 0x4ff   : > { %6947 = vmatmul.mubr.msk.bf16.gmra.mrb[80].mxu1 %vm530_vm3, %v9921_v35 }
 0x500   : > { %6952 = vmatprep.mubr.msk.bf16.mxu1 %vm530_vm3, %v4598_v12  ;;  %v10399_v12 = vshrl.u32 %v9475_v30, 16  ;;  %v10403_v30 = vshrl.u32 %v9523_v8, 16  ;;  %v10405_v8 = vshrl.u32 %v9536_v48, 16 }
 0x502   : > { %v4614_v52 = vor.u32 %v4612_v5, %v10399_v12  ;;  %v4639_v5 = vshll.u32 %v5912_v56, 16 }
 0x504   : > { %v4616_v28 = vsel %vm1016_vm2, %v4614_v52, %v4615_v14  ;;  %v4641_v12 = vrot.slane %v4639_v5, 1  ;;  %v3055_v52 = vld [vmem:[#allocation2 + $0x84] sm:$0x2]  ;;  %v3140_v14 = vld [vmem:[#allocation2 + $0x84] sm:$0x1] }
 0x505   : > { %v5803_v53 = vrot.slane %v3055_v52, 9  ;;  %v10411_v52 = vld [vmem:[#allocation6_spill] sm:$0xff] }
 0x507   : > { %6953 = vmatmul.mubr.msk.bf16.vlgmr.msra.gmra.mrb[60].mxu1 %vm530_vm3, %v4601_v61  ;;  %v4620_v61 = vor.u32 %v4618_v24, %v10403_v30  ;;  %v3141_v35 = vsel %vm9316_vm8, %v5803_v53, %v3140_v14  ;;  %v4855_v24 = vshll.u32 %v5926_v44, 16  ;;  %v5927_v30 = vcombine.low %v3271_v45, %v3271_v45 }
 0x508   : > { %6977 = vmatpush3.bf16.msra.mxu1 %v4882_v37  ;;  %6956 = vmatprep.mubr.msk.bf16.mxu1 %vm530_vm3, %v4604_v10  ;;  %v10404_v37 = vshll.u32 %v9536_v48, 16  ;;  %3142 = vst [vmem:[#allocation2 + $0x84] sm:$0x1] %v3141_v35  ;;  %v5401_v53 = vunpack.c.l.bf16 %v10411_v52 }
 0x509   : > { %7759 = vmatprep.subr.msk.bf16.mxu1 %vm576_vm0, %v5940_v20 }
 0x50a   : > { %v4621_v10 = vrot.slane %v10404_v37, 1  ;;  %v4857_v37 = vrot.slane %v4855_v24, 4  ;;  %v10413_v24 = vld [vmem:[#allocation3_spill] sm:$0xff] }
 0x50c   : > { %v4622_v59 = vsel %vm1016_vm2, %v4620_v61, %v4621_v10  ;;  %v4623_v42 = vor.u32 %v4621_v10, %v10405_v8  ;;  %v4861_v10 = vshrl.u32 %v5927_v30, 16 }
 0x50e   : > { %v4627_v9 = vsel %vm1016_vm2, %v4623_v42, %v4626_v18  ;;  %v10408_v42 = vld [vmem:[#allocation7_spill] sm:$0xff] }
 0x50f   : > { %6957 = vmatmul.mubr.msk.bf16.gmra.mrb[64].mxu1 %vm530_vm3, %v4607_v46  ;;  %v4630_v46 = vor.u32 %v4628_v40, %v4626_v18  ;;  %v5402_v56 = vunpack.c.l.bf16 %v10408_v42  ;;  %v10421_v42 = vld [vmem:[#allocation17_spill] sm:$0xff] }
 0x510   : > { %6960 = vmatprep.mubr.msk.bf16.mxu1 %vm530_vm3, %v4610_v23  ;;  %v4633_v23 = vrot.slane %v4631_v19, 1 }
 0x512   : > { %v4634_v39 = vsel %vm1016_vm2, %v4630_v46, %v4633_v23  ;;  %v4637_v34 = vor.u32 %v4635_v63, %v4633_v23  ;;  %v10409_v23 = vld [vmem:[#allocation5_spill] sm:$0xff] }
 0x514   : > { %v4642_v48 = vsel %vm1016_vm2, %v4637_v34, %v4641_v12 }
 0x517   : > { %6961 = vmatmul.mubr.msk.bf16.gmra.mrb[68].mxu1 %vm530_vm3, %v4613_v25  ;;  %v5050_v25 = vsel %vm576_vm0, %v5940_v20, 0  ;;  %v4844_v20 = vrot.slane %v4624_v15, 4 }
 0x518   : > { %6964 = vmatprep.mubr.msk.bf16.mxu1 %vm530_vm3, %v4616_v28  ;;  %v5955_v28 = vld [vmem:[%s10202_s3 + $0x10] sm:$0x3] }
 0x51f   : > { %6965 = vmatmul.mubr.msk.bf16.gmra.mrb[72].mxu1 %vm530_vm3, %v4619_v29 }
 0x520   : > { %6968 = vmatprep.mubr.msk.bf16.mxu1 %vm530_vm3, %v4622_v59  ;;  %v4863_v59 = vrot.slane %v4861_v10, 3 }
 0x527   : > { %6969 = vmatmul.mubr.msk.bf16.gmra.mrb[76].mxu1 %vm530_vm3, %v4627_v9  ;;  %v5400_v9 = vunpack.c.l.bf16 %v10409_v23 }
 0x528   : > { %6972 = vmatprep.mubr.msk.bf16.mxu1 %vm530_vm3, %v4634_v39  ;;  %v10410_v39 = vld [vmem:[#allocation8_spill] sm:$0xff] }
 0x529   : > { %v5403_v34 = vunpack.c.l.bf16 %v10410_v39 }
 0x52f   : > { %6973 = vmatmul.mubr.msk.bf16.gmra.mrb[80].mxu1 %vm530_vm3, %v4642_v48 }
 0x530   : > { %6978 = vmatprep.mubr.msk.bf16.mxu1 %vm530_vm3, %v9453_v43  ;;  %v4843_v43 = vrot.slane %v4628_v40, 3 }
 0x537   : > { %6979 = vmatmul.mubr.msk.bf16.vlgmr.msra.gmra.mrb[60].mxu1 %vm530_vm3, %v9484_v7  ;;  %v4845_v7 = vor.u32 %v4844_v20, %v4843_v43 }
 0x538   : > { %7003 = vmatpush3.bf16.msra.mxu1 %v5050_v25  ;;  %6982 = vmatprep.mubr.msk.bf16.mxu1 %vm530_vm3, %v9515_v62  ;;  %v4852_v62 = vshrl.u32 %v5926_v44, 16  ;;  %v10412_v44 = vld [vmem:[#allocation11_spill] sm:$0xff] }
 0x539   : > { %7760 = vmatprep.subr.msk.bf16.mxu1 %vm576_vm0, %v5955_v28 }
 0x53a   : > { %v4854_v61 = vrot.slane %v4852_v62, 3 }
 0x53c   : > { %v4858_v15 = vor.u32 %v4857_v37, %v4854_v61 }
 0x53f   : > { %6983 = vmatmul.mubr.msk.bf16.gmra.mrb[64].mxu1 %vm530_vm3, %v9528_v33  ;;  %v4848_v33 = vrot.slane %v4631_v19, 4 }
 0x540   : > { %6986 = vmatprep.mubr.msk.bf16.mxu1 %vm530_vm3, %v9549_v36  ;;  %v4846_v36 = vsel %vm386_vm4, %v9568_v51, %v4845_v7 }
 0x547   : > { %6987 = vmatmul.mubr.msk.bf16.gmra.mrb[68].mxu1 %vm530_vm3, %v9558_v1  ;;  %v4849_v1 = vor.u32 %v4848_v33, %v4847_v22 }
 0x548   : > { %6990 = vmatprep.mubr.msk.bf16.mxu1 %vm530_vm3, %v9571_v54  ;;  %v4864_v54 = vshll.u32 %v5927_v30, 16  ;;  %v10414_v30 = vld [vmem:[#allocation12_spill] sm:$0xff] }
 0x549   : > { %v4850_v29 = vsel %vm386_vm4, %v4845_v7, %v4849_v1  ;;  %v4859_v19 = vsel %vm386_vm4, %v4849_v1, %v4858_v15  ;;  %v5406_v7 = vunpack.c.l.bf16 %v10412_v44  ;;  %v10415_v1 = vld [vmem:[#allocation4_spill] sm:$0xff]  ;;  %v10425_v44 = vld [vmem:[#allocation21_spill] sm:$0xff] }
 0x54a   : > { %v4866_v40 = vrot.slane %v4864_v54, 4  ;;  %v5405_v10 = vunpack.c.l.bf16 %v10415_v1 }
 0x54c   : > { %v4867_v51 = vor.u32 %v4866_v40, %v4863_v59 }
 0x54e   : > { %v4868_v18 = vsel %vm386_vm4, %v4858_v15, %v4867_v51 }
 0x54f   : > { %6991 = vmatmul.mubr.msk.bf16.gmra.mrb[72].mxu1 %vm530_vm3, %v9575_v58  ;;  %v5245_v58 = vsel %vm576_vm0, %v5955_v28, 0 }
 0x550   : > { %6994 = vmatprep.mubr.msk.bf16.mxu1 %vm530_vm3, %v4846_v36  ;;  %v5407_v36 = vunpack.c.l.bf16 %v10414_v30 }
 0x557   : > { %6995 = vmatmul.mubr.msk.bf16.gmra.mrb[76].mxu1 %vm530_vm3, %v4850_v29 }
 0x558   : > { %6998 = vmatprep.mubr.msk.bf16.mxu1 %vm530_vm3, %v4859_v19 }
 0x55f   : > { %6999 = vmatmul.mubr.msk.bf16.gmra.mrb[80].mxu1 %vm530_vm3, %v4868_v18  ;;  %v10416_v18 = vld [vmem:[#allocation15_spill] sm:$0xff] }
 0x560   : > { %7004 = vmatprep.mubr.msk.bf16.mxu1 %vm530_vm3, %v9611_v17  ;;  %v5941_v17 = vcombine.low %v9859_v27, %v9981_v55 }
 0x567   : > { %7005 = vmatmul.mubr.msk.bf16.vlgmr.msra.gmra.mrb[60].mxu1 %vm530_vm3, %v9615_v16  ;;  %v5942_v16 = vcombine.low %v3270_v38, %v3271_v45  ;;  %v5404_v45 = vunpack.c.l.bf16 %v10413_v24 }
 0x568   : > { %7029 = vmatpush3.bf16.msra.mxu1 %v5245_v58  ;;  %7008 = vmatprep.mubr.msk.bf16.mxu1 %vm530_vm3, %v9623_v0  ;;  %v10406_v0 = vshll.u32 %v9848_v31, 16  ;;  %v5410_v58 = vunpack.c.l.bf16 %v10416_v18  ;;  %v10429_v18 = vld [vmem:[#allocation25_spill] sm:$0xff] }
 0x56f   : > { %7009 = vmatmul.mubr.msk.bf16.gmra.mrb[64].mxu1 %vm530_vm3, %v9627_v41  ;;  %v5210_v41 = vrot.slane %v10406_v0, 1 }
 0x570   : > { %7012 = vmatprep.mubr.msk.bf16.mxu1 %vm530_vm3, %v9635_v57  ;;  %v5213_v57 = vshll.u32 %v5941_v17, 16 }
 0x577   : > { %7013 = vmatmul.mubr.msk.bf16.gmra.mrb[68].mxu1 %vm530_vm3, %v9639_v50  ;;  %v5211_v50 = vsel %vm1016_vm2, %v9795_v49, %v5210_v41 }
 0x578   : > { %7016 = vmatprep.mubr.msk.bf16.mxu1 %vm530_vm3, %v9647_v13  ;;  %v5217_v13 = vshrl.u32 %v5941_v17, 16 }
 0x57f   : > { %7017 = vmatmul.mubr.msk.bf16.gmra.mrb[72].mxu1 %vm530_vm3, %v9651_v6  ;;  %v5220_v6 = vshll.u32 %v5942_v16, 16 }
 0x580   : > { %7020 = vmatprep.mubr.msk.bf16.mxu1 %vm530_vm3, %v9663_v2  ;;  %v5215_v2 = vrot.slane %v5213_v57, 1 }
 0x587   : > { %7021 = vmatmul.mubr.msk.bf16.gmra.mrb[76].mxu1 %vm530_vm3, %v9848_v31 }
 0x588   : > { %7024 = vmatprep.mubr.msk.bf16.mxu1 %vm530_vm3, %v5941_v17 }
 0x58f   : > { %7025 = vmatmul.mubr.msk.bf16.gmra.mrb[80].mxu1 %vm530_vm3, %v5942_v16 }
 0x590   : > { %7030 = vmatprep.mubr.msk.bf16.mxu1 %vm530_vm3, %v9706_v47 }
 0x597   : > { %7031 = vmatmul.mubr.msk.bf16.vlgmr.msra.gmra.mrb[60].mxu1 %vm530_vm3, %v9710_v11  ;;  %v7870_v11 = vld [vmem:[#allocation2 + $0x84] ss:$0 sps:$4 sm:$0xff]  }
 0x598   : > { %7034 = vmatprep.mubr.msk.bf16.mxu1 %vm530_vm3, %v9728_v3  ;;  %v5228_v27 = vshll.u32 %v7870_v11, 16 }
 0x59a   : > { %v5230_v55 = vrot.slane %v5228_v27, 1 }
 0x59f   : > { %7035 = vmatmul.mubr.msk.bf16.gmra.mrb[64].mxu1 %vm530_vm3, %v9732_v21  ;;  %v5224_v21 = vshrl.u32 %v5942_v16, 16  ;;  %v10417_v16 = vld [vmem:[#allocation13_spill] sm:$0xff] }
 0x5a0   : > { %7038 = vmatprep.mubr.msk.bf16.mxu1 %vm530_vm3, %v9750_v4  ;;  %v10407_v4 = vshrl.u32 %v9848_v31, 16  ;;  %v10086_v31 = vld [vmem:[%s10203_s4] ss:$0 sm:$0xff]  ;;  %v5408_v0 = vunpack.c.l.bf16 %v10417_v16 }
 0x5a2   : > { %v5212_v47 = vor.u32 %v5210_v41, %v10407_v4  ;;  %v10419_v4 = vld [vmem:[#allocation14_spill] sm:$0xff] }
 0x5a4   : > { %v5216_v3 = vsel %vm1016_vm2, %v5212_v47, %v5215_v2  ;;  %v5409_v47 = vunpack.c.l.bf16 %v10419_v4 }
 0x5a7   : > { %7039 = vmatmul.mubr.msk.bf16.gmra.mrb[68].mxu1 %vm530_vm3, %v9754_v32  ;;  %v5222_v32 = vrot.slane %v5220_v6, 1 }
 0x5a8   : > { %7042 = vmatprep.mubr.msk.bf16.mxu1 %vm530_vm3, %v9775_v60  ;;  %v5219_v60 = vor.u32 %v5217_v13, %v5215_v2 }
 0x5aa   : > { %v5223_v49 = vsel %vm1016_vm2, %v5219_v60, %v5222_v32 }
 0x5af   : > { %7043 = vmatmul.mubr.msk.bf16.gmra.mrb[72].mxu1 %vm530_vm3, %v9781_v26  ;;  %v5226_v26 = vor.u32 %v5224_v21, %v5222_v32 }
 0x5b0   : > { %7046 = vmatprep.mubr.msk.bf16.mxu1 %vm530_vm3, %v5211_v50  ;;  %v10418_v50 = vld [vmem:[#allocation16_spill] sm:$0xff] }
 0x5b1   : > { %v5231_v8 = vsel %vm1016_vm2, %v5226_v26, %v5230_v55  ;;  %v5411_v13 = vunpack.c.l.bf16 %v10418_v50  ;;  %v10420_v26 = vld [vmem:[#allocation19_spill] sm:$0xff] }
 0x5b2   : > { %v5414_v55 = vunpack.c.l.bf16 %v10420_v26 }
 0x5b7   : > { %7047 = vmatmul.mubr.msk.bf16.gmra.mrb[76].mxu1 %vm530_vm3, %v5216_v3 }
 0x5b8   : > { %7050 = vmatprep.mubr.msk.bf16.mxu1 %vm530_vm3, %v5223_v49 }
 0x5bf   : > { %7051 = vmatmul.mubr.msk.bf16.gmra.mrb[80].mxu1 %vm530_vm3, %v5231_v8 }
 0x66a   : > { %v7032_v46 = vpop.f32.mrb[60].mxu1 }
 0x66b   : > { %v7116_v63 = vadd.f32 %v7032_v46, %v10086_v31  ;;  %v5281_v5 = vpop.f32.mrb[61].mxu1 }
 0x66c   : > { %v7117_v12 = vadd.f32 %v10086_v31, %v5281_v5  ;;  %v7033_v48 = vpop.f32.mrb[62].mxu1 }
 0x66d   : > { %v5426_v14 = vadd.f32 %v7116_v63, %v5402_v56  ;;  %v7118_v35 = vadd.f32 %v7033_v48, %v10086_v31  ;;  %v5284_v25 = vpop.f32.mrb[63].mxu1  ;;  %v5412_v56 = vunpack.c.l.bf16 %v10421_v42 }
 0x66e   : > { %v5424_v28 = vadd.f32 %v7117_v12, %v5400_v9  ;;  %v7119_v38 = vadd.f32 %v10086_v31, %v5284_v25  ;;  %v10422_v9 = vld [vmem:[#allocation20_spill] sm:$0xff] }
 0x66f   : > { %5450 = vst.msk [vmem:[%s8005_s16 + $0x10] sm:$0xff] %vm530_vm3, %v5426_v14  ;;  %v5427_v43 = vadd.f32 %v7118_v35, %v5403_v34  ;;  %v5415_v63 = vunpack.c.l.bf16 %v10422_v9  ;;  %v10423_v34 = vld [vmem:[#allocation18_spill] sm:$0xff] }
 0x670   : > { %5448 = vst.msk [vmem:[%s8005_s16] sm:$0xff] %vm530_vm3, %v5424_v28  ;;  %v5425_v20 = vadd.f32 %v7119_v38, %v5401_v53  ;;  %v5413_v12 = vunpack.c.l.bf16 %v10423_v34  ;;  %v10424_v38 = vld [vmem:[#allocation23_spill] sm:$0xff] }
 0x671   : > { %5451 = vst.msk [vmem:[%s8005_s16 + $0x18] sm:$0xff] %vm530_vm3, %v5427_v43  ;;  %v5418_v43 = vunpack.c.l.bf16 %v10424_v38 }
 0x672   : > { %5449 = vst.msk [vmem:[%s8005_s16 + $0x8] sm:$0xff] %vm530_vm3, %v5425_v20  ;;  %v7036_v62 = vpop.f32.mrb[64].mxu1 }
 0x673   : > { %v7120_v22 = vadd.f32 %v7036_v62, %v10086_v31  ;;  %v5297_v33 = vpop.f32.mrb[65].mxu1 }
 0x674   : > { %v7121_v61 = vadd.f32 %v10086_v31, %v5297_v33  ;;  %v7037_v37 = vpop.f32.mrb[66].mxu1 }
 0x675   : > { %v5430_v54 = vadd.f32 %v7120_v22, %v5406_v7  ;;  %v7122_v15 = vadd.f32 %v7037_v37, %v10086_v31  ;;  %v5300_v29 = vpop.f32.mrb[67].mxu1  ;;  %v5416_v7 = vunpack.c.l.bf16 %v10425_v44 }
 0x676   : > { %v5428_v59 = vadd.f32 %v7121_v61, %v5404_v45  ;;  %v7123_v40 = vadd.f32 %v10086_v31, %v5300_v29  ;;  %v10426_v45 = vld [vmem:[#allocation24_spill] sm:$0xff] }
 0x677   : > { %5454 = vst.msk [vmem:[%s8005_s16 + $0x30] sm:$0xff] %vm530_vm3, %v5430_v54  ;;  %v5431_v19 = vadd.f32 %v7122_v15, %v5407_v36  ;;  %v5419_v22 = vunpack.c.l.bf16 %v10426_v45  ;;  %v10427_v36 = vld [vmem:[#allocation22_spill] sm:$0xff] }
 0x678   : > { %5452 = vst.msk [vmem:[%s8005_s16 + $0x20] sm:$0xff] %vm530_vm3, %v5428_v59  ;;  %v5429_v51 = vadd.f32 %v7123_v40, %v5405_v10  ;;  %v5417_v61 = vunpack.c.l.bf16 %v10427_v36  ;;  %v10428_v40 = vld [vmem:[#allocation27_spill] sm:$0xff] }
 0x679   : > { %5455 = vst.msk [vmem:[%s8005_s16 + $0x38] sm:$0xff] %vm530_vm3, %v5431_v19  ;;  %v5422_v19 = vunpack.c.l.bf16 %v10428_v40 }
 0x67a   : > { %5453 = vst.msk [vmem:[%s8005_s16 + $0x28] sm:$0xff] %vm530_vm3, %v5429_v51  ;;  %v7040_v17 = vpop.f32.mrb[68].mxu1 }
 0x67b   : > { %v7124_v41 = vadd.f32 %v7040_v17, %v10086_v31  ;;  %v5313_v57 = vpop.f32.mrb[69].mxu1 }
 0x67c   : > { %v7125_v6 = vadd.f32 %v10086_v31, %v5313_v57  ;;  %v7041_v2 = vpop.f32.mrb[70].mxu1 }
 0x67d   : > { %v5434_v11 = vadd.f32 %v7124_v41, %v5410_v58  ;;  %v7126_v60 = vadd.f32 %v7041_v2, %v10086_v31  ;;  %v5316_v32 = vpop.f32.mrb[71].mxu1  ;;  %v5420_v58 = vunpack.c.l.bf16 %v10429_v18 }
 0x67e   : > { %v5432_v3 = vadd.f32 %v7125_v6, %v5408_v0  ;;  %v7127_v21 = vadd.f32 %v10086_v31, %v5316_v32  ;;  %v10430_v0 = vld [vmem:[#allocation28_spill] sm:$0xff] }
 0x67f   : > { %5458 = vst.msk [vmem:[%s8005_s16 + $0x50] sm:$0xff] %vm530_vm3, %v5434_v11  ;;  %v5435_v27 = vadd.f32 %v7126_v60, %v5411_v13  ;;  %v5423_v41 = vunpack.c.l.bf16 %v10430_v0  ;;  %v10431_v13 = vld [vmem:[#allocation26_spill] sm:$0xff] }
 0x680   : > { %5456 = vst.msk [vmem:[%s8005_s16 + $0x40] sm:$0xff] %vm530_vm3, %v5432_v3  ;;  %v5433_v49 = vadd.f32 %v7127_v21, %v5409_v47  ;;  %v5421_v6 = vunpack.c.l.bf16 %v10431_v13 }
 0x681   : > { %5459 = vst.msk [vmem:[%s8005_s16 + $0x58] sm:$0xff] %vm530_vm3, %v5435_v27 }
 0x682   : > { %5457 = vst.msk [vmem:[%s8005_s16 + $0x48] sm:$0xff] %vm530_vm3, %v5433_v49  ;;  %v7044_v8 = vpop.f32.mrb[72].mxu1 }
 0x683   : > { %v7128_v46 = vadd.f32 %v7044_v8, %v10086_v31  ;;  %v5329_v23 = vpop.f32.mrb[73].mxu1 }
 0x684   : > { %v7129_v5 = vadd.f32 %v10086_v31, %v5329_v23  ;;  %v7045_v39 = vpop.f32.mrb[74].mxu1 }
 0x685   : > { %v5438_v48 = vadd.f32 %v7128_v46, %v5414_v55  ;;  %v7130_v52 = vadd.f32 %v7045_v39, %v10086_v31  ;;  %v5332_v53 = vpop.f32.mrb[75].mxu1 }
 0x686   : > { %v5436_v14 = vadd.f32 %v7129_v5, %v5412_v56  ;;  %v7131_v35 = vadd.f32 %v10086_v31, %v5332_v53 }
 0x687   : > { %5462 = vst.msk [vmem:[%s8005_s16 + $0x70] sm:$0xff] %vm530_vm3, %v5438_v48  ;;  %v5439_v25 = vadd.f32 %v7130_v52, %v5415_v63 }
 0x688   : > { %5460 = vst.msk [vmem:[%s8005_s16 + $0x60] sm:$0xff] %vm530_vm3, %v5436_v14  ;;  %v5437_v28 = vadd.f32 %v7131_v35, %v5413_v12 }
 0x689   : > { %5463 = vst.msk [vmem:[%s8005_s16 + $0x78] sm:$0xff] %vm530_vm3, %v5439_v25 }
 0x68a   : > { %5461 = vst.msk [vmem:[%s8005_s16 + $0x68] sm:$0xff] %vm530_vm3, %v5437_v28  ;;  %v7048_v20 = vpop.f32.mrb[76].mxu1 }
 0x68b   : > { %v7132_v62 = vadd.f32 %v7048_v20, %v10086_v31  ;;  %v5345_v24 = vpop.f32.mrb[77].mxu1 }
 0x68c   : > { %v7133_v33 = vadd.f32 %v10086_v31, %v5345_v24  ;;  %v7049_v30 = vpop.f32.mrb[78].mxu1 }
 0x68d   : > { %v5442_v37 = vadd.f32 %v7132_v62, %v5418_v43  ;;  %v7134_v1 = vadd.f32 %v7049_v30, %v10086_v31  ;;  %v5348_v10 = vpop.f32.mrb[79].mxu1 }
 0x68e   : > { %v5440_v54 = vadd.f32 %v7133_v33, %v5416_v7  ;;  %v7135_v15 = vadd.f32 %v10086_v31, %v5348_v10 }
 0x68f   : > { %5466 = vst.msk [vmem:[%s8005_s16 + $0x90] sm:$0xff] %vm530_vm3, %v5442_v37  ;;  %v5443_v29 = vadd.f32 %v7134_v1, %v5419_v22 }
 0x690   : > { %5464 = vst.msk [vmem:[%s8005_s16 + $0x80] sm:$0xff] %vm530_vm3, %v5440_v54  ;;  %v5441_v59 = vadd.f32 %v7135_v15, %v5417_v61 }
 0x691   : > { %5467 = vst.msk [vmem:[%s8005_s16 + $0x98] sm:$0xff] %vm530_vm3, %v5443_v29 }
 0x692   : > { %5465 = vst.msk [vmem:[%s8005_s16 + $0x88] sm:$0xff] %vm530_vm3, %v5441_v59  ;;  %v7052_v51 = vpop.f32.mrb[80].mxu1 }
 0x693   : > { %v7136_v17 = vadd.f32 %v7052_v51, %v10086_v31  ;;  %v5361_v16 = vpop.f32.mrb[81].mxu1 }
 0x694   : > { %v7137_v57 = vadd.f32 %v10086_v31, %v5361_v16  ;;  %v7053_v50 = vpop.f32.mrb[82].mxu1 }
 0x695   : > { %v5446_v2 = vadd.f32 %v7136_v17, %v5422_v19  ;;  %v7138_v4 = vadd.f32 %v7053_v50, %v10086_v31  ;;  %v5364_v47 = vpop.f32.mrb[83].mxu1 }
 0x696   : > { %v5444_v11 = vadd.f32 %v7137_v57, %v5420_v58  ;;  %v7139_v60 = vadd.f32 %v10086_v31, %v5364_v47 }
 0x697   : > { %5470 = vst.msk [vmem:[%s8005_s16 + $0xb0] sm:$0xff] %vm530_vm3, %v5446_v2  ;;  %v5447_v32 = vadd.f32 %v7138_v4, %v5423_v41 }
 0x698   : > { %5468 = vst.msk [vmem:[%s8005_s16 + $0xa0] sm:$0xff] %vm530_vm3, %v5444_v11  ;;  %v5445_v3 = vadd.f32 %v7139_v60, %v5421_v6 }
 0x699   : > { %5471 = vst.msk [vmem:[%s8005_s16 + $0xb8] sm:$0xff] %vm530_vm3, %v5447_v32 }
 0x69a   : > { %5469 = vst.msk [vmem:[%s8005_s16 + $0xa8] sm:$0xff] %vm530_vm3, %v5445_v3 }
 0x69b PF: > { %s15_s22 = sadd.s32 1, %s7909_s22   ;;  %s10432_s18 = smov %s7901_s20 }
 0x69c   : > { %p12_p9 = scmp.ge.s32.totalorder %s15_s22, 6   ;;  %s10433_s19 = smov %s7905_s21 }
 0x69d   : > { %s10434_s20 = smov %s10437_s23  ;;  %s10435_s21 = smov %s10441_s24 }
 0x69e   :  { %14 = sbr.rel (!%p12_p9) target bundleno = 3 (0x3), region = 98 }

</bundles_post_ra>
